<compile_context>
chip_gen: v6e
topology: v6e:2x2x1
jax: 0.10.0
libtpu: 0.0.40
codegen_flags: <defaults>
</compile_context>

<pallas_src>
import jax
import jax.numpy as jnp
from jax import lax
from jax.experimental import pallas as pl
from jax.experimental.pallas import tpu as pltpu

LANE = 128  # TPU vreg lane width


def _make_kernel(C, O, H, W, KH, KW, TN):
    Ho, Wo = H - KH + 1, W - KW + 1
    CKK = C * KH * KW
    n_chunks = TN // LANE

    def kernel(x_ref, w_ref, shift_ref, o_ref):
        # x_ref:     VMEM (C, H, W, TN)    batch in the lane dim (dense 128 lanes)
        # w_ref:     SMEM (O*C*KH*KW,)     conv weights with BN scale folded in (OIHW flat)
        # shift_ref: SMEM (O,)             beta + (conv_bias - running_mean) * scale
        # o_ref:     VMEM (O, Ho, Wo, TN)

        for nb in range(n_chunks):        # static, small (<= 8)
            lo = nb * LANE

            # Rolled loop over output rows: bounds live ranges so the 8
            # accumulators (8 x (Wo,128) f32 = 16 vregs) stay in registers.
            @pl.loop(0, Ho)
            def _row(r):
                accs = [jnp.zeros((Wo, LANE), jnp.float32) for _ in range(O)]
                for c in range(C):
                    for i in range(KH):
                        for j in range(KW):
                            # Ref-sliced tap load: dense 128-lane vld, built once
                            # and reused by all O output channels.
                            patch = x_ref[c, r + i, j:j + Wo, lo:lo + LANE]
                            patch = patch.astype(jnp.float32)
                            base = c * KH * KW + i * KW + j
                            for o in range(O):
                                accs[o] = accs[o] + w_ref[o * CKK + base] * patch
                # Epilogue: folded bias/BN shift + ReLU; dense unmasked stores.
                for o in range(O):
                    y = jnp.maximum(accs[o] + shift_ref[o], 0.0)
                    o_ref[o, r, :, lo:lo + LANE] = y.astype(o_ref.dtype)

    return kernel, Ho, Wo


def _pick_batch_tile(n_pad, in_bytes_per_lane_chunk, target_bytes=4 << 20):
    """Lane-dim batch tile: a multiple of 128 that divides n_pad, sized so each
    grid step moves a few MiB of input (amortizing ~0.35 us/step overhead) while
    leaving >= 2 grid steps when possible so the 'parallel' batch axis splits
    across both TensorCores on v7x. Small enough to stay well under the 32 MiB
    scoped-VMEM limit (safe on v5e/v6e/v7x) even double-buffered."""
    max_chunks = max(1, min(8, target_bytes // max(in_bytes_per_lane_chunk, 1)))
    tn = min(n_pad, max_chunks * LANE)
    if n_pad >= 2 * LANE:
        tn = min(tn, n_pad // 2)          # guarantee >= 2 grid steps (v7x 2-TC)
    tn -= tn % LANE
    tn = max(tn, LANE)
    while n_pad % tn:
        tn -= LANE
    return tn


def fcn_block_forward(x, weight, bias, gamma, beta, running_mean, running_var,
                      *, eps=1e-5, batch_tile=None):
    """FCN_block forward. x: (N,C,H,W); weight: (O,C,KH,KW); bias/gamma/beta/
    running_mean/running_var: (O,). Returns (N, O, Ho, Wo) ('valid' conv)."""
    N, C, H, W = x.shape
    O, C_w, KH, KW = weight.shape
    assert C_w == C and H >= KH and W >= KW
    Ho, Wo = H - KH + 1, W - KW + 1

    # Fold conv bias + eval-mode BatchNorm2d into the weights / per-channel shift:
    #   y = ((conv_w(x) + b) - mean) * gamma / sqrt(var + eps) + beta
    #     =  conv_{w * scale}(x) + shift,   shift = beta + (b - mean) * scale
    scale = (gamma / jnp.sqrt(running_var + eps)).astype(jnp.float32)
    shift = (beta + (bias - running_mean) * scale).astype(jnp.float32)
    w_folded = (weight.astype(jnp.float32) * scale[:, None, None, None]).reshape(-1)

    itemsize = x.dtype.itemsize

    # Lane-dense batch layout: pad N to a multiple of 128 and put it last.
    n_pad = pl.cdiv(N, LANE) * LANE
    if batch_tile is not None:
        assert batch_tile % LANE == 0 and n_pad % batch_tile == 0
        tn = batch_tile
    else:
        tn = _pick_batch_tile(n_pad, C * H * W * LANE * itemsize)
    grid = (n_pad // tn,)

    x_p = jnp.pad(x, ((0, n_pad - N), (0, 0), (0, 0), (0, 0)))
    x_t = jnp.transpose(x_p, (1, 2, 3, 0))                 # (C, H, W, n_pad)

    kernel, Ho, Wo = _make_kernel(C, O, H, W, KH, KW, tn)

    cost = pl.CostEstimate(
        flops=2 * n_pad * O * C * KH * KW * Ho * Wo + 2 * n_pad * O * Ho * Wo,
        transcendentals=0,
        bytes_accessed=n_pad * (C * H * W + O * Ho * Wo) * itemsize
                       + (w_folded.size + O) * 4,
    )

    out_t = pl.pallas_call(
        kernel,
        out_shape=jax.ShapeDtypeStruct((O, Ho, Wo, n_pad), x.dtype),
        grid_spec=pltpu.PrefetchScalarGridSpec(
            num_scalar_prefetch=0,
            grid=grid,
            in_specs=[
                # One lane-aligned batch tile per grid step.
                pl.BlockSpec((C, H, W, tn), lambda n: (0, 0, 0, n)),
                # Tiny parameters live in SMEM and are read as scalars.
                pl.BlockSpec(memory_space=pltpu.MemorySpace.SMEM),
                pl.BlockSpec(memory_space=pltpu.MemorySpace.SMEM),
            ],
            out_specs=pl.BlockSpec((O, Ho, Wo, tn), lambda n: (0, 0, 0, n)),
        ),
        compiler_params=pltpu.CompilerParams(
            dimension_semantics=("parallel",),   # batch-tile axis: 2-TC split on v7x
            vmem_limit_bytes=32 * 1024 * 1024,   # explicit; safe on v5e/v6e/v7x
        ),
        cost_estimate=cost,
    )(x_t, w_folded, shift)

    # Back to NCHW and drop the batch padding.
    return jnp.transpose(out_t, (3, 0, 1, 2))[:N]


if __name__ == "__main__":
    # Module config: in_channels=4, out_channels=8, kernel_size=3, padding='valid'
    N, C, O = 2, 4, 8
    H = W = 16
    KH = KW = 3
    eps = 1e-5

    key = jax.random.PRNGKey(0)
    kx, kw_, kb, kg, kbe, km, kv = jax.random.split(key, 7)
    x = jax.random.normal(kx, (N, C, H, W), dtype=jnp.float32)
    weight = jax.random.normal(kw_, (O, C, KH, KW), dtype=jnp.float32) * 0.1
    bias = jax.random.normal(kb, (O,), dtype=jnp.float32) * 0.1
    gamma = 1.0 + 0.1 * jax.random.normal(kg, (O,), dtype=jnp.float32)
    beta = 0.1 * jax.random.normal(kbe, (O,), dtype=jnp.float32)
    running_mean = 0.1 * jax.random.normal(km, (O,), dtype=jnp.float32)
    running_var = jax.random.uniform(kv, (O,), dtype=jnp.float32,
                                     minval=0.5, maxval=1.5)

    out = fcn_block_forward(x, weight, bias, gamma, beta,
                            running_mean, running_var, eps=eps)
    out = jax.block_until_ready(out)

    # Reference: XLA conv + (unfused) eval-mode BatchNorm + ReLU, same semantics
    # as torch Conv2d('valid') -> BatchNorm2d(eval) -> ReLU.
    conv = lax.conv_general_dilated(
        x, weight, window_strides=(1, 1), padding="VALID",
        dimension_numbers=("NCHW", "OIHW", "NCHW")) + bias.reshape(1, O, 1, 1)
    bn = (conv - running_mean.reshape(1, O, 1, 1)) / jnp.sqrt(
        running_var.reshape(1, O, 1, 1) + eps) * gamma.reshape(1, O, 1, 1) \
        + beta.reshape(1, O, 1, 1)
    ref = jnp.maximum(bn, 0.0)

    assert out.shape == (N, O, H - KH + 1, W - KW + 1)
    assert jnp.allclose(out, ref, atol=1e-4, rtol=1e-4)

    print("KERNEL_OK")
</pallas_src>

<mosaic_0001>
module attributes {stable_mosaic.version = 11 : i64} {
  func.func @kernel(%arg0: i32, %arg1: memref<4x16x16x128xf32, #tpu.memory_space<vmem>>, %arg2: memref<288xf32, #tpu.memory_space<smem>>, %arg3: memref<8xf32, #tpu.memory_space<smem>>, %arg4: memref<8x14x14x128xf32, #tpu.memory_space<vmem>>) attributes {dimension_semantics = [#tpu.dimension_semantics<parallel>], iteration_bounds = array<i64: 1>, scalar_prefetch = 0 : i64, scratch_operands = 0 : i64, tpu.core_type = #tpu.core_type<tc>, window_params = [{transform_indices = @transform_0, window_bounds = array<i64: 4, 16, 16, 128>}, {transform_indices = @transform_1, window_bounds = array<i64: 288>}, {transform_indices = @transform_2, window_bounds = array<i64: 8>}, {transform_indices = @transform_3, window_bounds = array<i64: 8, 14, 14, 128>}]} {
    %c0_i32 = arith.constant 0 : i32
    %c14_i32 = arith.constant 14 : i32
    %0 = arith.addi %c0_i32, %c14_i32 : i32
    %c1_i32 = arith.constant 1 : i32
    scf.for %arg5 = %c0_i32 to %0 step %c1_i32  : i32 {
      %c1_i32_1 = arith.constant 1 : i32
      %1 = arith.muli %arg5, %c1_i32_1 : i32
      %c0_i32_2 = arith.constant 0 : i32
      %2 = arith.addi %c0_i32_2, %1 : i32
      %cst = arith.constant 0.000000e+00 : f32
      %3 = vector.broadcast %cst : f32 to vector<14x128xf32>
      %cst_3 = arith.constant 0.000000e+00 : f32
      %4 = vector.broadcast %cst_3 : f32 to vector<14x128xf32>
      %cst_4 = arith.constant 0.000000e+00 : f32
      %5 = vector.broadcast %cst_4 : f32 to vector<14x128xf32>
      %cst_5 = arith.constant 0.000000e+00 : f32
      %6 = vector.broadcast %cst_5 : f32 to vector<14x128xf32>
      %cst_6 = arith.constant 0.000000e+00 : f32
      %7 = vector.broadcast %cst_6 : f32 to vector<14x128xf32>
      %cst_7 = arith.constant 0.000000e+00 : f32
      %8 = vector.broadcast %cst_7 : f32 to vector<14x128xf32>
      %cst_8 = arith.constant 0.000000e+00 : f32
      %9 = vector.broadcast %cst_8 : f32 to vector<14x128xf32>
      %cst_9 = arith.constant 0.000000e+00 : f32
      %10 = vector.broadcast %cst_9 : f32 to vector<14x128xf32>
      %c0_i32_10 = arith.constant 0 : i32
      %11 = arith.addi %2, %c0_i32_10 : i32
      %c0 = arith.constant 0 : index
      %12 = arith.index_cast %11 : i32 to index
      %c0_11 = arith.constant 0 : index
      %c0_12 = arith.constant 0 : index
      %13 = vector.load %arg1[%c0, %12, %c0_11, %c0_12] : memref<4x16x16x128xf32, #tpu.memory_space<vmem>>, vector<1x1x14x128xf32>
      %14 = vector.shape_cast %13 : vector<1x1x14x128xf32> to vector<14x128xf32>
      %c0_13 = arith.constant 0 : index
      %15 = memref.load %arg2[%c0_13] : memref<288xf32, #tpu.memory_space<smem>>
      %16 = vector.broadcast %15 : f32 to vector<14x128xf32>
      %17 = arith.mulf %16, %14 : vector<14x128xf32>
      %18 = arith.addf %3, %17 : vector<14x128xf32>
      %c36 = arith.constant 36 : index
      %19 = memref.load %arg2[%c36] : memref<288xf32, #tpu.memory_space<smem>>
      %20 = vector.broadcast %19 : f32 to vector<14x128xf32>
      %21 = arith.mulf %20, %14 : vector<14x128xf32>
      %22 = arith.addf %4, %21 : vector<14x128xf32>
      %c72 = arith.constant 72 : index
      %23 = memref.load %arg2[%c72] : memref<288xf32, #tpu.memory_space<smem>>
      %24 = vector.broadcast %23 : f32 to vector<14x128xf32>
      %25 = arith.mulf %24, %14 : vector<14x128xf32>
      %26 = arith.addf %5, %25 : vector<14x128xf32>
      %c108 = arith.constant 108 : index
      %27 = memref.load %arg2[%c108] : memref<288xf32, #tpu.memory_space<smem>>
      %28 = vector.broadcast %27 : f32 to vector<14x128xf32>
      %29 = arith.mulf %28, %14 : vector<14x128xf32>
      %30 = arith.addf %6, %29 : vector<14x128xf32>
      %c144 = arith.constant 144 : index
      %31 = memref.load %arg2[%c144] : memref<288xf32, #tpu.memory_space<smem>>
      %32 = vector.broadcast %31 : f32 to vector<14x128xf32>
      %33 = arith.mulf %32, %14 : vector<14x128xf32>
      %34 = arith.addf %7, %33 : vector<14x128xf32>
      %c180 = arith.constant 180 : index
      %35 = memref.load %arg2[%c180] : memref<288xf32, #tpu.memory_space<smem>>
      %36 = vector.broadcast %35 : f32 to vector<14x128xf32>
      %37 = arith.mulf %36, %14 : vector<14x128xf32>
      %38 = arith.addf %8, %37 : vector<14x128xf32>
      %c216 = arith.constant 216 : index
      %39 = memref.load %arg2[%c216] : memref<288xf32, #tpu.memory_space<smem>>
      %40 = vector.broadcast %39 : f32 to vector<14x128xf32>
      %41 = arith.mulf %40, %14 : vector<14x128xf32>
      %42 = arith.addf %9, %41 : vector<14x128xf32>
      %c252 = arith.constant 252 : index
      %43 = memref.load %arg2[%c252] : memref<288xf32, #tpu.memory_space<smem>>
      %44 = vector.broadcast %43 : f32 to vector<14x128xf32>
      %45 = arith.mulf %44, %14 : vector<14x128xf32>
      %46 = arith.addf %10, %45 : vector<14x128xf32>
      %c0_i32_14 = arith.constant 0 : i32
      %47 = arith.addi %2, %c0_i32_14 : i32
      %c0_15 = arith.constant 0 : index
      %48 = arith.index_cast %47 : i32 to index
      %c1 = arith.constant 1 : index
      %c0_16 = arith.constant 0 : index
      %49 = vector.load %arg1[%c0_15, %48, %c1, %c0_16] : memref<4x16x16x128xf32, #tpu.memory_space<vmem>>, vector<1x1x14x128xf32>
      %50 = vector.shape_cast %49 : vector<1x1x14x128xf32> to vector<14x128xf32>
      %c1_17 = arith.constant 1 : index
      %51 = memref.load %arg2[%c1_17] : memref<288xf32, #tpu.memory_space<smem>>
      %52 = vector.broadcast %51 : f32 to vector<14x128xf32>
      %53 = arith.mulf %52, %50 : vector<14x128xf32>
      %54 = arith.addf %18, %53 : vector<14x128xf32>
      %c37 = arith.constant 37 : index
      %55 = memref.load %arg2[%c37] : memref<288xf32, #tpu.memory_space<smem>>
      %56 = vector.broadcast %55 : f32 to vector<14x128xf32>
      %57 = arith.mulf %56, %50 : vector<14x128xf32>
      %58 = arith.addf %22, %57 : vector<14x128xf32>
      %c73 = arith.constant 73 : index
      %59 = memref.load %arg2[%c73] : memref<288xf32, #tpu.memory_space<smem>>
      %60 = vector.broadcast %59 : f32 to vector<14x128xf32>
      %61 = arith.mulf %60, %50 : vector<14x128xf32>
      %62 = arith.addf %26, %61 : vector<14x128xf32>
      %c109 = arith.constant 109 : index
      %63 = memref.load %arg2[%c109] : memref<288xf32, #tpu.memory_space<smem>>
      %64 = vector.broadcast %63 : f32 to vector<14x128xf32>
      %65 = arith.mulf %64, %50 : vector<14x128xf32>
      %66 = arith.addf %30, %65 : vector<14x128xf32>
      %c145 = arith.constant 145 : index
      %67 = memref.load %arg2[%c145] : memref<288xf32, #tpu.memory_space<smem>>
      %68 = vector.broadcast %67 : f32 to vector<14x128xf32>
      %69 = arith.mulf %68, %50 : vector<14x128xf32>
      %70 = arith.addf %34, %69 : vector<14x128xf32>
      %c181 = arith.constant 181 : index
      %71 = memref.load %arg2[%c181] : memref<288xf32, #tpu.memory_space<smem>>
      %72 = vector.broadcast %71 : f32 to vector<14x128xf32>
      %73 = arith.mulf %72, %50 : vector<14x128xf32>
      %74 = arith.addf %38, %73 : vector<14x128xf32>
      %c217 = arith.constant 217 : index
      %75 = memref.load %arg2[%c217] : memref<288xf32, #tpu.memory_space<smem>>
      %76 = vector.broadcast %75 : f32 to vector<14x128xf32>
      %77 = arith.mulf %76, %50 : vector<14x128xf32>
      %78 = arith.addf %42, %77 : vector<14x128xf32>
      %c253 = arith.constant 253 : index
      %79 = memref.load %arg2[%c253] : memref<288xf32, #tpu.memory_space<smem>>
      %80 = vector.broadcast %79 : f32 to vector<14x128xf32>
      %81 = arith.mulf %80, %50 : vector<14x128xf32>
      %82 = arith.addf %46, %81 : vector<14x128xf32>
      %c0_i32_18 = arith.constant 0 : i32
      %83 = arith.addi %2, %c0_i32_18 : i32
      %c0_19 = arith.constant 0 : index
      %84 = arith.index_cast %83 : i32 to index
      %c2 = arith.constant 2 : index
      %c0_20 = arith.constant 0 : index
      %85 = vector.load %arg1[%c0_19, %84, %c2, %c0_20] : memref<4x16x16x128xf32, #tpu.memory_space<vmem>>, vector<1x1x14x128xf32>
      %86 = vector.shape_cast %85 : vector<1x1x14x128xf32> to vector<14x128xf32>
      %c2_21 = arith.constant 2 : index
      %87 = memref.load %arg2[%c2_21] : memref<288xf32, #tpu.memory_space<smem>>
      %88 = vector.broadcast %87 : f32 to vector<14x128xf32>
      %89 = arith.mulf %88, %86 : vector<14x128xf32>
      %90 = arith.addf %54, %89 : vector<14x128xf32>
      %c38 = arith.constant 38 : index
      %91 = memref.load %arg2[%c38] : memref<288xf32, #tpu.memory_space<smem>>
      %92 = vector.broadcast %91 : f32 to vector<14x128xf32>
      %93 = arith.mulf %92, %86 : vector<14x128xf32>
      %94 = arith.addf %58, %93 : vector<14x128xf32>
      %c74 = arith.constant 74 : index
      %95 = memref.load %arg2[%c74] : memref<288xf32, #tpu.memory_space<smem>>
      %96 = vector.broadcast %95 : f32 to vector<14x128xf32>
      %97 = arith.mulf %96, %86 : vector<14x128xf32>
      %98 = arith.addf %62, %97 : vector<14x128xf32>
      %c110 = arith.constant 110 : index
      %99 = memref.load %arg2[%c110] : memref<288xf32, #tpu.memory_space<smem>>
      %100 = vector.broadcast %99 : f32 to vector<14x128xf32>
      %101 = arith.mulf %100, %86 : vector<14x128xf32>
      %102 = arith.addf %66, %101 : vector<14x128xf32>
      %c146 = arith.constant 146 : index
      %103 = memref.load %arg2[%c146] : memref<288xf32, #tpu.memory_space<smem>>
      %104 = vector.broadcast %103 : f32 to vector<14x128xf32>
      %105 = arith.mulf %104, %86 : vector<14x128xf32>
      %106 = arith.addf %70, %105 : vector<14x128xf32>
      %c182 = arith.constant 182 : index
      %107 = memref.load %arg2[%c182] : memref<288xf32, #tpu.memory_space<smem>>
      %108 = vector.broadcast %107 : f32 to vector<14x128xf32>
      %109 = arith.mulf %108, %86 : vector<14x128xf32>
      %110 = arith.addf %74, %109 : vector<14x128xf32>
      %c218 = arith.constant 218 : index
      %111 = memref.load %arg2[%c218] : memref<288xf32, #tpu.memory_space<smem>>
      %112 = vector.broadcast %111 : f32 to vector<14x128xf32>
      %113 = arith.mulf %112, %86 : vector<14x128xf32>
      %114 = arith.addf %78, %113 : vector<14x128xf32>
      %c254 = arith.constant 254 : index
      %115 = memref.load %arg2[%c254] : memref<288xf32, #tpu.memory_space<smem>>
      %116 = vector.broadcast %115 : f32 to vector<14x128xf32>
      %117 = arith.mulf %116, %86 : vector<14x128xf32>
      %118 = arith.addf %82, %117 : vector<14x128xf32>
      %c1_i32_22 = arith.constant 1 : i32
      %119 = arith.addi %2, %c1_i32_22 : i32
      %c0_23 = arith.constant 0 : index
      %120 = arith.index_cast %119 : i32 to index
      %c0_24 = arith.constant 0 : index
      %c0_25 = arith.constant 0 : index
      %121 = vector.load %arg1[%c0_23, %120, %c0_24, %c0_25] : memref<4x16x16x128xf32, #tpu.memory_space<vmem>>, vector<1x1x14x128xf32>
      %122 = vector.shape_cast %121 : vector<1x1x14x128xf32> to vector<14x128xf32>
      %c3 = arith.constant 3 : index
      %123 = memref.load %arg2[%c3] : memref<288xf32, #tpu.memory_space<smem>>
      %124 = vector.broadcast %123 : f32 to vector<14x128xf32>
      %125 = arith.mulf %124, %122 : vector<14x128xf32>
      %126 = arith.addf %90, %125 : vector<14x128xf32>
      %c39 = arith.constant 39 : index
      %127 = memref.load %arg2[%c39] : memref<288xf32, #tpu.memory_space<smem>>
      %128 = vector.broadcast %127 : f32 to vector<14x128xf32>
      %129 = arith.mulf %128, %122 : vector<14x128xf32>
      %130 = arith.addf %94, %129 : vector<14x128xf32>
      %c75 = arith.constant 75 : index
      %131 = memref.load %arg2[%c75] : memref<288xf32, #tpu.memory_space<smem>>
      %132 = vector.broadcast %131 : f32 to vector<14x128xf32>
      %133 = arith.mulf %132, %122 : vector<14x128xf32>
      %134 = arith.addf %98, %133 : vector<14x128xf32>
      %c111 = arith.constant 111 : index
      %135 = memref.load %arg2[%c111] : memref<288xf32, #tpu.memory_space<smem>>
      %136 = vector.broadcast %135 : f32 to vector<14x128xf32>
      %137 = arith.mulf %136, %122 : vector<14x128xf32>
      %138 = arith.addf %102, %137 : vector<14x128xf32>
      %c147 = arith.constant 147 : index
      %139 = memref.load %arg2[%c147] : memref<288xf32, #tpu.memory_space<smem>>
      %140 = vector.broadcast %139 : f32 to vector<14x128xf32>
      %141 = arith.mulf %140, %122 : vector<14x128xf32>
      %142 = arith.addf %106, %141 : vector<14x128xf32>
      %c183 = arith.constant 183 : index
      %143 = memref.load %arg2[%c183] : memref<288xf32, #tpu.memory_space<smem>>
      %144 = vector.broadcast %143 : f32 to vector<14x128xf32>
      %145 = arith.mulf %144, %122 : vector<14x128xf32>
      %146 = arith.addf %110, %145 : vector<14x128xf32>
      %c219 = arith.constant 219 : index
      %147 = memref.load %arg2[%c219] : memref<288xf32, #tpu.memory_space<smem>>
      %148 = vector.broadcast %147 : f32 to vector<14x128xf32>
      %149 = arith.mulf %148, %122 : vector<14x128xf32>
      %150 = arith.addf %114, %149 : vector<14x128xf32>
      %c255 = arith.constant 255 : index
      %151 = memref.load %arg2[%c255] : memref<288xf32, #tpu.memory_space<smem>>
      %152 = vector.broadcast %151 : f32 to vector<14x128xf32>
      %153 = arith.mulf %152, %122 : vector<14x128xf32>
      %154 = arith.addf %118, %153 : vector<14x128xf32>
      %c1_i32_26 = arith.constant 1 : i32
      %155 = arith.addi %2, %c1_i32_26 : i32
      %c0_27 = arith.constant 0 : index
      %156 = arith.index_cast %155 : i32 to index
      %c1_28 = arith.constant 1 : index
      %c0_29 = arith.constant 0 : index
      %157 = vector.load %arg1[%c0_27, %156, %c1_28, %c0_29] : memref<4x16x16x128xf32, #tpu.memory_space<vmem>>, vector<1x1x14x128xf32>
      %158 = vector.shape_cast %157 : vector<1x1x14x128xf32> to vector<14x128xf32>
      %c4 = arith.constant 4 : index
      %159 = memref.load %arg2[%c4] : memref<288xf32, #tpu.memory_space<smem>>
      %160 = vector.broadcast %159 : f32 to vector<14x128xf32>
      %161 = arith.mulf %160, %158 : vector<14x128xf32>
      %162 = arith.addf %126, %161 : vector<14x128xf32>
      %c40 = arith.constant 40 : index
      %163 = memref.load %arg2[%c40] : memref<288xf32, #tpu.memory_space<smem>>
      %164 = vector.broadcast %163 : f32 to vector<14x128xf32>
      %165 = arith.mulf %164, %158 : vector<14x128xf32>
      %166 = arith.addf %130, %165 : vector<14x128xf32>
      %c76 = arith.constant 76 : index
      %167 = memref.load %arg2[%c76] : memref<288xf32, #tpu.memory_space<smem>>
      %168 = vector.broadcast %167 : f32 to vector<14x128xf32>
      %169 = arith.mulf %168, %158 : vector<14x128xf32>
      %170 = arith.addf %134, %169 : vector<14x128xf32>
      %c112 = arith.constant 112 : index
      %171 = memref.load %arg2[%c112] : memref<288xf32, #tpu.memory_space<smem>>
      %172 = vector.broadcast %171 : f32 to vector<14x128xf32>
      %173 = arith.mulf %172, %158 : vector<14x128xf32>
      %174 = arith.addf %138, %173 : vector<14x128xf32>
      %c148 = arith.constant 148 : index
      %175 = memref.load %arg2[%c148] : memref<288xf32, #tpu.memory_space<smem>>
      %176 = vector.broadcast %175 : f32 to vector<14x128xf32>
      %177 = arith.mulf %176, %158 : vector<14x128xf32>
      %178 = arith.addf %142, %177 : vector<14x128xf32>
      %c184 = arith.constant 184 : index
      %179 = memref.load %arg2[%c184] : memref<288xf32, #tpu.memory_space<smem>>
      %180 = vector.broadcast %179 : f32 to vector<14x128xf32>
      %181 = arith.mulf %180, %158 : vector<14x128xf32>
      %182 = arith.addf %146, %181 : vector<14x128xf32>
      %c220 = arith.constant 220 : index
      %183 = memref.load %arg2[%c220] : memref<288xf32, #tpu.memory_space<smem>>
      %184 = vector.broadcast %183 : f32 to vector<14x128xf32>
      %185 = arith.mulf %184, %158 : vector<14x128xf32>
      %186 = arith.addf %150, %185 : vector<14x128xf32>
      %c256 = arith.constant 256 : index
      %187 = memref.load %arg2[%c256] : memref<288xf32, #tpu.memory_space<smem>>
      %188 = vector.broadcast %187 : f32 to vector<14x128xf32>
      %189 = arith.mulf %188, %158 : vector<14x128xf32>
      %190 = arith.addf %154, %189 : vector<14x128xf32>
      %c1_i32_30 = arith.constant 1 : i32
      %191 = arith.addi %2, %c1_i32_30 : i32
      %c0_31 = arith.constant 0 : index
      %192 = arith.index_cast %191 : i32 to index
      %c2_32 = arith.constant 2 : index
      %c0_33 = arith.constant 0 : index
      %193 = vector.load %arg1[%c0_31, %192, %c2_32, %c0_33] : memref<4x16x16x128xf32, #tpu.memory_space<vmem>>, vector<1x1x14x128xf32>
      %194 = vector.shape_cast %193 : vector<1x1x14x128xf32> to vector<14x128xf32>
      %c5 = arith.constant 5 : index
      %195 = memref.load %arg2[%c5] : memref<288xf32, #tpu.memory_space<smem>>
      %196 = vector.broadcast %195 : f32 to vector<14x128xf32>
      %197 = arith.mulf %196, %194 : vector<14x128xf32>
      %198 = arith.addf %162, %197 : vector<14x128xf32>
      %c41 = arith.constant 41 : index
      %199 = memref.load %arg2[%c41] : memref<288xf32, #tpu.memory_space<smem>>
      %200 = vector.broadcast %199 : f32 to vector<14x128xf32>
      %201 = arith.mulf %200, %194 : vector<14x128xf32>
      %202 = arith.addf %166, %201 : vector<14x128xf32>
      %c77 = arith.constant 77 : index
      %203 = memref.load %arg2[%c77] : memref<288xf32, #tpu.memory_space<smem>>
      %204 = vector.broadcast %203 : f32 to vector<14x128xf32>
      %205 = arith.mulf %204, %194 : vector<14x128xf32>
      %206 = arith.addf %170, %205 : vector<14x128xf32>
      %c113 = arith.constant 113 : index
      %207 = memref.load %arg2[%c113] : memref<288xf32, #tpu.memory_space<smem>>
      %208 = vector.broadcast %207 : f32 to vector<14x128xf32>
      %209 = arith.mulf %208, %194 : vector<14x128xf32>
      %210 = arith.addf %174, %209 : vector<14x128xf32>
      %c149 = arith.constant 149 : index
      %211 = memref.load %arg2[%c149] : memref<288xf32, #tpu.memory_space<smem>>
      %212 = vector.broadcast %211 : f32 to vector<14x128xf32>
      %213 = arith.mulf %212, %194 : vector<14x128xf32>
      %214 = arith.addf %178, %213 : vector<14x128xf32>
      %c185 = arith.constant 185 : index
      %215 = memref.load %arg2[%c185] : memref<288xf32, #tpu.memory_space<smem>>
      %216 = vector.broadcast %215 : f32 to vector<14x128xf32>
      %217 = arith.mulf %216, %194 : vector<14x128xf32>
      %218 = arith.addf %182, %217 : vector<14x128xf32>
      %c221 = arith.constant 221 : index
      %219 = memref.load %arg2[%c221] : memref<288xf32, #tpu.memory_space<smem>>
      %220 = vector.broadcast %219 : f32 to vector<14x128xf32>
      %221 = arith.mulf %220, %194 : vector<14x128xf32>
      %222 = arith.addf %186, %221 : vector<14x128xf32>
      %c257 = arith.constant 257 : index
      %223 = memref.load %arg2[%c257] : memref<288xf32, #tpu.memory_space<smem>>
      %224 = vector.broadcast %223 : f32 to vector<14x128xf32>
      %225 = arith.mulf %224, %194 : vector<14x128xf32>
      %226 = arith.addf %190, %225 : vector<14x128xf32>
      %c2_i32 = arith.constant 2 : i32
      %227 = arith.addi %2, %c2_i32 : i32
      %c0_34 = arith.constant 0 : index
      %228 = arith.index_cast %227 : i32 to index
      %c0_35 = arith.constant 0 : index
      %c0_36 = arith.constant 0 : index
      %229 = vector.load %arg1[%c0_34, %228, %c0_35, %c0_36] : memref<4x16x16x128xf32, #tpu.memory_space<vmem>>, vector<1x1x14x128xf32>
      %230 = vector.shape_cast %229 : vector<1x1x14x128xf32> to vector<14x128xf32>
      %c6 = arith.constant 6 : index
      %231 = memref.load %arg2[%c6] : memref<288xf32, #tpu.memory_space<smem>>
      %232 = vector.broadcast %231 : f32 to vector<14x128xf32>
      %233 = arith.mulf %232, %230 : vector<14x128xf32>
      %234 = arith.addf %198, %233 : vector<14x128xf32>
      %c42 = arith.constant 42 : index
      %235 = memref.load %arg2[%c42] : memref<288xf32, #tpu.memory_space<smem>>
      %236 = vector.broadcast %235 : f32 to vector<14x128xf32>
      %237 = arith.mulf %236, %230 : vector<14x128xf32>
      %238 = arith.addf %202, %237 : vector<14x128xf32>
      %c78 = arith.constant 78 : index
      %239 = memref.load %arg2[%c78] : memref<288xf32, #tpu.memory_space<smem>>
      %240 = vector.broadcast %239 : f32 to vector<14x128xf32>
      %241 = arith.mulf %240, %230 : vector<14x128xf32>
      %242 = arith.addf %206, %241 : vector<14x128xf32>
      %c114 = arith.constant 114 : index
      %243 = memref.load %arg2[%c114] : memref<288xf32, #tpu.memory_space<smem>>
      %244 = vector.broadcast %243 : f32 to vector<14x128xf32>
      %245 = arith.mulf %244, %230 : vector<14x128xf32>
      %246 = arith.addf %210, %245 : vector<14x128xf32>
      %c150 = arith.constant 150 : index
      %247 = memref.load %arg2[%c150] : memref<288xf32, #tpu.memory_space<smem>>
      %248 = vector.broadcast %247 : f32 to vector<14x128xf32>
      %249 = arith.mulf %248, %230 : vector<14x128xf32>
      %250 = arith.addf %214, %249 : vector<14x128xf32>
      %c186 = arith.constant 186 : index
      %251 = memref.load %arg2[%c186] : memref<288xf32, #tpu.memory_space<smem>>
      %252 = vector.broadcast %251 : f32 to vector<14x128xf32>
      %253 = arith.mulf %252, %230 : vector<14x128xf32>
      %254 = arith.addf %218, %253 : vector<14x128xf32>
      %c222 = arith.constant 222 : index
      %255 = memref.load %arg2[%c222] : memref<288xf32, #tpu.memory_space<smem>>
      %256 = vector.broadcast %255 : f32 to vector<14x128xf32>
      %257 = arith.mulf %256, %230 : vector<14x128xf32>
      %258 = arith.addf %222, %257 : vector<14x128xf32>
      %c258 = arith.constant 258 : index
      %259 = memref.load %arg2[%c258] : memref<288xf32, #tpu.memory_space<smem>>
      %260 = vector.broadcast %259 : f32 to vector<14x128xf32>
      %261 = arith.mulf %260, %230 : vector<14x128xf32>
      %262 = arith.addf %226, %261 : vector<14x128xf32>
      %c2_i32_37 = arith.constant 2 : i32
      %263 = arith.addi %2, %c2_i32_37 : i32
      %c0_38 = arith.constant 0 : index
      %264 = arith.index_cast %263 : i32 to index
      %c1_39 = arith.constant 1 : index
      %c0_40 = arith.constant 0 : index
      %265 = vector.load %arg1[%c0_38, %264, %c1_39, %c0_40] : memref<4x16x16x128xf32, #tpu.memory_space<vmem>>, vector<1x1x14x128xf32>
      %266 = vector.shape_cast %265 : vector<1x1x14x128xf32> to vector<14x128xf32>
      %c7 = arith.constant 7 : index
      %267 = memref.load %arg2[%c7] : memref<288xf32, #tpu.memory_space<smem>>
      %268 = vector.broadcast %267 : f32 to vector<14x128xf32>
      %269 = arith.mulf %268, %266 : vector<14x128xf32>
      %270 = arith.addf %234, %269 : vector<14x128xf32>
      %c43 = arith.constant 43 : index
      %271 = memref.load %arg2[%c43] : memref<288xf32, #tpu.memory_space<smem>>
      %272 = vector.broadcast %271 : f32 to vector<14x128xf32>
      %273 = arith.mulf %272, %266 : vector<14x128xf32>
      %274 = arith.addf %238, %273 : vector<14x128xf32>
      %c79 = arith.constant 79 : index
      %275 = memref.load %arg2[%c79] : memref<288xf32, #tpu.memory_space<smem>>
      %276 = vector.broadcast %275 : f32 to vector<14x128xf32>
      %277 = arith.mulf %276, %266 : vector<14x128xf32>
      %278 = arith.addf %242, %277 : vector<14x128xf32>
      %c115 = arith.constant 115 : index
      %279 = memref.load %arg2[%c115] : memref<288xf32, #tpu.memory_space<smem>>
      %280 = vector.broadcast %279 : f32 to vector<14x128xf32>
      %281 = arith.mulf %280, %266 : vector<14x128xf32>
      %282 = arith.addf %246, %281 : vector<14x128xf32>
      %c151 = arith.constant 151 : index
      %283 = memref.load %arg2[%c151] : memref<288xf32, #tpu.memory_space<smem>>
      %284 = vector.broadcast %283 : f32 to vector<14x128xf32>
      %285 = arith.mulf %284, %266 : vector<14x128xf32>
      %286 = arith.addf %250, %285 : vector<14x128xf32>
      %c187 = arith.constant 187 : index
      %287 = memref.load %arg2[%c187] : memref<288xf32, #tpu.memory_space<smem>>
      %288 = vector.broadcast %287 : f32 to vector<14x128xf32>
      %289 = arith.mulf %288, %266 : vector<14x128xf32>
      %290 = arith.addf %254, %289 : vector<14x128xf32>
      %c223 = arith.constant 223 : index
      %291 = memref.load %arg2[%c223] : memref<288xf32, #tpu.memory_space<smem>>
      %292 = vector.broadcast %291 : f32 to vector<14x128xf32>
      %293 = arith.mulf %292, %266 : vector<14x128xf32>
      %294 = arith.addf %258, %293 : vector<14x128xf32>
      %c259 = arith.constant 259 : index
      %295 = memref.load %arg2[%c259] : memref<288xf32, #tpu.memory_space<smem>>
      %296 = vector.broadcast %295 : f32 to vector<14x128xf32>
      %297 = arith.mulf %296, %266 : vector<14x128xf32>
      %298 = arith.addf %262, %297 : vector<14x128xf32>
      %c2_i32_41 = arith.constant 2 : i32
      %299 = arith.addi %2, %c2_i32_41 : i32
      %c0_42 = arith.constant 0 : index
      %300 = arith.index_cast %299 : i32 to index
      %c2_43 = arith.constant 2 : index
      %c0_44 = arith.constant 0 : index
      %301 = vector.load %arg1[%c0_42, %300, %c2_43, %c0_44] : memref<4x16x16x128xf32, #tpu.memory_space<vmem>>, vector<1x1x14x128xf32>
      %302 = vector.shape_cast %301 : vector<1x1x14x128xf32> to vector<14x128xf32>
      %c8 = arith.constant 8 : index
      %303 = memref.load %arg2[%c8] : memref<288xf32, #tpu.memory_space<smem>>
      %304 = vector.broadcast %303 : f32 to vector<14x128xf32>
      %305 = arith.mulf %304, %302 : vector<14x128xf32>
      %306 = arith.addf %270, %305 : vector<14x128xf32>
      %c44 = arith.constant 44 : index
      %307 = memref.load %arg2[%c44] : memref<288xf32, #tpu.memory_space<smem>>
      %308 = vector.broadcast %307 : f32 to vector<14x128xf32>
      %309 = arith.mulf %308, %302 : vector<14x128xf32>
      %310 = arith.addf %274, %309 : vector<14x128xf32>
      %c80 = arith.constant 80 : index
      %311 = memref.load %arg2[%c80] : memref<288xf32, #tpu.memory_space<smem>>
      %312 = vector.broadcast %311 : f32 to vector<14x128xf32>
      %313 = arith.mulf %312, %302 : vector<14x128xf32>
      %314 = arith.addf %278, %313 : vector<14x128xf32>
      %c116 = arith.constant 116 : index
      %315 = memref.load %arg2[%c116] : memref<288xf32, #tpu.memory_space<smem>>
      %316 = vector.broadcast %315 : f32 to vector<14x128xf32>
      %317 = arith.mulf %316, %302 : vector<14x128xf32>
      %318 = arith.addf %282, %317 : vector<14x128xf32>
      %c152 = arith.constant 152 : index
      %319 = memref.load %arg2[%c152] : memref<288xf32, #tpu.memory_space<smem>>
      %320 = vector.broadcast %319 : f32 to vector<14x128xf32>
      %321 = arith.mulf %320, %302 : vector<14x128xf32>
      %322 = arith.addf %286, %321 : vector<14x128xf32>
      %c188 = arith.constant 188 : index
      %323 = memref.load %arg2[%c188] : memref<288xf32, #tpu.memory_space<smem>>
      %324 = vector.broadcast %323 : f32 to vector<14x128xf32>
      %325 = arith.mulf %324, %302 : vector<14x128xf32>
      %326 = arith.addf %290, %325 : vector<14x128xf32>
      %c224 = arith.constant 224 : index
      %327 = memref.load %arg2[%c224] : memref<288xf32, #tpu.memory_space<smem>>
      %328 = vector.broadcast %327 : f32 to vector<14x128xf32>
      %329 = arith.mulf %328, %302 : vector<14x128xf32>
      %330 = arith.addf %294, %329 : vector<14x128xf32>
      %c260 = arith.constant 260 : index
      %331 = memref.load %arg2[%c260] : memref<288xf32, #tpu.memory_space<smem>>
      %332 = vector.broadcast %331 : f32 to vector<14x128xf32>
      %333 = arith.mulf %332, %302 : vector<14x128xf32>
      %334 = arith.addf %298, %333 : vector<14x128xf32>
      %c0_i32_45 = arith.constant 0 : i32
      %335 = arith.addi %2, %c0_i32_45 : i32
      %c1_46 = arith.constant 1 : index
      %336 = arith.index_cast %335 : i32 to index
      %c0_47 = arith.constant 0 : index
      %c0_48 = arith.constant 0 : index
      %337 = vector.load %arg1[%c1_46, %336, %c0_47, %c0_48] : memref<4x16x16x128xf32, #tpu.memory_space<vmem>>, vector<1x1x14x128xf32>
      %338 = vector.shape_cast %337 : vector<1x1x14x128xf32> to vector<14x128xf32>
      %c9 = arith.constant 9 : index
      %339 = memref.load %arg2[%c9] : memref<288xf32, #tpu.memory_space<smem>>
      %340 = vector.broadcast %339 : f32 to vector<14x128xf32>
      %341 = arith.mulf %340, %338 : vector<14x128xf32>
      %342 = arith.addf %306, %341 : vector<14x128xf32>
      %c45 = arith.constant 45 : index
      %343 = memref.load %arg2[%c45] : memref<288xf32, #tpu.memory_space<smem>>
      %344 = vector.broadcast %343 : f32 to vector<14x128xf32>
      %345 = arith.mulf %344, %338 : vector<14x128xf32>
      %346 = arith.addf %310, %345 : vector<14x128xf32>
      %c81 = arith.constant 81 : index
      %347 = memref.load %arg2[%c81] : memref<288xf32, #tpu.memory_space<smem>>
      %348 = vector.broadcast %347 : f32 to vector<14x128xf32>
      %349 = arith.mulf %348, %338 : vector<14x128xf32>
      %350 = arith.addf %314, %349 : vector<14x128xf32>
      %c117 = arith.constant 117 : index
      %351 = memref.load %arg2[%c117] : memref<288xf32, #tpu.memory_space<smem>>
      %352 = vector.broadcast %351 : f32 to vector<14x128xf32>
      %353 = arith.mulf %352, %338 : vector<14x128xf32>
      %354 = arith.addf %318, %353 : vector<14x128xf32>
      %c153 = arith.constant 153 : index
      %355 = memref.load %arg2[%c153] : memref<288xf32, #tpu.memory_space<smem>>
      %356 = vector.broadcast %355 : f32 to vector<14x128xf32>
      %357 = arith.mulf %356, %338 : vector<14x128xf32>
      %358 = arith.addf %322, %357 : vector<14x128xf32>
      %c189 = arith.constant 189 : index
      %359 = memref.load %arg2[%c189] : memref<288xf32, #tpu.memory_space<smem>>
      %360 = vector.broadcast %359 : f32 to vector<14x128xf32>
      %361 = arith.mulf %360, %338 : vector<14x128xf32>
      %362 = arith.addf %326, %361 : vector<14x128xf32>
      %c225 = arith.constant 225 : index
      %363 = memref.load %arg2[%c225] : memref<288xf32, #tpu.memory_space<smem>>
      %364 = vector.broadcast %363 : f32 to vector<14x128xf32>
      %365 = arith.mulf %364, %338 : vector<14x128xf32>
      %366 = arith.addf %330, %365 : vector<14x128xf32>
      %c261 = arith.constant 261 : index
      %367 = memref.load %arg2[%c261] : memref<288xf32, #tpu.memory_space<smem>>
      %368 = vector.broadcast %367 : f32 to vector<14x128xf32>
      %369 = arith.mulf %368, %338 : vector<14x128xf32>
      %370 = arith.addf %334, %369 : vector<14x128xf32>
      %c0_i32_49 = arith.constant 0 : i32
      %371 = arith.addi %2, %c0_i32_49 : i32
      %c1_50 = arith.constant 1 : index
      %372 = arith.index_cast %371 : i32 to index
      %c1_51 = arith.constant 1 : index
      %c0_52 = arith.constant 0 : index
      %373 = vector.load %arg1[%c1_50, %372, %c1_51, %c0_52] : memref<4x16x16x128xf32, #tpu.memory_space<vmem>>, vector<1x1x14x128xf32>
      %374 = vector.shape_cast %373 : vector<1x1x14x128xf32> to vector<14x128xf32>
      %c10 = arith.constant 10 : index
      %375 = memref.load %arg2[%c10] : memref<288xf32, #tpu.memory_space<smem>>
      %376 = vector.broadcast %375 : f32 to vector<14x128xf32>
      %377 = arith.mulf %376, %374 : vector<14x128xf32>
      %378 = arith.addf %342, %377 : vector<14x128xf32>
      %c46 = arith.constant 46 : index
      %379 = memref.load %arg2[%c46] : memref<288xf32, #tpu.memory_space<smem>>
      %380 = vector.broadcast %379 : f32 to vector<14x128xf32>
      %381 = arith.mulf %380, %374 : vector<14x128xf32>
      %382 = arith.addf %346, %381 : vector<14x128xf32>
      %c82 = arith.constant 82 : index
      %383 = memref.load %arg2[%c82] : memref<288xf32, #tpu.memory_space<smem>>
      %384 = vector.broadcast %383 : f32 to vector<14x128xf32>
      %385 = arith.mulf %384, %374 : vector<14x128xf32>
      %386 = arith.addf %350, %385 : vector<14x128xf32>
      %c118 = arith.constant 118 : index
      %387 = memref.load %arg2[%c118] : memref<288xf32, #tpu.memory_space<smem>>
      %388 = vector.broadcast %387 : f32 to vector<14x128xf32>
      %389 = arith.mulf %388, %374 : vector<14x128xf32>
      %390 = arith.addf %354, %389 : vector<14x128xf32>
      %c154 = arith.constant 154 : index
      %391 = memref.load %arg2[%c154] : memref<288xf32, #tpu.memory_space<smem>>
      %392 = vector.broadcast %391 : f32 to vector<14x128xf32>
      %393 = arith.mulf %392, %374 : vector<14x128xf32>
      %394 = arith.addf %358, %393 : vector<14x128xf32>
      %c190 = arith.constant 190 : index
      %395 = memref.load %arg2[%c190] : memref<288xf32, #tpu.memory_space<smem>>
      %396 = vector.broadcast %395 : f32 to vector<14x128xf32>
      %397 = arith.mulf %396, %374 : vector<14x128xf32>
      %398 = arith.addf %362, %397 : vector<14x128xf32>
      %c226 = arith.constant 226 : index
      %399 = memref.load %arg2[%c226] : memref<288xf32, #tpu.memory_space<smem>>
      %400 = vector.broadcast %399 : f32 to vector<14x128xf32>
      %401 = arith.mulf %400, %374 : vector<14x128xf32>
      %402 = arith.addf %366, %401 : vector<14x128xf32>
      %c262 = arith.constant 262 : index
      %403 = memref.load %arg2[%c262] : memref<288xf32, #tpu.memory_space<smem>>
      %404 = vector.broadcast %403 : f32 to vector<14x128xf32>
      %405 = arith.mulf %404, %374 : vector<14x128xf32>
      %406 = arith.addf %370, %405 : vector<14x128xf32>
      %c0_i32_53 = arith.constant 0 : i32
      %407 = arith.addi %2, %c0_i32_53 : i32
      %c1_54 = arith.constant 1 : index
      %408 = arith.index_cast %407 : i32 to index
      %c2_55 = arith.constant 2 : index
      %c0_56 = arith.constant 0 : index
      %409 = vector.load %arg1[%c1_54, %408, %c2_55, %c0_56] : memref<4x16x16x128xf32, #tpu.memory_space<vmem>>, vector<1x1x14x128xf32>
      %410 = vector.shape_cast %409 : vector<1x1x14x128xf32> to vector<14x128xf32>
      %c11 = arith.constant 11 : index
      %411 = memref.load %arg2[%c11] : memref<288xf32, #tpu.memory_space<smem>>
      %412 = vector.broadcast %411 : f32 to vector<14x128xf32>
      %413 = arith.mulf %412, %410 : vector<14x128xf32>
      %414 = arith.addf %378, %413 : vector<14x128xf32>
      %c47 = arith.constant 47 : index
      %415 = memref.load %arg2[%c47] : memref<288xf32, #tpu.memory_space<smem>>
      %416 = vector.broadcast %415 : f32 to vector<14x128xf32>
      %417 = arith.mulf %416, %410 : vector<14x128xf32>
      %418 = arith.addf %382, %417 : vector<14x128xf32>
      %c83 = arith.constant 83 : index
      %419 = memref.load %arg2[%c83] : memref<288xf32, #tpu.memory_space<smem>>
      %420 = vector.broadcast %419 : f32 to vector<14x128xf32>
      %421 = arith.mulf %420, %410 : vector<14x128xf32>
      %422 = arith.addf %386, %421 : vector<14x128xf32>
      %c119 = arith.constant 119 : index
      %423 = memref.load %arg2[%c119] : memref<288xf32, #tpu.memory_space<smem>>
      %424 = vector.broadcast %423 : f32 to vector<14x128xf32>
      %425 = arith.mulf %424, %410 : vector<14x128xf32>
      %426 = arith.addf %390, %425 : vector<14x128xf32>
      %c155 = arith.constant 155 : index
      %427 = memref.load %arg2[%c155] : memref<288xf32, #tpu.memory_space<smem>>
      %428 = vector.broadcast %427 : f32 to vector<14x128xf32>
      %429 = arith.mulf %428, %410 : vector<14x128xf32>
      %430 = arith.addf %394, %429 : vector<14x128xf32>
      %c191 = arith.constant 191 : index
      %431 = memref.load %arg2[%c191] : memref<288xf32, #tpu.memory_space<smem>>
      %432 = vector.broadcast %431 : f32 to vector<14x128xf32>
      %433 = arith.mulf %432, %410 : vector<14x128xf32>
      %434 = arith.addf %398, %433 : vector<14x128xf32>
      %c227 = arith.constant 227 : index
      %435 = memref.load %arg2[%c227] : memref<288xf32, #tpu.memory_space<smem>>
      %436 = vector.broadcast %435 : f32 to vector<14x128xf32>
      %437 = arith.mulf %436, %410 : vector<14x128xf32>
      %438 = arith.addf %402, %437 : vector<14x128xf32>
      %c263 = arith.constant 263 : index
      %439 = memref.load %arg2[%c263] : memref<288xf32, #tpu.memory_space<smem>>
      %440 = vector.broadcast %439 : f32 to vector<14x128xf32>
      %441 = arith.mulf %440, %410 : vector<14x128xf32>
      %442 = arith.addf %406, %441 : vector<14x128xf32>
      %c1_i32_57 = arith.constant 1 : i32
      %443 = arith.addi %2, %c1_i32_57 : i32
      %c1_58 = arith.constant 1 : index
      %444 = arith.index_cast %443 : i32 to index
      %c0_59 = arith.constant 0 : index
      %c0_60 = arith.constant 0 : index
      %445 = vector.load %arg1[%c1_58, %444, %c0_59, %c0_60] : memref<4x16x16x128xf32, #tpu.memory_space<vmem>>, vector<1x1x14x128xf32>
      %446 = vector.shape_cast %445 : vector<1x1x14x128xf32> to vector<14x128xf32>
      %c12 = arith.constant 12 : index
      %447 = memref.load %arg2[%c12] : memref<288xf32, #tpu.memory_space<smem>>
      %448 = vector.broadcast %447 : f32 to vector<14x128xf32>
      %449 = arith.mulf %448, %446 : vector<14x128xf32>
      %450 = arith.addf %414, %449 : vector<14x128xf32>
      %c48 = arith.constant 48 : index
      %451 = memref.load %arg2[%c48] : memref<288xf32, #tpu.memory_space<smem>>
      %452 = vector.broadcast %451 : f32 to vector<14x128xf32>
      %453 = arith.mulf %452, %446 : vector<14x128xf32>
      %454 = arith.addf %418, %453 : vector<14x128xf32>
      %c84 = arith.constant 84 : index
      %455 = memref.load %arg2[%c84] : memref<288xf32, #tpu.memory_space<smem>>
      %456 = vector.broadcast %455 : f32 to vector<14x128xf32>
      %457 = arith.mulf %456, %446 : vector<14x128xf32>
      %458 = arith.addf %422, %457 : vector<14x128xf32>
      %c120 = arith.constant 120 : index
      %459 = memref.load %arg2[%c120] : memref<288xf32, #tpu.memory_space<smem>>
      %460 = vector.broadcast %459 : f32 to vector<14x128xf32>
      %461 = arith.mulf %460, %446 : vector<14x128xf32>
      %462 = arith.addf %426, %461 : vector<14x128xf32>
      %c156 = arith.constant 156 : index
      %463 = memref.load %arg2[%c156] : memref<288xf32, #tpu.memory_space<smem>>
      %464 = vector.broadcast %463 : f32 to vector<14x128xf32>
      %465 = arith.mulf %464, %446 : vector<14x128xf32>
      %466 = arith.addf %430, %465 : vector<14x128xf32>
      %c192 = arith.constant 192 : index
      %467 = memref.load %arg2[%c192] : memref<288xf32, #tpu.memory_space<smem>>
      %468 = vector.broadcast %467 : f32 to vector<14x128xf32>
      %469 = arith.mulf %468, %446 : vector<14x128xf32>
      %470 = arith.addf %434, %469 : vector<14x128xf32>
      %c228 = arith.constant 228 : index
      %471 = memref.load %arg2[%c228] : memref<288xf32, #tpu.memory_space<smem>>
      %472 = vector.broadcast %471 : f32 to vector<14x128xf32>
      %473 = arith.mulf %472, %446 : vector<14x128xf32>
      %474 = arith.addf %438, %473 : vector<14x128xf32>
      %c264 = arith.constant 264 : index
      %475 = memref.load %arg2[%c264] : memref<288xf32, #tpu.memory_space<smem>>
      %476 = vector.broadcast %475 : f32 to vector<14x128xf32>
      %477 = arith.mulf %476, %446 : vector<14x128xf32>
      %478 = arith.addf %442, %477 : vector<14x128xf32>
      %c1_i32_61 = arith.constant 1 : i32
      %479 = arith.addi %2, %c1_i32_61 : i32
      %c1_62 = arith.constant 1 : index
      %480 = arith.index_cast %479 : i32 to index
      %c1_63 = arith.constant 1 : index
      %c0_64 = arith.constant 0 : index
      %481 = vector.load %arg1[%c1_62, %480, %c1_63, %c0_64] : memref<4x16x16x128xf32, #tpu.memory_space<vmem>>, vector<1x1x14x128xf32>
      %482 = vector.shape_cast %481 : vector<1x1x14x128xf32> to vector<14x128xf32>
      %c13 = arith.constant 13 : index
      %483 = memref.load %arg2[%c13] : memref<288xf32, #tpu.memory_space<smem>>
      %484 = vector.broadcast %483 : f32 to vector<14x128xf32>
      %485 = arith.mulf %484, %482 : vector<14x128xf32>
      %486 = arith.addf %450, %485 : vector<14x128xf32>
      %c49 = arith.constant 49 : index
      %487 = memref.load %arg2[%c49] : memref<288xf32, #tpu.memory_space<smem>>
      %488 = vector.broadcast %487 : f32 to vector<14x128xf32>
      %489 = arith.mulf %488, %482 : vector<14x128xf32>
      %490 = arith.addf %454, %489 : vector<14x128xf32>
      %c85 = arith.constant 85 : index
      %491 = memref.load %arg2[%c85] : memref<288xf32, #tpu.memory_space<smem>>
      %492 = vector.broadcast %491 : f32 to vector<14x128xf32>
      %493 = arith.mulf %492, %482 : vector<14x128xf32>
      %494 = arith.addf %458, %493 : vector<14x128xf32>
      %c121 = arith.constant 121 : index
      %495 = memref.load %arg2[%c121] : memref<288xf32, #tpu.memory_space<smem>>
      %496 = vector.broadcast %495 : f32 to vector<14x128xf32>
      %497 = arith.mulf %496, %482 : vector<14x128xf32>
      %498 = arith.addf %462, %497 : vector<14x128xf32>
      %c157 = arith.constant 157 : index
      %499 = memref.load %arg2[%c157] : memref<288xf32, #tpu.memory_space<smem>>
      %500 = vector.broadcast %499 : f32 to vector<14x128xf32>
      %501 = arith.mulf %500, %482 : vector<14x128xf32>
      %502 = arith.addf %466, %501 : vector<14x128xf32>
      %c193 = arith.constant 193 : index
      %503 = memref.load %arg2[%c193] : memref<288xf32, #tpu.memory_space<smem>>
      %504 = vector.broadcast %503 : f32 to vector<14x128xf32>
      %505 = arith.mulf %504, %482 : vector<14x128xf32>
      %506 = arith.addf %470, %505 : vector<14x128xf32>
      %c229 = arith.constant 229 : index
      %507 = memref.load %arg2[%c229] : memref<288xf32, #tpu.memory_space<smem>>
      %508 = vector.broadcast %507 : f32 to vector<14x128xf32>
      %509 = arith.mulf %508, %482 : vector<14x128xf32>
      %510 = arith.addf %474, %509 : vector<14x128xf32>
      %c265 = arith.constant 265 : index
      %511 = memref.load %arg2[%c265] : memref<288xf32, #tpu.memory_space<smem>>
      %512 = vector.broadcast %511 : f32 to vector<14x128xf32>
      %513 = arith.mulf %512, %482 : vector<14x128xf32>
      %514 = arith.addf %478, %513 : vector<14x128xf32>
      %c1_i32_65 = arith.constant 1 : i32
      %515 = arith.addi %2, %c1_i32_65 : i32
      %c1_66 = arith.constant 1 : index
      %516 = arith.index_cast %515 : i32 to index
      %c2_67 = arith.constant 2 : index
      %c0_68 = arith.constant 0 : index
      %517 = vector.load %arg1[%c1_66, %516, %c2_67, %c0_68] : memref<4x16x16x128xf32, #tpu.memory_space<vmem>>, vector<1x1x14x128xf32>
      %518 = vector.shape_cast %517 : vector<1x1x14x128xf32> to vector<14x128xf32>
      %c14 = arith.constant 14 : index
      %519 = memref.load %arg2[%c14] : memref<288xf32, #tpu.memory_space<smem>>
      %520 = vector.broadcast %519 : f32 to vector<14x128xf32>
      %521 = arith.mulf %520, %518 : vector<14x128xf32>
      %522 = arith.addf %486, %521 : vector<14x128xf32>
      %c50 = arith.constant 50 : index
      %523 = memref.load %arg2[%c50] : memref<288xf32, #tpu.memory_space<smem>>
      %524 = vector.broadcast %523 : f32 to vector<14x128xf32>
      %525 = arith.mulf %524, %518 : vector<14x128xf32>
      %526 = arith.addf %490, %525 : vector<14x128xf32>
      %c86 = arith.constant 86 : index
      %527 = memref.load %arg2[%c86] : memref<288xf32, #tpu.memory_space<smem>>
      %528 = vector.broadcast %527 : f32 to vector<14x128xf32>
      %529 = arith.mulf %528, %518 : vector<14x128xf32>
      %530 = arith.addf %494, %529 : vector<14x128xf32>
      %c122 = arith.constant 122 : index
      %531 = memref.load %arg2[%c122] : memref<288xf32, #tpu.memory_space<smem>>
      %532 = vector.broadcast %531 : f32 to vector<14x128xf32>
      %533 = arith.mulf %532, %518 : vector<14x128xf32>
      %534 = arith.addf %498, %533 : vector<14x128xf32>
      %c158 = arith.constant 158 : index
      %535 = memref.load %arg2[%c158] : memref<288xf32, #tpu.memory_space<smem>>
      %536 = vector.broadcast %535 : f32 to vector<14x128xf32>
      %537 = arith.mulf %536, %518 : vector<14x128xf32>
      %538 = arith.addf %502, %537 : vector<14x128xf32>
      %c194 = arith.constant 194 : index
      %539 = memref.load %arg2[%c194] : memref<288xf32, #tpu.memory_space<smem>>
      %540 = vector.broadcast %539 : f32 to vector<14x128xf32>
      %541 = arith.mulf %540, %518 : vector<14x128xf32>
      %542 = arith.addf %506, %541 : vector<14x128xf32>
      %c230 = arith.constant 230 : index
      %543 = memref.load %arg2[%c230] : memref<288xf32, #tpu.memory_space<smem>>
      %544 = vector.broadcast %543 : f32 to vector<14x128xf32>
      %545 = arith.mulf %544, %518 : vector<14x128xf32>
      %546 = arith.addf %510, %545 : vector<14x128xf32>
      %c266 = arith.constant 266 : index
      %547 = memref.load %arg2[%c266] : memref<288xf32, #tpu.memory_space<smem>>
      %548 = vector.broadcast %547 : f32 to vector<14x128xf32>
      %549 = arith.mulf %548, %518 : vector<14x128xf32>
      %550 = arith.addf %514, %549 : vector<14x128xf32>
      %c2_i32_69 = arith.constant 2 : i32
      %551 = arith.addi %2, %c2_i32_69 : i32
      %c1_70 = arith.constant 1 : index
      %552 = arith.index_cast %551 : i32 to index
      %c0_71 = arith.constant 0 : index
      %c0_72 = arith.constant 0 : index
      %553 = vector.load %arg1[%c1_70, %552, %c0_71, %c0_72] : memref<4x16x16x128xf32, #tpu.memory_space<vmem>>, vector<1x1x14x128xf32>
      %554 = vector.shape_cast %553 : vector<1x1x14x128xf32> to vector<14x128xf32>
      %c15 = arith.constant 15 : index
      %555 = memref.load %arg2[%c15] : memref<288xf32, #tpu.memory_space<smem>>
      %556 = vector.broadcast %555 : f32 to vector<14x128xf32>
      %557 = arith.mulf %556, %554 : vector<14x128xf32>
      %558 = arith.addf %522, %557 : vector<14x128xf32>
      %c51 = arith.constant 51 : index
      %559 = memref.load %arg2[%c51] : memref<288xf32, #tpu.memory_space<smem>>
      %560 = vector.broadcast %559 : f32 to vector<14x128xf32>
      %561 = arith.mulf %560, %554 : vector<14x128xf32>
      %562 = arith.addf %526, %561 : vector<14x128xf32>
      %c87 = arith.constant 87 : index
      %563 = memref.load %arg2[%c87] : memref<288xf32, #tpu.memory_space<smem>>
      %564 = vector.broadcast %563 : f32 to vector<14x128xf32>
      %565 = arith.mulf %564, %554 : vector<14x128xf32>
      %566 = arith.addf %530, %565 : vector<14x128xf32>
      %c123 = arith.constant 123 : index
      %567 = memref.load %arg2[%c123] : memref<288xf32, #tpu.memory_space<smem>>
      %568 = vector.broadcast %567 : f32 to vector<14x128xf32>
      %569 = arith.mulf %568, %554 : vector<14x128xf32>
      %570 = arith.addf %534, %569 : vector<14x128xf32>
      %c159 = arith.constant 159 : index
      %571 = memref.load %arg2[%c159] : memref<288xf32, #tpu.memory_space<smem>>
      %572 = vector.broadcast %571 : f32 to vector<14x128xf32>
      %573 = arith.mulf %572, %554 : vector<14x128xf32>
      %574 = arith.addf %538, %573 : vector<14x128xf32>
      %c195 = arith.constant 195 : index
      %575 = memref.load %arg2[%c195] : memref<288xf32, #tpu.memory_space<smem>>
      %576 = vector.broadcast %575 : f32 to vector<14x128xf32>
      %577 = arith.mulf %576, %554 : vector<14x128xf32>
      %578 = arith.addf %542, %577 : vector<14x128xf32>
      %c231 = arith.constant 231 : index
      %579 = memref.load %arg2[%c231] : memref<288xf32, #tpu.memory_space<smem>>
      %580 = vector.broadcast %579 : f32 to vector<14x128xf32>
      %581 = arith.mulf %580, %554 : vector<14x128xf32>
      %582 = arith.addf %546, %581 : vector<14x128xf32>
      %c267 = arith.constant 267 : index
      %583 = memref.load %arg2[%c267] : memref<288xf32, #tpu.memory_space<smem>>
      %584 = vector.broadcast %583 : f32 to vector<14x128xf32>
      %585 = arith.mulf %584, %554 : vector<14x128xf32>
      %586 = arith.addf %550, %585 : vector<14x128xf32>
      %c2_i32_73 = arith.constant 2 : i32
      %587 = arith.addi %2, %c2_i32_73 : i32
      %c1_74 = arith.constant 1 : index
      %588 = arith.index_cast %587 : i32 to index
      %c1_75 = arith.constant 1 : index
      %c0_76 = arith.constant 0 : index
      %589 = vector.load %arg1[%c1_74, %588, %c1_75, %c0_76] : memref<4x16x16x128xf32, #tpu.memory_space<vmem>>, vector<1x1x14x128xf32>
      %590 = vector.shape_cast %589 : vector<1x1x14x128xf32> to vector<14x128xf32>
      %c16 = arith.constant 16 : index
      %591 = memref.load %arg2[%c16] : memref<288xf32, #tpu.memory_space<smem>>
      %592 = vector.broadcast %591 : f32 to vector<14x128xf32>
      %593 = arith.mulf %592, %590 : vector<14x128xf32>
      %594 = arith.addf %558, %593 : vector<14x128xf32>
      %c52 = arith.constant 52 : index
      %595 = memref.load %arg2[%c52] : memref<288xf32, #tpu.memory_space<smem>>
      %596 = vector.broadcast %595 : f32 to vector<14x128xf32>
      %597 = arith.mulf %596, %590 : vector<14x128xf32>
      %598 = arith.addf %562, %597 : vector<14x128xf32>
      %c88 = arith.constant 88 : index
      %599 = memref.load %arg2[%c88] : memref<288xf32, #tpu.memory_space<smem>>
      %600 = vector.broadcast %599 : f32 to vector<14x128xf32>
      %601 = arith.mulf %600, %590 : vector<14x128xf32>
      %602 = arith.addf %566, %601 : vector<14x128xf32>
      %c124 = arith.constant 124 : index
      %603 = memref.load %arg2[%c124] : memref<288xf32, #tpu.memory_space<smem>>
      %604 = vector.broadcast %603 : f32 to vector<14x128xf32>
      %605 = arith.mulf %604, %590 : vector<14x128xf32>
      %606 = arith.addf %570, %605 : vector<14x128xf32>
      %c160 = arith.constant 160 : index
      %607 = memref.load %arg2[%c160] : memref<288xf32, #tpu.memory_space<smem>>
      %608 = vector.broadcast %607 : f32 to vector<14x128xf32>
      %609 = arith.mulf %608, %590 : vector<14x128xf32>
      %610 = arith.addf %574, %609 : vector<14x128xf32>
      %c196 = arith.constant 196 : index
      %611 = memref.load %arg2[%c196] : memref<288xf32, #tpu.memory_space<smem>>
      %612 = vector.broadcast %611 : f32 to vector<14x128xf32>
      %613 = arith.mulf %612, %590 : vector<14x128xf32>
      %614 = arith.addf %578, %613 : vector<14x128xf32>
      %c232 = arith.constant 232 : index
      %615 = memref.load %arg2[%c232] : memref<288xf32, #tpu.memory_space<smem>>
      %616 = vector.broadcast %615 : f32 to vector<14x128xf32>
      %617 = arith.mulf %616, %590 : vector<14x128xf32>
      %618 = arith.addf %582, %617 : vector<14x128xf32>
      %c268 = arith.constant 268 : index
      %619 = memref.load %arg2[%c268] : memref<288xf32, #tpu.memory_space<smem>>
      %620 = vector.broadcast %619 : f32 to vector<14x128xf32>
      %621 = arith.mulf %620, %590 : vector<14x128xf32>
      %622 = arith.addf %586, %621 : vector<14x128xf32>
      %c2_i32_77 = arith.constant 2 : i32
      %623 = arith.addi %2, %c2_i32_77 : i32
      %c1_78 = arith.constant 1 : index
      %624 = arith.index_cast %623 : i32 to index
      %c2_79 = arith.constant 2 : index
      %c0_80 = arith.constant 0 : index
      %625 = vector.load %arg1[%c1_78, %624, %c2_79, %c0_80] : memref<4x16x16x128xf32, #tpu.memory_space<vmem>>, vector<1x1x14x128xf32>
      %626 = vector.shape_cast %625 : vector<1x1x14x128xf32> to vector<14x128xf32>
      %c17 = arith.constant 17 : index
      %627 = memref.load %arg2[%c17] : memref<288xf32, #tpu.memory_space<smem>>
      %628 = vector.broadcast %627 : f32 to vector<14x128xf32>
      %629 = arith.mulf %628, %626 : vector<14x128xf32>
      %630 = arith.addf %594, %629 : vector<14x128xf32>
      %c53 = arith.constant 53 : index
      %631 = memref.load %arg2[%c53] : memref<288xf32, #tpu.memory_space<smem>>
      %632 = vector.broadcast %631 : f32 to vector<14x128xf32>
      %633 = arith.mulf %632, %626 : vector<14x128xf32>
      %634 = arith.addf %598, %633 : vector<14x128xf32>
      %c89 = arith.constant 89 : index
      %635 = memref.load %arg2[%c89] : memref<288xf32, #tpu.memory_space<smem>>
      %636 = vector.broadcast %635 : f32 to vector<14x128xf32>
      %637 = arith.mulf %636, %626 : vector<14x128xf32>
      %638 = arith.addf %602, %637 : vector<14x128xf32>
      %c125 = arith.constant 125 : index
      %639 = memref.load %arg2[%c125] : memref<288xf32, #tpu.memory_space<smem>>
      %640 = vector.broadcast %639 : f32 to vector<14x128xf32>
      %641 = arith.mulf %640, %626 : vector<14x128xf32>
      %642 = arith.addf %606, %641 : vector<14x128xf32>
      %c161 = arith.constant 161 : index
      %643 = memref.load %arg2[%c161] : memref<288xf32, #tpu.memory_space<smem>>
      %644 = vector.broadcast %643 : f32 to vector<14x128xf32>
      %645 = arith.mulf %644, %626 : vector<14x128xf32>
      %646 = arith.addf %610, %645 : vector<14x128xf32>
      %c197 = arith.constant 197 : index
      %647 = memref.load %arg2[%c197] : memref<288xf32, #tpu.memory_space<smem>>
      %648 = vector.broadcast %647 : f32 to vector<14x128xf32>
      %649 = arith.mulf %648, %626 : vector<14x128xf32>
      %650 = arith.addf %614, %649 : vector<14x128xf32>
      %c233 = arith.constant 233 : index
      %651 = memref.load %arg2[%c233] : memref<288xf32, #tpu.memory_space<smem>>
      %652 = vector.broadcast %651 : f32 to vector<14x128xf32>
      %653 = arith.mulf %652, %626 : vector<14x128xf32>
      %654 = arith.addf %618, %653 : vector<14x128xf32>
      %c269 = arith.constant 269 : index
      %655 = memref.load %arg2[%c269] : memref<288xf32, #tpu.memory_space<smem>>
      %656 = vector.broadcast %655 : f32 to vector<14x128xf32>
      %657 = arith.mulf %656, %626 : vector<14x128xf32>
      %658 = arith.addf %622, %657 : vector<14x128xf32>
      %c0_i32_81 = arith.constant 0 : i32
      %659 = arith.addi %2, %c0_i32_81 : i32
      %c2_82 = arith.constant 2 : index
      %660 = arith.index_cast %659 : i32 to index
      %c0_83 = arith.constant 0 : index
      %c0_84 = arith.constant 0 : index
      %661 = vector.load %arg1[%c2_82, %660, %c0_83, %c0_84] : memref<4x16x16x128xf32, #tpu.memory_space<vmem>>, vector<1x1x14x128xf32>
      %662 = vector.shape_cast %661 : vector<1x1x14x128xf32> to vector<14x128xf32>
      %c18 = arith.constant 18 : index
      %663 = memref.load %arg2[%c18] : memref<288xf32, #tpu.memory_space<smem>>
      %664 = vector.broadcast %663 : f32 to vector<14x128xf32>
      %665 = arith.mulf %664, %662 : vector<14x128xf32>
      %666 = arith.addf %630, %665 : vector<14x128xf32>
      %c54 = arith.constant 54 : index
      %667 = memref.load %arg2[%c54] : memref<288xf32, #tpu.memory_space<smem>>
      %668 = vector.broadcast %667 : f32 to vector<14x128xf32>
      %669 = arith.mulf %668, %662 : vector<14x128xf32>
      %670 = arith.addf %634, %669 : vector<14x128xf32>
      %c90 = arith.constant 90 : index
      %671 = memref.load %arg2[%c90] : memref<288xf32, #tpu.memory_space<smem>>
      %672 = vector.broadcast %671 : f32 to vector<14x128xf32>
      %673 = arith.mulf %672, %662 : vector<14x128xf32>
      %674 = arith.addf %638, %673 : vector<14x128xf32>
      %c126 = arith.constant 126 : index
      %675 = memref.load %arg2[%c126] : memref<288xf32, #tpu.memory_space<smem>>
      %676 = vector.broadcast %675 : f32 to vector<14x128xf32>
      %677 = arith.mulf %676, %662 : vector<14x128xf32>
      %678 = arith.addf %642, %677 : vector<14x128xf32>
      %c162 = arith.constant 162 : index
      %679 = memref.load %arg2[%c162] : memref<288xf32, #tpu.memory_space<smem>>
      %680 = vector.broadcast %679 : f32 to vector<14x128xf32>
      %681 = arith.mulf %680, %662 : vector<14x128xf32>
      %682 = arith.addf %646, %681 : vector<14x128xf32>
      %c198 = arith.constant 198 : index
      %683 = memref.load %arg2[%c198] : memref<288xf32, #tpu.memory_space<smem>>
      %684 = vector.broadcast %683 : f32 to vector<14x128xf32>
      %685 = arith.mulf %684, %662 : vector<14x128xf32>
      %686 = arith.addf %650, %685 : vector<14x128xf32>
      %c234 = arith.constant 234 : index
      %687 = memref.load %arg2[%c234] : memref<288xf32, #tpu.memory_space<smem>>
      %688 = vector.broadcast %687 : f32 to vector<14x128xf32>
      %689 = arith.mulf %688, %662 : vector<14x128xf32>
      %690 = arith.addf %654, %689 : vector<14x128xf32>
      %c270 = arith.constant 270 : index
      %691 = memref.load %arg2[%c270] : memref<288xf32, #tpu.memory_space<smem>>
      %692 = vector.broadcast %691 : f32 to vector<14x128xf32>
      %693 = arith.mulf %692, %662 : vector<14x128xf32>
      %694 = arith.addf %658, %693 : vector<14x128xf32>
      %c0_i32_85 = arith.constant 0 : i32
      %695 = arith.addi %2, %c0_i32_85 : i32
      %c2_86 = arith.constant 2 : index
      %696 = arith.index_cast %695 : i32 to index
      %c1_87 = arith.constant 1 : index
      %c0_88 = arith.constant 0 : index
      %697 = vector.load %arg1[%c2_86, %696, %c1_87, %c0_88] : memref<4x16x16x128xf32, #tpu.memory_space<vmem>>, vector<1x1x14x128xf32>
      %698 = vector.shape_cast %697 : vector<1x1x14x128xf32> to vector<14x128xf32>
      %c19 = arith.constant 19 : index
      %699 = memref.load %arg2[%c19] : memref<288xf32, #tpu.memory_space<smem>>
      %700 = vector.broadcast %699 : f32 to vector<14x128xf32>
      %701 = arith.mulf %700, %698 : vector<14x128xf32>
      %702 = arith.addf %666, %701 : vector<14x128xf32>
      %c55 = arith.constant 55 : index
      %703 = memref.load %arg2[%c55] : memref<288xf32, #tpu.memory_space<smem>>
      %704 = vector.broadcast %703 : f32 to vector<14x128xf32>
      %705 = arith.mulf %704, %698 : vector<14x128xf32>
      %706 = arith.addf %670, %705 : vector<14x128xf32>
      %c91 = arith.constant 91 : index
      %707 = memref.load %arg2[%c91] : memref<288xf32, #tpu.memory_space<smem>>
      %708 = vector.broadcast %707 : f32 to vector<14x128xf32>
      %709 = arith.mulf %708, %698 : vector<14x128xf32>
      %710 = arith.addf %674, %709 : vector<14x128xf32>
      %c127 = arith.constant 127 : index
      %711 = memref.load %arg2[%c127] : memref<288xf32, #tpu.memory_space<smem>>
      %712 = vector.broadcast %711 : f32 to vector<14x128xf32>
      %713 = arith.mulf %712, %698 : vector<14x128xf32>
      %714 = arith.addf %678, %713 : vector<14x128xf32>
      %c163 = arith.constant 163 : index
      %715 = memref.load %arg2[%c163] : memref<288xf32, #tpu.memory_space<smem>>
      %716 = vector.broadcast %715 : f32 to vector<14x128xf32>
      %717 = arith.mulf %716, %698 : vector<14x128xf32>
      %718 = arith.addf %682, %717 : vector<14x128xf32>
      %c199 = arith.constant 199 : index
      %719 = memref.load %arg2[%c199] : memref<288xf32, #tpu.memory_space<smem>>
      %720 = vector.broadcast %719 : f32 to vector<14x128xf32>
      %721 = arith.mulf %720, %698 : vector<14x128xf32>
      %722 = arith.addf %686, %721 : vector<14x128xf32>
      %c235 = arith.constant 235 : index
      %723 = memref.load %arg2[%c235] : memref<288xf32, #tpu.memory_space<smem>>
      %724 = vector.broadcast %723 : f32 to vector<14x128xf32>
      %725 = arith.mulf %724, %698 : vector<14x128xf32>
      %726 = arith.addf %690, %725 : vector<14x128xf32>
      %c271 = arith.constant 271 : index
      %727 = memref.load %arg2[%c271] : memref<288xf32, #tpu.memory_space<smem>>
      %728 = vector.broadcast %727 : f32 to vector<14x128xf32>
      %729 = arith.mulf %728, %698 : vector<14x128xf32>
      %730 = arith.addf %694, %729 : vector<14x128xf32>
      %c0_i32_89 = arith.constant 0 : i32
      %731 = arith.addi %2, %c0_i32_89 : i32
      %c2_90 = arith.constant 2 : index
      %732 = arith.index_cast %731 : i32 to index
      %c2_91 = arith.constant 2 : index
      %c0_92 = arith.constant 0 : index
      %733 = vector.load %arg1[%c2_90, %732, %c2_91, %c0_92] : memref<4x16x16x128xf32, #tpu.memory_space<vmem>>, vector<1x1x14x128xf32>
      %734 = vector.shape_cast %733 : vector<1x1x14x128xf32> to vector<14x128xf32>
      %c20 = arith.constant 20 : index
      %735 = memref.load %arg2[%c20] : memref<288xf32, #tpu.memory_space<smem>>
      %736 = vector.broadcast %735 : f32 to vector<14x128xf32>
      %737 = arith.mulf %736, %734 : vector<14x128xf32>
      %738 = arith.addf %702, %737 : vector<14x128xf32>
      %c56 = arith.constant 56 : index
      %739 = memref.load %arg2[%c56] : memref<288xf32, #tpu.memory_space<smem>>
      %740 = vector.broadcast %739 : f32 to vector<14x128xf32>
      %741 = arith.mulf %740, %734 : vector<14x128xf32>
      %742 = arith.addf %706, %741 : vector<14x128xf32>
      %c92 = arith.constant 92 : index
      %743 = memref.load %arg2[%c92] : memref<288xf32, #tpu.memory_space<smem>>
      %744 = vector.broadcast %743 : f32 to vector<14x128xf32>
      %745 = arith.mulf %744, %734 : vector<14x128xf32>
      %746 = arith.addf %710, %745 : vector<14x128xf32>
      %c128 = arith.constant 128 : index
      %747 = memref.load %arg2[%c128] : memref<288xf32, #tpu.memory_space<smem>>
      %748 = vector.broadcast %747 : f32 to vector<14x128xf32>
      %749 = arith.mulf %748, %734 : vector<14x128xf32>
      %750 = arith.addf %714, %749 : vector<14x128xf32>
      %c164 = arith.constant 164 : index
      %751 = memref.load %arg2[%c164] : memref<288xf32, #tpu.memory_space<smem>>
      %752 = vector.broadcast %751 : f32 to vector<14x128xf32>
      %753 = arith.mulf %752, %734 : vector<14x128xf32>
      %754 = arith.addf %718, %753 : vector<14x128xf32>
      %c200 = arith.constant 200 : index
      %755 = memref.load %arg2[%c200] : memref<288xf32, #tpu.memory_space<smem>>
      %756 = vector.broadcast %755 : f32 to vector<14x128xf32>
      %757 = arith.mulf %756, %734 : vector<14x128xf32>
      %758 = arith.addf %722, %757 : vector<14x128xf32>
      %c236 = arith.constant 236 : index
      %759 = memref.load %arg2[%c236] : memref<288xf32, #tpu.memory_space<smem>>
      %760 = vector.broadcast %759 : f32 to vector<14x128xf32>
      %761 = arith.mulf %760, %734 : vector<14x128xf32>
      %762 = arith.addf %726, %761 : vector<14x128xf32>
      %c272 = arith.constant 272 : index
      %763 = memref.load %arg2[%c272] : memref<288xf32, #tpu.memory_space<smem>>
      %764 = vector.broadcast %763 : f32 to vector<14x128xf32>
      %765 = arith.mulf %764, %734 : vector<14x128xf32>
      %766 = arith.addf %730, %765 : vector<14x128xf32>
      %c1_i32_93 = arith.constant 1 : i32
      %767 = arith.addi %2, %c1_i32_93 : i32
      %c2_94 = arith.constant 2 : index
      %768 = arith.index_cast %767 : i32 to index
      %c0_95 = arith.constant 0 : index
      %c0_96 = arith.constant 0 : index
      %769 = vector.load %arg1[%c2_94, %768, %c0_95, %c0_96] : memref<4x16x16x128xf32, #tpu.memory_space<vmem>>, vector<1x1x14x128xf32>
      %770 = vector.shape_cast %769 : vector<1x1x14x128xf32> to vector<14x128xf32>
      %c21 = arith.constant 21 : index
      %771 = memref.load %arg2[%c21] : memref<288xf32, #tpu.memory_space<smem>>
      %772 = vector.broadcast %771 : f32 to vector<14x128xf32>
      %773 = arith.mulf %772, %770 : vector<14x128xf32>
      %774 = arith.addf %738, %773 : vector<14x128xf32>
      %c57 = arith.constant 57 : index
      %775 = memref.load %arg2[%c57] : memref<288xf32, #tpu.memory_space<smem>>
      %776 = vector.broadcast %775 : f32 to vector<14x128xf32>
      %777 = arith.mulf %776, %770 : vector<14x128xf32>
      %778 = arith.addf %742, %777 : vector<14x128xf32>
      %c93 = arith.constant 93 : index
      %779 = memref.load %arg2[%c93] : memref<288xf32, #tpu.memory_space<smem>>
      %780 = vector.broadcast %779 : f32 to vector<14x128xf32>
      %781 = arith.mulf %780, %770 : vector<14x128xf32>
      %782 = arith.addf %746, %781 : vector<14x128xf32>
      %c129 = arith.constant 129 : index
      %783 = memref.load %arg2[%c129] : memref<288xf32, #tpu.memory_space<smem>>
      %784 = vector.broadcast %783 : f32 to vector<14x128xf32>
      %785 = arith.mulf %784, %770 : vector<14x128xf32>
      %786 = arith.addf %750, %785 : vector<14x128xf32>
      %c165 = arith.constant 165 : index
      %787 = memref.load %arg2[%c165] : memref<288xf32, #tpu.memory_space<smem>>
      %788 = vector.broadcast %787 : f32 to vector<14x128xf32>
      %789 = arith.mulf %788, %770 : vector<14x128xf32>
      %790 = arith.addf %754, %789 : vector<14x128xf32>
      %c201 = arith.constant 201 : index
      %791 = memref.load %arg2[%c201] : memref<288xf32, #tpu.memory_space<smem>>
      %792 = vector.broadcast %791 : f32 to vector<14x128xf32>
      %793 = arith.mulf %792, %770 : vector<14x128xf32>
      %794 = arith.addf %758, %793 : vector<14x128xf32>
      %c237 = arith.constant 237 : index
      %795 = memref.load %arg2[%c237] : memref<288xf32, #tpu.memory_space<smem>>
      %796 = vector.broadcast %795 : f32 to vector<14x128xf32>
      %797 = arith.mulf %796, %770 : vector<14x128xf32>
      %798 = arith.addf %762, %797 : vector<14x128xf32>
      %c273 = arith.constant 273 : index
      %799 = memref.load %arg2[%c273] : memref<288xf32, #tpu.memory_space<smem>>
      %800 = vector.broadcast %799 : f32 to vector<14x128xf32>
      %801 = arith.mulf %800, %770 : vector<14x128xf32>
      %802 = arith.addf %766, %801 : vector<14x128xf32>
      %c1_i32_97 = arith.constant 1 : i32
      %803 = arith.addi %2, %c1_i32_97 : i32
      %c2_98 = arith.constant 2 : index
      %804 = arith.index_cast %803 : i32 to index
      %c1_99 = arith.constant 1 : index
      %c0_100 = arith.constant 0 : index
      %805 = vector.load %arg1[%c2_98, %804, %c1_99, %c0_100] : memref<4x16x16x128xf32, #tpu.memory_space<vmem>>, vector<1x1x14x128xf32>
      %806 = vector.shape_cast %805 : vector<1x1x14x128xf32> to vector<14x128xf32>
      %c22 = arith.constant 22 : index
      %807 = memref.load %arg2[%c22] : memref<288xf32, #tpu.memory_space<smem>>
      %808 = vector.broadcast %807 : f32 to vector<14x128xf32>
      %809 = arith.mulf %808, %806 : vector<14x128xf32>
      %810 = arith.addf %774, %809 : vector<14x128xf32>
      %c58 = arith.constant 58 : index
      %811 = memref.load %arg2[%c58] : memref<288xf32, #tpu.memory_space<smem>>
      %812 = vector.broadcast %811 : f32 to vector<14x128xf32>
      %813 = arith.mulf %812, %806 : vector<14x128xf32>
      %814 = arith.addf %778, %813 : vector<14x128xf32>
      %c94 = arith.constant 94 : index
      %815 = memref.load %arg2[%c94] : memref<288xf32, #tpu.memory_space<smem>>
      %816 = vector.broadcast %815 : f32 to vector<14x128xf32>
      %817 = arith.mulf %816, %806 : vector<14x128xf32>
      %818 = arith.addf %782, %817 : vector<14x128xf32>
      %c130 = arith.constant 130 : index
      %819 = memref.load %arg2[%c130] : memref<288xf32, #tpu.memory_space<smem>>
      %820 = vector.broadcast %819 : f32 to vector<14x128xf32>
      %821 = arith.mulf %820, %806 : vector<14x128xf32>
      %822 = arith.addf %786, %821 : vector<14x128xf32>
      %c166 = arith.constant 166 : index
      %823 = memref.load %arg2[%c166] : memref<288xf32, #tpu.memory_space<smem>>
      %824 = vector.broadcast %823 : f32 to vector<14x128xf32>
      %825 = arith.mulf %824, %806 : vector<14x128xf32>
      %826 = arith.addf %790, %825 : vector<14x128xf32>
      %c202 = arith.constant 202 : index
      %827 = memref.load %arg2[%c202] : memref<288xf32, #tpu.memory_space<smem>>
      %828 = vector.broadcast %827 : f32 to vector<14x128xf32>
      %829 = arith.mulf %828, %806 : vector<14x128xf32>
      %830 = arith.addf %794, %829 : vector<14x128xf32>
      %c238 = arith.constant 238 : index
      %831 = memref.load %arg2[%c238] : memref<288xf32, #tpu.memory_space<smem>>
      %832 = vector.broadcast %831 : f32 to vector<14x128xf32>
      %833 = arith.mulf %832, %806 : vector<14x128xf32>
      %834 = arith.addf %798, %833 : vector<14x128xf32>
      %c274 = arith.constant 274 : index
      %835 = memref.load %arg2[%c274] : memref<288xf32, #tpu.memory_space<smem>>
      %836 = vector.broadcast %835 : f32 to vector<14x128xf32>
      %837 = arith.mulf %836, %806 : vector<14x128xf32>
      %838 = arith.addf %802, %837 : vector<14x128xf32>
      %c1_i32_101 = arith.constant 1 : i32
      %839 = arith.addi %2, %c1_i32_101 : i32
      %c2_102 = arith.constant 2 : index
      %840 = arith.index_cast %839 : i32 to index
      %c2_103 = arith.constant 2 : index
      %c0_104 = arith.constant 0 : index
      %841 = vector.load %arg1[%c2_102, %840, %c2_103, %c0_104] : memref<4x16x16x128xf32, #tpu.memory_space<vmem>>, vector<1x1x14x128xf32>
      %842 = vector.shape_cast %841 : vector<1x1x14x128xf32> to vector<14x128xf32>
      %c23 = arith.constant 23 : index
      %843 = memref.load %arg2[%c23] : memref<288xf32, #tpu.memory_space<smem>>
      %844 = vector.broadcast %843 : f32 to vector<14x128xf32>
      %845 = arith.mulf %844, %842 : vector<14x128xf32>
      %846 = arith.addf %810, %845 : vector<14x128xf32>
      %c59 = arith.constant 59 : index
      %847 = memref.load %arg2[%c59] : memref<288xf32, #tpu.memory_space<smem>>
      %848 = vector.broadcast %847 : f32 to vector<14x128xf32>
      %849 = arith.mulf %848, %842 : vector<14x128xf32>
      %850 = arith.addf %814, %849 : vector<14x128xf32>
      %c95 = arith.constant 95 : index
      %851 = memref.load %arg2[%c95] : memref<288xf32, #tpu.memory_space<smem>>
      %852 = vector.broadcast %851 : f32 to vector<14x128xf32>
      %853 = arith.mulf %852, %842 : vector<14x128xf32>
      %854 = arith.addf %818, %853 : vector<14x128xf32>
      %c131 = arith.constant 131 : index
      %855 = memref.load %arg2[%c131] : memref<288xf32, #tpu.memory_space<smem>>
      %856 = vector.broadcast %855 : f32 to vector<14x128xf32>
      %857 = arith.mulf %856, %842 : vector<14x128xf32>
      %858 = arith.addf %822, %857 : vector<14x128xf32>
      %c167 = arith.constant 167 : index
      %859 = memref.load %arg2[%c167] : memref<288xf32, #tpu.memory_space<smem>>
      %860 = vector.broadcast %859 : f32 to vector<14x128xf32>
      %861 = arith.mulf %860, %842 : vector<14x128xf32>
      %862 = arith.addf %826, %861 : vector<14x128xf32>
      %c203 = arith.constant 203 : index
      %863 = memref.load %arg2[%c203] : memref<288xf32, #tpu.memory_space<smem>>
      %864 = vector.broadcast %863 : f32 to vector<14x128xf32>
      %865 = arith.mulf %864, %842 : vector<14x128xf32>
      %866 = arith.addf %830, %865 : vector<14x128xf32>
      %c239 = arith.constant 239 : index
      %867 = memref.load %arg2[%c239] : memref<288xf32, #tpu.memory_space<smem>>
      %868 = vector.broadcast %867 : f32 to vector<14x128xf32>
      %869 = arith.mulf %868, %842 : vector<14x128xf32>
      %870 = arith.addf %834, %869 : vector<14x128xf32>
      %c275 = arith.constant 275 : index
      %871 = memref.load %arg2[%c275] : memref<288xf32, #tpu.memory_space<smem>>
      %872 = vector.broadcast %871 : f32 to vector<14x128xf32>
      %873 = arith.mulf %872, %842 : vector<14x128xf32>
      %874 = arith.addf %838, %873 : vector<14x128xf32>
      %c2_i32_105 = arith.constant 2 : i32
      %875 = arith.addi %2, %c2_i32_105 : i32
      %c2_106 = arith.constant 2 : index
      %876 = arith.index_cast %875 : i32 to index
      %c0_107 = arith.constant 0 : index
      %c0_108 = arith.constant 0 : index
      %877 = vector.load %arg1[%c2_106, %876, %c0_107, %c0_108] : memref<4x16x16x128xf32, #tpu.memory_space<vmem>>, vector<1x1x14x128xf32>
      %878 = vector.shape_cast %877 : vector<1x1x14x128xf32> to vector<14x128xf32>
      %c24 = arith.constant 24 : index
      %879 = memref.load %arg2[%c24] : memref<288xf32, #tpu.memory_space<smem>>
      %880 = vector.broadcast %879 : f32 to vector<14x128xf32>
      %881 = arith.mulf %880, %878 : vector<14x128xf32>
      %882 = arith.addf %846, %881 : vector<14x128xf32>
      %c60 = arith.constant 60 : index
      %883 = memref.load %arg2[%c60] : memref<288xf32, #tpu.memory_space<smem>>
      %884 = vector.broadcast %883 : f32 to vector<14x128xf32>
      %885 = arith.mulf %884, %878 : vector<14x128xf32>
      %886 = arith.addf %850, %885 : vector<14x128xf32>
      %c96 = arith.constant 96 : index
      %887 = memref.load %arg2[%c96] : memref<288xf32, #tpu.memory_space<smem>>
      %888 = vector.broadcast %887 : f32 to vector<14x128xf32>
      %889 = arith.mulf %888, %878 : vector<14x128xf32>
      %890 = arith.addf %854, %889 : vector<14x128xf32>
      %c132 = arith.constant 132 : index
      %891 = memref.load %arg2[%c132] : memref<288xf32, #tpu.memory_space<smem>>
      %892 = vector.broadcast %891 : f32 to vector<14x128xf32>
      %893 = arith.mulf %892, %878 : vector<14x128xf32>
      %894 = arith.addf %858, %893 : vector<14x128xf32>
      %c168 = arith.constant 168 : index
      %895 = memref.load %arg2[%c168] : memref<288xf32, #tpu.memory_space<smem>>
      %896 = vector.broadcast %895 : f32 to vector<14x128xf32>
      %897 = arith.mulf %896, %878 : vector<14x128xf32>
      %898 = arith.addf %862, %897 : vector<14x128xf32>
      %c204 = arith.constant 204 : index
      %899 = memref.load %arg2[%c204] : memref<288xf32, #tpu.memory_space<smem>>
      %900 = vector.broadcast %899 : f32 to vector<14x128xf32>
      %901 = arith.mulf %900, %878 : vector<14x128xf32>
      %902 = arith.addf %866, %901 : vector<14x128xf32>
      %c240 = arith.constant 240 : index
      %903 = memref.load %arg2[%c240] : memref<288xf32, #tpu.memory_space<smem>>
      %904 = vector.broadcast %903 : f32 to vector<14x128xf32>
      %905 = arith.mulf %904, %878 : vector<14x128xf32>
      %906 = arith.addf %870, %905 : vector<14x128xf32>
      %c276 = arith.constant 276 : index
      %907 = memref.load %arg2[%c276] : memref<288xf32, #tpu.memory_space<smem>>
      %908 = vector.broadcast %907 : f32 to vector<14x128xf32>
      %909 = arith.mulf %908, %878 : vector<14x128xf32>
      %910 = arith.addf %874, %909 : vector<14x128xf32>
      %c2_i32_109 = arith.constant 2 : i32
      %911 = arith.addi %2, %c2_i32_109 : i32
      %c2_110 = arith.constant 2 : index
      %912 = arith.index_cast %911 : i32 to index
      %c1_111 = arith.constant 1 : index
      %c0_112 = arith.constant 0 : index
      %913 = vector.load %arg1[%c2_110, %912, %c1_111, %c0_112] : memref<4x16x16x128xf32, #tpu.memory_space<vmem>>, vector<1x1x14x128xf32>
      %914 = vector.shape_cast %913 : vector<1x1x14x128xf32> to vector<14x128xf32>
      %c25 = arith.constant 25 : index
      %915 = memref.load %arg2[%c25] : memref<288xf32, #tpu.memory_space<smem>>
      %916 = vector.broadcast %915 : f32 to vector<14x128xf32>
      %917 = arith.mulf %916, %914 : vector<14x128xf32>
      %918 = arith.addf %882, %917 : vector<14x128xf32>
      %c61 = arith.constant 61 : index
      %919 = memref.load %arg2[%c61] : memref<288xf32, #tpu.memory_space<smem>>
      %920 = vector.broadcast %919 : f32 to vector<14x128xf32>
      %921 = arith.mulf %920, %914 : vector<14x128xf32>
      %922 = arith.addf %886, %921 : vector<14x128xf32>
      %c97 = arith.constant 97 : index
      %923 = memref.load %arg2[%c97] : memref<288xf32, #tpu.memory_space<smem>>
      %924 = vector.broadcast %923 : f32 to vector<14x128xf32>
      %925 = arith.mulf %924, %914 : vector<14x128xf32>
      %926 = arith.addf %890, %925 : vector<14x128xf32>
      %c133 = arith.constant 133 : index
      %927 = memref.load %arg2[%c133] : memref<288xf32, #tpu.memory_space<smem>>
      %928 = vector.broadcast %927 : f32 to vector<14x128xf32>
      %929 = arith.mulf %928, %914 : vector<14x128xf32>
      %930 = arith.addf %894, %929 : vector<14x128xf32>
      %c169 = arith.constant 169 : index
      %931 = memref.load %arg2[%c169] : memref<288xf32, #tpu.memory_space<smem>>
      %932 = vector.broadcast %931 : f32 to vector<14x128xf32>
      %933 = arith.mulf %932, %914 : vector<14x128xf32>
      %934 = arith.addf %898, %933 : vector<14x128xf32>
      %c205 = arith.constant 205 : index
      %935 = memref.load %arg2[%c205] : memref<288xf32, #tpu.memory_space<smem>>
      %936 = vector.broadcast %935 : f32 to vector<14x128xf32>
      %937 = arith.mulf %936, %914 : vector<14x128xf32>
      %938 = arith.addf %902, %937 : vector<14x128xf32>
      %c241 = arith.constant 241 : index
      %939 = memref.load %arg2[%c241] : memref<288xf32, #tpu.memory_space<smem>>
      %940 = vector.broadcast %939 : f32 to vector<14x128xf32>
      %941 = arith.mulf %940, %914 : vector<14x128xf32>
      %942 = arith.addf %906, %941 : vector<14x128xf32>
      %c277 = arith.constant 277 : index
      %943 = memref.load %arg2[%c277] : memref<288xf32, #tpu.memory_space<smem>>
      %944 = vector.broadcast %943 : f32 to vector<14x128xf32>
      %945 = arith.mulf %944, %914 : vector<14x128xf32>
      %946 = arith.addf %910, %945 : vector<14x128xf32>
      %c2_i32_113 = arith.constant 2 : i32
      %947 = arith.addi %2, %c2_i32_113 : i32
      %c2_114 = arith.constant 2 : index
      %948 = arith.index_cast %947 : i32 to index
      %c2_115 = arith.constant 2 : index
      %c0_116 = arith.constant 0 : index
      %949 = vector.load %arg1[%c2_114, %948, %c2_115, %c0_116] : memref<4x16x16x128xf32, #tpu.memory_space<vmem>>, vector<1x1x14x128xf32>
      %950 = vector.shape_cast %949 : vector<1x1x14x128xf32> to vector<14x128xf32>
      %c26 = arith.constant 26 : index
      %951 = memref.load %arg2[%c26] : memref<288xf32, #tpu.memory_space<smem>>
      %952 = vector.broadcast %951 : f32 to vector<14x128xf32>
      %953 = arith.mulf %952, %950 : vector<14x128xf32>
      %954 = arith.addf %918, %953 : vector<14x128xf32>
      %c62 = arith.constant 62 : index
      %955 = memref.load %arg2[%c62] : memref<288xf32, #tpu.memory_space<smem>>
      %956 = vector.broadcast %955 : f32 to vector<14x128xf32>
      %957 = arith.mulf %956, %950 : vector<14x128xf32>
      %958 = arith.addf %922, %957 : vector<14x128xf32>
      %c98 = arith.constant 98 : index
      %959 = memref.load %arg2[%c98] : memref<288xf32, #tpu.memory_space<smem>>
      %960 = vector.broadcast %959 : f32 to vector<14x128xf32>
      %961 = arith.mulf %960, %950 : vector<14x128xf32>
      %962 = arith.addf %926, %961 : vector<14x128xf32>
      %c134 = arith.constant 134 : index
      %963 = memref.load %arg2[%c134] : memref<288xf32, #tpu.memory_space<smem>>
      %964 = vector.broadcast %963 : f32 to vector<14x128xf32>
      %965 = arith.mulf %964, %950 : vector<14x128xf32>
      %966 = arith.addf %930, %965 : vector<14x128xf32>
      %c170 = arith.constant 170 : index
      %967 = memref.load %arg2[%c170] : memref<288xf32, #tpu.memory_space<smem>>
      %968 = vector.broadcast %967 : f32 to vector<14x128xf32>
      %969 = arith.mulf %968, %950 : vector<14x128xf32>
      %970 = arith.addf %934, %969 : vector<14x128xf32>
      %c206 = arith.constant 206 : index
      %971 = memref.load %arg2[%c206] : memref<288xf32, #tpu.memory_space<smem>>
      %972 = vector.broadcast %971 : f32 to vector<14x128xf32>
      %973 = arith.mulf %972, %950 : vector<14x128xf32>
      %974 = arith.addf %938, %973 : vector<14x128xf32>
      %c242 = arith.constant 242 : index
      %975 = memref.load %arg2[%c242] : memref<288xf32, #tpu.memory_space<smem>>
      %976 = vector.broadcast %975 : f32 to vector<14x128xf32>
      %977 = arith.mulf %976, %950 : vector<14x128xf32>
      %978 = arith.addf %942, %977 : vector<14x128xf32>
      %c278 = arith.constant 278 : index
      %979 = memref.load %arg2[%c278] : memref<288xf32, #tpu.memory_space<smem>>
      %980 = vector.broadcast %979 : f32 to vector<14x128xf32>
      %981 = arith.mulf %980, %950 : vector<14x128xf32>
      %982 = arith.addf %946, %981 : vector<14x128xf32>
      %c0_i32_117 = arith.constant 0 : i32
      %983 = arith.addi %2, %c0_i32_117 : i32
      %c3_118 = arith.constant 3 : index
      %984 = arith.index_cast %983 : i32 to index
      %c0_119 = arith.constant 0 : index
      %c0_120 = arith.constant 0 : index
      %985 = vector.load %arg1[%c3_118, %984, %c0_119, %c0_120] : memref<4x16x16x128xf32, #tpu.memory_space<vmem>>, vector<1x1x14x128xf32>
      %986 = vector.shape_cast %985 : vector<1x1x14x128xf32> to vector<14x128xf32>
      %c27 = arith.constant 27 : index
      %987 = memref.load %arg2[%c27] : memref<288xf32, #tpu.memory_space<smem>>
      %988 = vector.broadcast %987 : f32 to vector<14x128xf32>
      %989 = arith.mulf %988, %986 : vector<14x128xf32>
      %990 = arith.addf %954, %989 : vector<14x128xf32>
      %c63 = arith.constant 63 : index
      %991 = memref.load %arg2[%c63] : memref<288xf32, #tpu.memory_space<smem>>
      %992 = vector.broadcast %991 : f32 to vector<14x128xf32>
      %993 = arith.mulf %992, %986 : vector<14x128xf32>
      %994 = arith.addf %958, %993 : vector<14x128xf32>
      %c99 = arith.constant 99 : index
      %995 = memref.load %arg2[%c99] : memref<288xf32, #tpu.memory_space<smem>>
      %996 = vector.broadcast %995 : f32 to vector<14x128xf32>
      %997 = arith.mulf %996, %986 : vector<14x128xf32>
      %998 = arith.addf %962, %997 : vector<14x128xf32>
      %c135 = arith.constant 135 : index
      %999 = memref.load %arg2[%c135] : memref<288xf32, #tpu.memory_space<smem>>
      %1000 = vector.broadcast %999 : f32 to vector<14x128xf32>
      %1001 = arith.mulf %1000, %986 : vector<14x128xf32>
      %1002 = arith.addf %966, %1001 : vector<14x128xf32>
      %c171 = arith.constant 171 : index
      %1003 = memref.load %arg2[%c171] : memref<288xf32, #tpu.memory_space<smem>>
      %1004 = vector.broadcast %1003 : f32 to vector<14x128xf32>
      %1005 = arith.mulf %1004, %986 : vector<14x128xf32>
      %1006 = arith.addf %970, %1005 : vector<14x128xf32>
      %c207 = arith.constant 207 : index
      %1007 = memref.load %arg2[%c207] : memref<288xf32, #tpu.memory_space<smem>>
      %1008 = vector.broadcast %1007 : f32 to vector<14x128xf32>
      %1009 = arith.mulf %1008, %986 : vector<14x128xf32>
      %1010 = arith.addf %974, %1009 : vector<14x128xf32>
      %c243 = arith.constant 243 : index
      %1011 = memref.load %arg2[%c243] : memref<288xf32, #tpu.memory_space<smem>>
      %1012 = vector.broadcast %1011 : f32 to vector<14x128xf32>
      %1013 = arith.mulf %1012, %986 : vector<14x128xf32>
      %1014 = arith.addf %978, %1013 : vector<14x128xf32>
      %c279 = arith.constant 279 : index
      %1015 = memref.load %arg2[%c279] : memref<288xf32, #tpu.memory_space<smem>>
      %1016 = vector.broadcast %1015 : f32 to vector<14x128xf32>
      %1017 = arith.mulf %1016, %986 : vector<14x128xf32>
      %1018 = arith.addf %982, %1017 : vector<14x128xf32>
      %c0_i32_121 = arith.constant 0 : i32
      %1019 = arith.addi %2, %c0_i32_121 : i32
      %c3_122 = arith.constant 3 : index
      %1020 = arith.index_cast %1019 : i32 to index
      %c1_123 = arith.constant 1 : index
      %c0_124 = arith.constant 0 : index
      %1021 = vector.load %arg1[%c3_122, %1020, %c1_123, %c0_124] : memref<4x16x16x128xf32, #tpu.memory_space<vmem>>, vector<1x1x14x128xf32>
      %1022 = vector.shape_cast %1021 : vector<1x1x14x128xf32> to vector<14x128xf32>
      %c28 = arith.constant 28 : index
      %1023 = memref.load %arg2[%c28] : memref<288xf32, #tpu.memory_space<smem>>
      %1024 = vector.broadcast %1023 : f32 to vector<14x128xf32>
      %1025 = arith.mulf %1024, %1022 : vector<14x128xf32>
      %1026 = arith.addf %990, %1025 : vector<14x128xf32>
      %c64 = arith.constant 64 : index
      %1027 = memref.load %arg2[%c64] : memref<288xf32, #tpu.memory_space<smem>>
      %1028 = vector.broadcast %1027 : f32 to vector<14x128xf32>
      %1029 = arith.mulf %1028, %1022 : vector<14x128xf32>
      %1030 = arith.addf %994, %1029 : vector<14x128xf32>
      %c100 = arith.constant 100 : index
      %1031 = memref.load %arg2[%c100] : memref<288xf32, #tpu.memory_space<smem>>
      %1032 = vector.broadcast %1031 : f32 to vector<14x128xf32>
      %1033 = arith.mulf %1032, %1022 : vector<14x128xf32>
      %1034 = arith.addf %998, %1033 : vector<14x128xf32>
      %c136 = arith.constant 136 : index
      %1035 = memref.load %arg2[%c136] : memref<288xf32, #tpu.memory_space<smem>>
      %1036 = vector.broadcast %1035 : f32 to vector<14x128xf32>
      %1037 = arith.mulf %1036, %1022 : vector<14x128xf32>
      %1038 = arith.addf %1002, %1037 : vector<14x128xf32>
      %c172 = arith.constant 172 : index
      %1039 = memref.load %arg2[%c172] : memref<288xf32, #tpu.memory_space<smem>>
      %1040 = vector.broadcast %1039 : f32 to vector<14x128xf32>
      %1041 = arith.mulf %1040, %1022 : vector<14x128xf32>
      %1042 = arith.addf %1006, %1041 : vector<14x128xf32>
      %c208 = arith.constant 208 : index
      %1043 = memref.load %arg2[%c208] : memref<288xf32, #tpu.memory_space<smem>>
      %1044 = vector.broadcast %1043 : f32 to vector<14x128xf32>
      %1045 = arith.mulf %1044, %1022 : vector<14x128xf32>
      %1046 = arith.addf %1010, %1045 : vector<14x128xf32>
      %c244 = arith.constant 244 : index
      %1047 = memref.load %arg2[%c244] : memref<288xf32, #tpu.memory_space<smem>>
      %1048 = vector.broadcast %1047 : f32 to vector<14x128xf32>
      %1049 = arith.mulf %1048, %1022 : vector<14x128xf32>
      %1050 = arith.addf %1014, %1049 : vector<14x128xf32>
      %c280 = arith.constant 280 : index
      %1051 = memref.load %arg2[%c280] : memref<288xf32, #tpu.memory_space<smem>>
      %1052 = vector.broadcast %1051 : f32 to vector<14x128xf32>
      %1053 = arith.mulf %1052, %1022 : vector<14x128xf32>
      %1054 = arith.addf %1018, %1053 : vector<14x128xf32>
      %c0_i32_125 = arith.constant 0 : i32
      %1055 = arith.addi %2, %c0_i32_125 : i32
      %c3_126 = arith.constant 3 : index
      %1056 = arith.index_cast %1055 : i32 to index
      %c2_127 = arith.constant 2 : index
      %c0_128 = arith.constant 0 : index
      %1057 = vector.load %arg1[%c3_126, %1056, %c2_127, %c0_128] : memref<4x16x16x128xf32, #tpu.memory_space<vmem>>, vector<1x1x14x128xf32>
      %1058 = vector.shape_cast %1057 : vector<1x1x14x128xf32> to vector<14x128xf32>
      %c29 = arith.constant 29 : index
      %1059 = memref.load %arg2[%c29] : memref<288xf32, #tpu.memory_space<smem>>
      %1060 = vector.broadcast %1059 : f32 to vector<14x128xf32>
      %1061 = arith.mulf %1060, %1058 : vector<14x128xf32>
      %1062 = arith.addf %1026, %1061 : vector<14x128xf32>
      %c65 = arith.constant 65 : index
      %1063 = memref.load %arg2[%c65] : memref<288xf32, #tpu.memory_space<smem>>
      %1064 = vector.broadcast %1063 : f32 to vector<14x128xf32>
      %1065 = arith.mulf %1064, %1058 : vector<14x128xf32>
      %1066 = arith.addf %1030, %1065 : vector<14x128xf32>
      %c101 = arith.constant 101 : index
      %1067 = memref.load %arg2[%c101] : memref<288xf32, #tpu.memory_space<smem>>
      %1068 = vector.broadcast %1067 : f32 to vector<14x128xf32>
      %1069 = arith.mulf %1068, %1058 : vector<14x128xf32>
      %1070 = arith.addf %1034, %1069 : vector<14x128xf32>
      %c137 = arith.constant 137 : index
      %1071 = memref.load %arg2[%c137] : memref<288xf32, #tpu.memory_space<smem>>
      %1072 = vector.broadcast %1071 : f32 to vector<14x128xf32>
      %1073 = arith.mulf %1072, %1058 : vector<14x128xf32>
      %1074 = arith.addf %1038, %1073 : vector<14x128xf32>
      %c173 = arith.constant 173 : index
      %1075 = memref.load %arg2[%c173] : memref<288xf32, #tpu.memory_space<smem>>
      %1076 = vector.broadcast %1075 : f32 to vector<14x128xf32>
      %1077 = arith.mulf %1076, %1058 : vector<14x128xf32>
      %1078 = arith.addf %1042, %1077 : vector<14x128xf32>
      %c209 = arith.constant 209 : index
      %1079 = memref.load %arg2[%c209] : memref<288xf32, #tpu.memory_space<smem>>
      %1080 = vector.broadcast %1079 : f32 to vector<14x128xf32>
      %1081 = arith.mulf %1080, %1058 : vector<14x128xf32>
      %1082 = arith.addf %1046, %1081 : vector<14x128xf32>
      %c245 = arith.constant 245 : index
      %1083 = memref.load %arg2[%c245] : memref<288xf32, #tpu.memory_space<smem>>
      %1084 = vector.broadcast %1083 : f32 to vector<14x128xf32>
      %1085 = arith.mulf %1084, %1058 : vector<14x128xf32>
      %1086 = arith.addf %1050, %1085 : vector<14x128xf32>
      %c281 = arith.constant 281 : index
      %1087 = memref.load %arg2[%c281] : memref<288xf32, #tpu.memory_space<smem>>
      %1088 = vector.broadcast %1087 : f32 to vector<14x128xf32>
      %1089 = arith.mulf %1088, %1058 : vector<14x128xf32>
      %1090 = arith.addf %1054, %1089 : vector<14x128xf32>
      %c1_i32_129 = arith.constant 1 : i32
      %1091 = arith.addi %2, %c1_i32_129 : i32
      %c3_130 = arith.constant 3 : index
      %1092 = arith.index_cast %1091 : i32 to index
      %c0_131 = arith.constant 0 : index
      %c0_132 = arith.constant 0 : index
      %1093 = vector.load %arg1[%c3_130, %1092, %c0_131, %c0_132] : memref<4x16x16x128xf32, #tpu.memory_space<vmem>>, vector<1x1x14x128xf32>
      %1094 = vector.shape_cast %1093 : vector<1x1x14x128xf32> to vector<14x128xf32>
      %c30 = arith.constant 30 : index
      %1095 = memref.load %arg2[%c30] : memref<288xf32, #tpu.memory_space<smem>>
      %1096 = vector.broadcast %1095 : f32 to vector<14x128xf32>
      %1097 = arith.mulf %1096, %1094 : vector<14x128xf32>
      %1098 = arith.addf %1062, %1097 : vector<14x128xf32>
      %c66 = arith.constant 66 : index
      %1099 = memref.load %arg2[%c66] : memref<288xf32, #tpu.memory_space<smem>>
      %1100 = vector.broadcast %1099 : f32 to vector<14x128xf32>
      %1101 = arith.mulf %1100, %1094 : vector<14x128xf32>
      %1102 = arith.addf %1066, %1101 : vector<14x128xf32>
      %c102 = arith.constant 102 : index
      %1103 = memref.load %arg2[%c102] : memref<288xf32, #tpu.memory_space<smem>>
      %1104 = vector.broadcast %1103 : f32 to vector<14x128xf32>
      %1105 = arith.mulf %1104, %1094 : vector<14x128xf32>
      %1106 = arith.addf %1070, %1105 : vector<14x128xf32>
      %c138 = arith.constant 138 : index
      %1107 = memref.load %arg2[%c138] : memref<288xf32, #tpu.memory_space<smem>>
      %1108 = vector.broadcast %1107 : f32 to vector<14x128xf32>
      %1109 = arith.mulf %1108, %1094 : vector<14x128xf32>
      %1110 = arith.addf %1074, %1109 : vector<14x128xf32>
      %c174 = arith.constant 174 : index
      %1111 = memref.load %arg2[%c174] : memref<288xf32, #tpu.memory_space<smem>>
      %1112 = vector.broadcast %1111 : f32 to vector<14x128xf32>
      %1113 = arith.mulf %1112, %1094 : vector<14x128xf32>
      %1114 = arith.addf %1078, %1113 : vector<14x128xf32>
      %c210 = arith.constant 210 : index
      %1115 = memref.load %arg2[%c210] : memref<288xf32, #tpu.memory_space<smem>>
      %1116 = vector.broadcast %1115 : f32 to vector<14x128xf32>
      %1117 = arith.mulf %1116, %1094 : vector<14x128xf32>
      %1118 = arith.addf %1082, %1117 : vector<14x128xf32>
      %c246 = arith.constant 246 : index
      %1119 = memref.load %arg2[%c246] : memref<288xf32, #tpu.memory_space<smem>>
      %1120 = vector.broadcast %1119 : f32 to vector<14x128xf32>
      %1121 = arith.mulf %1120, %1094 : vector<14x128xf32>
      %1122 = arith.addf %1086, %1121 : vector<14x128xf32>
      %c282 = arith.constant 282 : index
      %1123 = memref.load %arg2[%c282] : memref<288xf32, #tpu.memory_space<smem>>
      %1124 = vector.broadcast %1123 : f32 to vector<14x128xf32>
      %1125 = arith.mulf %1124, %1094 : vector<14x128xf32>
      %1126 = arith.addf %1090, %1125 : vector<14x128xf32>
      %c1_i32_133 = arith.constant 1 : i32
      %1127 = arith.addi %2, %c1_i32_133 : i32
      %c3_134 = arith.constant 3 : index
      %1128 = arith.index_cast %1127 : i32 to index
      %c1_135 = arith.constant 1 : index
      %c0_136 = arith.constant 0 : index
      %1129 = vector.load %arg1[%c3_134, %1128, %c1_135, %c0_136] : memref<4x16x16x128xf32, #tpu.memory_space<vmem>>, vector<1x1x14x128xf32>
      %1130 = vector.shape_cast %1129 : vector<1x1x14x128xf32> to vector<14x128xf32>
      %c31 = arith.constant 31 : index
      %1131 = memref.load %arg2[%c31] : memref<288xf32, #tpu.memory_space<smem>>
      %1132 = vector.broadcast %1131 : f32 to vector<14x128xf32>
      %1133 = arith.mulf %1132, %1130 : vector<14x128xf32>
      %1134 = arith.addf %1098, %1133 : vector<14x128xf32>
      %c67 = arith.constant 67 : index
      %1135 = memref.load %arg2[%c67] : memref<288xf32, #tpu.memory_space<smem>>
      %1136 = vector.broadcast %1135 : f32 to vector<14x128xf32>
      %1137 = arith.mulf %1136, %1130 : vector<14x128xf32>
      %1138 = arith.addf %1102, %1137 : vector<14x128xf32>
      %c103 = arith.constant 103 : index
      %1139 = memref.load %arg2[%c103] : memref<288xf32, #tpu.memory_space<smem>>
      %1140 = vector.broadcast %1139 : f32 to vector<14x128xf32>
      %1141 = arith.mulf %1140, %1130 : vector<14x128xf32>
      %1142 = arith.addf %1106, %1141 : vector<14x128xf32>
      %c139 = arith.constant 139 : index
      %1143 = memref.load %arg2[%c139] : memref<288xf32, #tpu.memory_space<smem>>
      %1144 = vector.broadcast %1143 : f32 to vector<14x128xf32>
      %1145 = arith.mulf %1144, %1130 : vector<14x128xf32>
      %1146 = arith.addf %1110, %1145 : vector<14x128xf32>
      %c175 = arith.constant 175 : index
      %1147 = memref.load %arg2[%c175] : memref<288xf32, #tpu.memory_space<smem>>
      %1148 = vector.broadcast %1147 : f32 to vector<14x128xf32>
      %1149 = arith.mulf %1148, %1130 : vector<14x128xf32>
      %1150 = arith.addf %1114, %1149 : vector<14x128xf32>
      %c211 = arith.constant 211 : index
      %1151 = memref.load %arg2[%c211] : memref<288xf32, #tpu.memory_space<smem>>
      %1152 = vector.broadcast %1151 : f32 to vector<14x128xf32>
      %1153 = arith.mulf %1152, %1130 : vector<14x128xf32>
      %1154 = arith.addf %1118, %1153 : vector<14x128xf32>
      %c247 = arith.constant 247 : index
      %1155 = memref.load %arg2[%c247] : memref<288xf32, #tpu.memory_space<smem>>
      %1156 = vector.broadcast %1155 : f32 to vector<14x128xf32>
      %1157 = arith.mulf %1156, %1130 : vector<14x128xf32>
      %1158 = arith.addf %1122, %1157 : vector<14x128xf32>
      %c283 = arith.constant 283 : index
      %1159 = memref.load %arg2[%c283] : memref<288xf32, #tpu.memory_space<smem>>
      %1160 = vector.broadcast %1159 : f32 to vector<14x128xf32>
      %1161 = arith.mulf %1160, %1130 : vector<14x128xf32>
      %1162 = arith.addf %1126, %1161 : vector<14x128xf32>
      %c1_i32_137 = arith.constant 1 : i32
      %1163 = arith.addi %2, %c1_i32_137 : i32
      %c3_138 = arith.constant 3 : index
      %1164 = arith.index_cast %1163 : i32 to index
      %c2_139 = arith.constant 2 : index
      %c0_140 = arith.constant 0 : index
      %1165 = vector.load %arg1[%c3_138, %1164, %c2_139, %c0_140] : memref<4x16x16x128xf32, #tpu.memory_space<vmem>>, vector<1x1x14x128xf32>
      %1166 = vector.shape_cast %1165 : vector<1x1x14x128xf32> to vector<14x128xf32>
      %c32 = arith.constant 32 : index
      %1167 = memref.load %arg2[%c32] : memref<288xf32, #tpu.memory_space<smem>>
      %1168 = vector.broadcast %1167 : f32 to vector<14x128xf32>
      %1169 = arith.mulf %1168, %1166 : vector<14x128xf32>
      %1170 = arith.addf %1134, %1169 : vector<14x128xf32>
      %c68 = arith.constant 68 : index
      %1171 = memref.load %arg2[%c68] : memref<288xf32, #tpu.memory_space<smem>>
      %1172 = vector.broadcast %1171 : f32 to vector<14x128xf32>
      %1173 = arith.mulf %1172, %1166 : vector<14x128xf32>
      %1174 = arith.addf %1138, %1173 : vector<14x128xf32>
      %c104 = arith.constant 104 : index
      %1175 = memref.load %arg2[%c104] : memref<288xf32, #tpu.memory_space<smem>>
      %1176 = vector.broadcast %1175 : f32 to vector<14x128xf32>
      %1177 = arith.mulf %1176, %1166 : vector<14x128xf32>
      %1178 = arith.addf %1142, %1177 : vector<14x128xf32>
      %c140 = arith.constant 140 : index
      %1179 = memref.load %arg2[%c140] : memref<288xf32, #tpu.memory_space<smem>>
      %1180 = vector.broadcast %1179 : f32 to vector<14x128xf32>
      %1181 = arith.mulf %1180, %1166 : vector<14x128xf32>
      %1182 = arith.addf %1146, %1181 : vector<14x128xf32>
      %c176 = arith.constant 176 : index
      %1183 = memref.load %arg2[%c176] : memref<288xf32, #tpu.memory_space<smem>>
      %1184 = vector.broadcast %1183 : f32 to vector<14x128xf32>
      %1185 = arith.mulf %1184, %1166 : vector<14x128xf32>
      %1186 = arith.addf %1150, %1185 : vector<14x128xf32>
      %c212 = arith.constant 212 : index
      %1187 = memref.load %arg2[%c212] : memref<288xf32, #tpu.memory_space<smem>>
      %1188 = vector.broadcast %1187 : f32 to vector<14x128xf32>
      %1189 = arith.mulf %1188, %1166 : vector<14x128xf32>
      %1190 = arith.addf %1154, %1189 : vector<14x128xf32>
      %c248 = arith.constant 248 : index
      %1191 = memref.load %arg2[%c248] : memref<288xf32, #tpu.memory_space<smem>>
      %1192 = vector.broadcast %1191 : f32 to vector<14x128xf32>
      %1193 = arith.mulf %1192, %1166 : vector<14x128xf32>
      %1194 = arith.addf %1158, %1193 : vector<14x128xf32>
      %c284 = arith.constant 284 : index
      %1195 = memref.load %arg2[%c284] : memref<288xf32, #tpu.memory_space<smem>>
      %1196 = vector.broadcast %1195 : f32 to vector<14x128xf32>
      %1197 = arith.mulf %1196, %1166 : vector<14x128xf32>
      %1198 = arith.addf %1162, %1197 : vector<14x128xf32>
      %c2_i32_141 = arith.constant 2 : i32
      %1199 = arith.addi %2, %c2_i32_141 : i32
      %c3_142 = arith.constant 3 : index
      %1200 = arith.index_cast %1199 : i32 to index
      %c0_143 = arith.constant 0 : index
      %c0_144 = arith.constant 0 : index
      %1201 = vector.load %arg1[%c3_142, %1200, %c0_143, %c0_144] : memref<4x16x16x128xf32, #tpu.memory_space<vmem>>, vector<1x1x14x128xf32>
      %1202 = vector.shape_cast %1201 : vector<1x1x14x128xf32> to vector<14x128xf32>
      %c33 = arith.constant 33 : index
      %1203 = memref.load %arg2[%c33] : memref<288xf32, #tpu.memory_space<smem>>
      %1204 = vector.broadcast %1203 : f32 to vector<14x128xf32>
      %1205 = arith.mulf %1204, %1202 : vector<14x128xf32>
      %1206 = arith.addf %1170, %1205 : vector<14x128xf32>
      %c69 = arith.constant 69 : index
      %1207 = memref.load %arg2[%c69] : memref<288xf32, #tpu.memory_space<smem>>
      %1208 = vector.broadcast %1207 : f32 to vector<14x128xf32>
      %1209 = arith.mulf %1208, %1202 : vector<14x128xf32>
      %1210 = arith.addf %1174, %1209 : vector<14x128xf32>
      %c105 = arith.constant 105 : index
      %1211 = memref.load %arg2[%c105] : memref<288xf32, #tpu.memory_space<smem>>
      %1212 = vector.broadcast %1211 : f32 to vector<14x128xf32>
      %1213 = arith.mulf %1212, %1202 : vector<14x128xf32>
      %1214 = arith.addf %1178, %1213 : vector<14x128xf32>
      %c141 = arith.constant 141 : index
      %1215 = memref.load %arg2[%c141] : memref<288xf32, #tpu.memory_space<smem>>
      %1216 = vector.broadcast %1215 : f32 to vector<14x128xf32>
      %1217 = arith.mulf %1216, %1202 : vector<14x128xf32>
      %1218 = arith.addf %1182, %1217 : vector<14x128xf32>
      %c177 = arith.constant 177 : index
      %1219 = memref.load %arg2[%c177] : memref<288xf32, #tpu.memory_space<smem>>
      %1220 = vector.broadcast %1219 : f32 to vector<14x128xf32>
      %1221 = arith.mulf %1220, %1202 : vector<14x128xf32>
      %1222 = arith.addf %1186, %1221 : vector<14x128xf32>
      %c213 = arith.constant 213 : index
      %1223 = memref.load %arg2[%c213] : memref<288xf32, #tpu.memory_space<smem>>
      %1224 = vector.broadcast %1223 : f32 to vector<14x128xf32>
      %1225 = arith.mulf %1224, %1202 : vector<14x128xf32>
      %1226 = arith.addf %1190, %1225 : vector<14x128xf32>
      %c249 = arith.constant 249 : index
      %1227 = memref.load %arg2[%c249] : memref<288xf32, #tpu.memory_space<smem>>
      %1228 = vector.broadcast %1227 : f32 to vector<14x128xf32>
      %1229 = arith.mulf %1228, %1202 : vector<14x128xf32>
      %1230 = arith.addf %1194, %1229 : vector<14x128xf32>
      %c285 = arith.constant 285 : index
      %1231 = memref.load %arg2[%c285] : memref<288xf32, #tpu.memory_space<smem>>
      %1232 = vector.broadcast %1231 : f32 to vector<14x128xf32>
      %1233 = arith.mulf %1232, %1202 : vector<14x128xf32>
      %1234 = arith.addf %1198, %1233 : vector<14x128xf32>
      %c2_i32_145 = arith.constant 2 : i32
      %1235 = arith.addi %2, %c2_i32_145 : i32
      %c3_146 = arith.constant 3 : index
      %1236 = arith.index_cast %1235 : i32 to index
      %c1_147 = arith.constant 1 : index
      %c0_148 = arith.constant 0 : index
      %1237 = vector.load %arg1[%c3_146, %1236, %c1_147, %c0_148] : memref<4x16x16x128xf32, #tpu.memory_space<vmem>>, vector<1x1x14x128xf32>
      %1238 = vector.shape_cast %1237 : vector<1x1x14x128xf32> to vector<14x128xf32>
      %c34 = arith.constant 34 : index
      %1239 = memref.load %arg2[%c34] : memref<288xf32, #tpu.memory_space<smem>>
      %1240 = vector.broadcast %1239 : f32 to vector<14x128xf32>
      %1241 = arith.mulf %1240, %1238 : vector<14x128xf32>
      %1242 = arith.addf %1206, %1241 : vector<14x128xf32>
      %c70 = arith.constant 70 : index
      %1243 = memref.load %arg2[%c70] : memref<288xf32, #tpu.memory_space<smem>>
      %1244 = vector.broadcast %1243 : f32 to vector<14x128xf32>
      %1245 = arith.mulf %1244, %1238 : vector<14x128xf32>
      %1246 = arith.addf %1210, %1245 : vector<14x128xf32>
      %c106 = arith.constant 106 : index
      %1247 = memref.load %arg2[%c106] : memref<288xf32, #tpu.memory_space<smem>>
      %1248 = vector.broadcast %1247 : f32 to vector<14x128xf32>
      %1249 = arith.mulf %1248, %1238 : vector<14x128xf32>
      %1250 = arith.addf %1214, %1249 : vector<14x128xf32>
      %c142 = arith.constant 142 : index
      %1251 = memref.load %arg2[%c142] : memref<288xf32, #tpu.memory_space<smem>>
      %1252 = vector.broadcast %1251 : f32 to vector<14x128xf32>
      %1253 = arith.mulf %1252, %1238 : vector<14x128xf32>
      %1254 = arith.addf %1218, %1253 : vector<14x128xf32>
      %c178 = arith.constant 178 : index
      %1255 = memref.load %arg2[%c178] : memref<288xf32, #tpu.memory_space<smem>>
      %1256 = vector.broadcast %1255 : f32 to vector<14x128xf32>
      %1257 = arith.mulf %1256, %1238 : vector<14x128xf32>
      %1258 = arith.addf %1222, %1257 : vector<14x128xf32>
      %c214 = arith.constant 214 : index
      %1259 = memref.load %arg2[%c214] : memref<288xf32, #tpu.memory_space<smem>>
      %1260 = vector.broadcast %1259 : f32 to vector<14x128xf32>
      %1261 = arith.mulf %1260, %1238 : vector<14x128xf32>
      %1262 = arith.addf %1226, %1261 : vector<14x128xf32>
      %c250 = arith.constant 250 : index
      %1263 = memref.load %arg2[%c250] : memref<288xf32, #tpu.memory_space<smem>>
      %1264 = vector.broadcast %1263 : f32 to vector<14x128xf32>
      %1265 = arith.mulf %1264, %1238 : vector<14x128xf32>
      %1266 = arith.addf %1230, %1265 : vector<14x128xf32>
      %c286 = arith.constant 286 : index
      %1267 = memref.load %arg2[%c286] : memref<288xf32, #tpu.memory_space<smem>>
      %1268 = vector.broadcast %1267 : f32 to vector<14x128xf32>
      %1269 = arith.mulf %1268, %1238 : vector<14x128xf32>
      %1270 = arith.addf %1234, %1269 : vector<14x128xf32>
      %c2_i32_149 = arith.constant 2 : i32
      %1271 = arith.addi %2, %c2_i32_149 : i32
      %c3_150 = arith.constant 3 : index
      %1272 = arith.index_cast %1271 : i32 to index
      %c2_151 = arith.constant 2 : index
      %c0_152 = arith.constant 0 : index
      %1273 = vector.load %arg1[%c3_150, %1272, %c2_151, %c0_152] : memref<4x16x16x128xf32, #tpu.memory_space<vmem>>, vector<1x1x14x128xf32>
      %1274 = vector.shape_cast %1273 : vector<1x1x14x128xf32> to vector<14x128xf32>
      %c35 = arith.constant 35 : index
      %1275 = memref.load %arg2[%c35] : memref<288xf32, #tpu.memory_space<smem>>
      %1276 = vector.broadcast %1275 : f32 to vector<14x128xf32>
      %1277 = arith.mulf %1276, %1274 : vector<14x128xf32>
      %1278 = arith.addf %1242, %1277 : vector<14x128xf32>
      %c71 = arith.constant 71 : index
      %1279 = memref.load %arg2[%c71] : memref<288xf32, #tpu.memory_space<smem>>
      %1280 = vector.broadcast %1279 : f32 to vector<14x128xf32>
      %1281 = arith.mulf %1280, %1274 : vector<14x128xf32>
      %1282 = arith.addf %1246, %1281 : vector<14x128xf32>
      %c107 = arith.constant 107 : index
      %1283 = memref.load %arg2[%c107] : memref<288xf32, #tpu.memory_space<smem>>
      %1284 = vector.broadcast %1283 : f32 to vector<14x128xf32>
      %1285 = arith.mulf %1284, %1274 : vector<14x128xf32>
      %1286 = arith.addf %1250, %1285 : vector<14x128xf32>
      %c143 = arith.constant 143 : index
      %1287 = memref.load %arg2[%c143] : memref<288xf32, #tpu.memory_space<smem>>
      %1288 = vector.broadcast %1287 : f32 to vector<14x128xf32>
      %1289 = arith.mulf %1288, %1274 : vector<14x128xf32>
      %1290 = arith.addf %1254, %1289 : vector<14x128xf32>
      %c179 = arith.constant 179 : index
      %1291 = memref.load %arg2[%c179] : memref<288xf32, #tpu.memory_space<smem>>
      %1292 = vector.broadcast %1291 : f32 to vector<14x128xf32>
      %1293 = arith.mulf %1292, %1274 : vector<14x128xf32>
      %1294 = arith.addf %1258, %1293 : vector<14x128xf32>
      %c215 = arith.constant 215 : index
      %1295 = memref.load %arg2[%c215] : memref<288xf32, #tpu.memory_space<smem>>
      %1296 = vector.broadcast %1295 : f32 to vector<14x128xf32>
      %1297 = arith.mulf %1296, %1274 : vector<14x128xf32>
      %1298 = arith.addf %1262, %1297 : vector<14x128xf32>
      %c251 = arith.constant 251 : index
      %1299 = memref.load %arg2[%c251] : memref<288xf32, #tpu.memory_space<smem>>
      %1300 = vector.broadcast %1299 : f32 to vector<14x128xf32>
      %1301 = arith.mulf %1300, %1274 : vector<14x128xf32>
      %1302 = arith.addf %1266, %1301 : vector<14x128xf32>
      %c287 = arith.constant 287 : index
      %1303 = memref.load %arg2[%c287] : memref<288xf32, #tpu.memory_space<smem>>
      %1304 = vector.broadcast %1303 : f32 to vector<14x128xf32>
      %1305 = arith.mulf %1304, %1274 : vector<14x128xf32>
      %1306 = arith.addf %1270, %1305 : vector<14x128xf32>
      %c0_153 = arith.constant 0 : index
      %1307 = memref.load %arg3[%c0_153] : memref<8xf32, #tpu.memory_space<smem>>
      %1308 = vector.broadcast %1307 : f32 to vector<14x128xf32>
      %1309 = arith.addf %1278, %1308 : vector<14x128xf32>
      %cst_154 = arith.constant 0.000000e+00 : f32
      %1310 = vector.broadcast %cst_154 : f32 to vector<14x128xf32>
      %1311 = arith.maximumf %1309, %1310 : vector<14x128xf32>
      %c0_155 = arith.constant 0 : index
      %1312 = arith.index_cast %2 : i32 to index
      %c0_156 = arith.constant 0 : index
      %c0_157 = arith.constant 0 : index
      %1313 = vector.load %arg4[%c0_155, %1312, %c0_156, %c0_157] : memref<8x14x14x128xf32, #tpu.memory_space<vmem>>, vector<1x1x14x128xf32>
      %1314 = vector.shape_cast %1313 : vector<1x1x14x128xf32> to vector<14x128xf32>
      %1315 = vector.shape_cast %1311 : vector<14x128xf32> to vector<1x1x14x128xf32>
      tpu.vector_store %arg4[%c0_155, %1312, %c0_156, %c0_157], %1315 {strides = array<i32>} : memref<8x14x14x128xf32, #tpu.memory_space<vmem>>, vector<1x1x14x128xf32>,
      %c1_158 = arith.constant 1 : index
      %1316 = memref.load %arg3[%c1_158] : memref<8xf32, #tpu.memory_space<smem>>
      %1317 = vector.broadcast %1316 : f32 to vector<14x128xf32>
      %1318 = arith.addf %1282, %1317 : vector<14x128xf32>
      %cst_159 = arith.constant 0.000000e+00 : f32
      %1319 = vector.broadcast %cst_159 : f32 to vector<14x128xf32>
      %1320 = arith.maximumf %1318, %1319 : vector<14x128xf32>
      %c1_160 = arith.constant 1 : index
      %1321 = arith.index_cast %2 : i32 to index
      %c0_161 = arith.constant 0 : index
      %c0_162 = arith.constant 0 : index
      %1322 = vector.load %arg4[%c1_160, %1321, %c0_161, %c0_162] : memref<8x14x14x128xf32, #tpu.memory_space<vmem>>, vector<1x1x14x128xf32>
      %1323 = vector.shape_cast %1322 : vector<1x1x14x128xf32> to vector<14x128xf32>
      %1324 = vector.shape_cast %1320 : vector<14x128xf32> to vector<1x1x14x128xf32>
      tpu.vector_store %arg4[%c1_160, %1321, %c0_161, %c0_162], %1324 {strides = array<i32>} : memref<8x14x14x128xf32, #tpu.memory_space<vmem>>, vector<1x1x14x128xf32>,
      %c2_163 = arith.constant 2 : index
      %1325 = memref.load %arg3[%c2_163] : memref<8xf32, #tpu.memory_space<smem>>
      %1326 = vector.broadcast %1325 : f32 to vector<14x128xf32>
      %1327 = arith.addf %1286, %1326 : vector<14x128xf32>
      %cst_164 = arith.constant 0.000000e+00 : f32
      %1328 = vector.broadcast %cst_164 : f32 to vector<14x128xf32>
      %1329 = arith.maximumf %1327, %1328 : vector<14x128xf32>
      %c2_165 = arith.constant 2 : index
      %1330 = arith.index_cast %2 : i32 to index
      %c0_166 = arith.constant 0 : index
      %c0_167 = arith.constant 0 : index
      %1331 = vector.load %arg4[%c2_165, %1330, %c0_166, %c0_167] : memref<8x14x14x128xf32, #tpu.memory_space<vmem>>, vector<1x1x14x128xf32>
      %1332 = vector.shape_cast %1331 : vector<1x1x14x128xf32> to vector<14x128xf32>
      %1333 = vector.shape_cast %1329 : vector<14x128xf32> to vector<1x1x14x128xf32>
      tpu.vector_store %arg4[%c2_165, %1330, %c0_166, %c0_167], %1333 {strides = array<i32>} : memref<8x14x14x128xf32, #tpu.memory_space<vmem>>, vector<1x1x14x128xf32>,
      %c3_168 = arith.constant 3 : index
      %1334 = memref.load %arg3[%c3_168] : memref<8xf32, #tpu.memory_space<smem>>
      %1335 = vector.broadcast %1334 : f32 to vector<14x128xf32>
      %1336 = arith.addf %1290, %1335 : vector<14x128xf32>
      %cst_169 = arith.constant 0.000000e+00 : f32
      %1337 = vector.broadcast %cst_169 : f32 to vector<14x128xf32>
      %1338 = arith.maximumf %1336, %1337 : vector<14x128xf32>
      %c3_170 = arith.constant 3 : index
      %1339 = arith.index_cast %2 : i32 to index
      %c0_171 = arith.constant 0 : index
      %c0_172 = arith.constant 0 : index
      %1340 = vector.load %arg4[%c3_170, %1339, %c0_171, %c0_172] : memref<8x14x14x128xf32, #tpu.memory_space<vmem>>, vector<1x1x14x128xf32>
      %1341 = vector.shape_cast %1340 : vector<1x1x14x128xf32> to vector<14x128xf32>
      %1342 = vector.shape_cast %1338 : vector<14x128xf32> to vector<1x1x14x128xf32>
      tpu.vector_store %arg4[%c3_170, %1339, %c0_171, %c0_172], %1342 {strides = array<i32>} : memref<8x14x14x128xf32, #tpu.memory_space<vmem>>, vector<1x1x14x128xf32>,
      %c4_173 = arith.constant 4 : index
      %1343 = memref.load %arg3[%c4_173] : memref<8xf32, #tpu.memory_space<smem>>
      %1344 = vector.broadcast %1343 : f32 to vector<14x128xf32>
      %1345 = arith.addf %1294, %1344 : vector<14x128xf32>
      %cst_174 = arith.constant 0.000000e+00 : f32
      %1346 = vector.broadcast %cst_174 : f32 to vector<14x128xf32>
      %1347 = arith.maximumf %1345, %1346 : vector<14x128xf32>
      %c4_175 = arith.constant 4 : index
      %1348 = arith.index_cast %2 : i32 to index
      %c0_176 = arith.constant 0 : index
      %c0_177 = arith.constant 0 : index
      %1349 = vector.load %arg4[%c4_175, %1348, %c0_176, %c0_177] : memref<8x14x14x128xf32, #tpu.memory_space<vmem>>, vector<1x1x14x128xf32>
      %1350 = vector.shape_cast %1349 : vector<1x1x14x128xf32> to vector<14x128xf32>
      %1351 = vector.shape_cast %1347 : vector<14x128xf32> to vector<1x1x14x128xf32>
      tpu.vector_store %arg4[%c4_175, %1348, %c0_176, %c0_177], %1351 {strides = array<i32>} : memref<8x14x14x128xf32, #tpu.memory_space<vmem>>, vector<1x1x14x128xf32>,
      %c5_178 = arith.constant 5 : index
      %1352 = memref.load %arg3[%c5_178] : memref<8xf32, #tpu.memory_space<smem>>
      %1353 = vector.broadcast %1352 : f32 to vector<14x128xf32>
      %1354 = arith.addf %1298, %1353 : vector<14x128xf32>
      %cst_179 = arith.constant 0.000000e+00 : f32
      %1355 = vector.broadcast %cst_179 : f32 to vector<14x128xf32>
      %1356 = arith.maximumf %1354, %1355 : vector<14x128xf32>
      %c5_180 = arith.constant 5 : index
      %1357 = arith.index_cast %2 : i32 to index
      %c0_181 = arith.constant 0 : index
      %c0_182 = arith.constant 0 : index
      %1358 = vector.load %arg4[%c5_180, %1357, %c0_181, %c0_182] : memref<8x14x14x128xf32, #tpu.memory_space<vmem>>, vector<1x1x14x128xf32>
      %1359 = vector.shape_cast %1358 : vector<1x1x14x128xf32> to vector<14x128xf32>
      %1360 = vector.shape_cast %1356 : vector<14x128xf32> to vector<1x1x14x128xf32>
      tpu.vector_store %arg4[%c5_180, %1357, %c0_181, %c0_182], %1360 {strides = array<i32>} : memref<8x14x14x128xf32, #tpu.memory_space<vmem>>, vector<1x1x14x128xf32>,
      %c6_183 = arith.constant 6 : index
      %1361 = memref.load %arg3[%c6_183] : memref<8xf32, #tpu.memory_space<smem>>
      %1362 = vector.broadcast %1361 : f32 to vector<14x128xf32>
      %1363 = arith.addf %1302, %1362 : vector<14x128xf32>
      %cst_184 = arith.constant 0.000000e+00 : f32
      %1364 = vector.broadcast %cst_184 : f32 to vector<14x128xf32>
      %1365 = arith.maximumf %1363, %1364 : vector<14x128xf32>
      %c6_185 = arith.constant 6 : index
      %1366 = arith.index_cast %2 : i32 to index
      %c0_186 = arith.constant 0 : index
      %c0_187 = arith.constant 0 : index
      %1367 = vector.load %arg4[%c6_185, %1366, %c0_186, %c0_187] : memref<8x14x14x128xf32, #tpu.memory_space<vmem>>, vector<1x1x14x128xf32>
      %1368 = vector.shape_cast %1367 : vector<1x1x14x128xf32> to vector<14x128xf32>
      %1369 = vector.shape_cast %1365 : vector<14x128xf32> to vector<1x1x14x128xf32>
      tpu.vector_store %arg4[%c6_185, %1366, %c0_186, %c0_187], %1369 {strides = array<i32>} : memref<8x14x14x128xf32, #tpu.memory_space<vmem>>, vector<1x1x14x128xf32>,
      %c7_188 = arith.constant 7 : index
      %1370 = memref.load %arg3[%c7_188] : memref<8xf32, #tpu.memory_space<smem>>
      %1371 = vector.broadcast %1370 : f32 to vector<14x128xf32>
      %1372 = arith.addf %1306, %1371 : vector<14x128xf32>
      %cst_189 = arith.constant 0.000000e+00 : f32
      %1373 = vector.broadcast %cst_189 : f32 to vector<14x128xf32>
      %1374 = arith.maximumf %1372, %1373 : vector<14x128xf32>
      %c7_190 = arith.constant 7 : index
      %1375 = arith.index_cast %2 : i32 to index
      %c0_191 = arith.constant 0 : index
      %c0_192 = arith.constant 0 : index
      %1376 = vector.load %arg4[%c7_190, %1375, %c0_191, %c0_192] : memref<8x14x14x128xf32, #tpu.memory_space<vmem>>, vector<1x1x14x128xf32>
      %1377 = vector.shape_cast %1376 : vector<1x1x14x128xf32> to vector<14x128xf32>
      %1378 = vector.shape_cast %1374 : vector<14x128xf32> to vector<1x1x14x128xf32>
      tpu.vector_store %arg4[%c7_190, %1375, %c0_191, %c0_192], %1378 {strides = array<i32>} : memref<8x14x14x128xf32, #tpu.memory_space<vmem>>, vector<1x1x14x128xf32>,
    }
    %c14_i32_0 = arith.constant 14 : i32
    return
  }
  func.func @transform_0(%arg0: i32) -> (i32, i32, i32, i32) {
    %c0_i32 = arith.constant 0 : i32
    %c0_i32_0 = arith.constant 0 : i32
    %c0_i32_1 = arith.constant 0 : i32
    %c0_i32_2 = arith.constant 0 : i32
    return %c0_i32, %c0_i32_0, %c0_i32_1, %arg0 : i32, i32, i32, i32
  }
  func.func @transform_1(%arg0: i32) -> i32 {
    %c0_i32 = arith.constant 0 : i32
    %c0_i32_0 = arith.constant 0 : i32
    return %c0_i32 : i32
  }
  func.func @transform_2(%arg0: i32) -> i32 {
    %c0_i32 = arith.constant 0 : i32
    %c0_i32_0 = arith.constant 0 : i32
    return %c0_i32 : i32
  }
  func.func @transform_3(%arg0: i32) -> (i32, i32, i32, i32) {
    %c0_i32 = arith.constant 0 : i32
    %c0_i32_0 = arith.constant 0 : i32
    %c0_i32_1 = arith.constant 0 : i32
    %c0_i32_2 = arith.constant 0 : i32
    return %c0_i32, %c0_i32_0, %c0_i32_1, %arg0 : i32, i32, i32, i32
  }
}

</mosaic_0001>

<bundles_post_ra>
// kernel: tpu_custom_call.1
= control target key start
LH: loop header
LB: loop body
LE: loop exit
PB: predicated region body
PF: predicated region fallthrough
CT: control target
= control target key end

     0   :  { %8 = vsyncpa [#allocation3], 0  ;;  %s3507_s0 = inlined_call_operand.hbm [shape: f32[4,16,16,128], index: 0, kind: input, shape index: {}]   ;;  %s3508_s1 = inlined_call_operand.hbm [shape: f32[288], index: 1, kind: input, shape index: {}]   ;;  %s3509_s2 = inlined_call_operand.vmem [shape: f32[8], index: 2, kind: input, shape index: {}]   ;;  %s3510_s3 = inlined_call_operand.vmem [shape: f32[8,14,14,128], index: 3, kind: output, shape index: {}]  }
   0x1   :  { %9 = vsyncpa [#allocation4], 0 }
   0x2   :  { %10 = vsyncpa [#allocation5], 0  ;;  %s2492_s12 = smov [#allocation2]  }
   0x3   :  { %s16_s13 = sshll.u32 %s2492_s12, 4  ;;  %s17_s13 = int_to_ptr.vmem [resolvable:$true] %s16_s13 }
   0x4   :  { %s2446_s14 = scalar_lea.vmem %s17_s13, 16384  ;;  %p2451_p1 = scmp.lt.s32.totalorder %s17_s13, %s17_s13 }
   0x5   :  { %p2447_p0 = scmp.ne.s32.totalorder %s17_s13, %s2446_s14  ;;  %p2452_p2 = scmp.lt.s32.totalorder %s2446_s14, %s2446_s14 }
   0x7   :  { %p2453_p3 = por %p2452_p2, %p2451_p1 }
   0x9   :  { %p2454_p4 = pnand %p2453_p3, %p2447_p0 }
   0xb   :  { %2457 = shalt.err (!%p2454_p4)
}
   0xc   :  { %s2493_s15 = smov 128   ;;  %s2494_s16 = smov 8  }
   0xd   :  { %22 = dma.hbm_to_vmem [thread:$0]  %s3507_s0, 16384, %s17_s13, [#allocation3], %s2493_s15, %s2493_s15, %s2494_s16  }
   0xe   :  { %s2495_s19 = smov [#allocation6]   ;;  %s37_s24 = sshll.u32 %s3509_s2, 4  ;;  %s38_s24 = int_to_ptr.vmem [resolvable:$true] %s37_s24 }
   0xf   :  { %30 = dma.hbm_to_smem %s3508_s1, 48, %s2495_s19, [#allocation4]  }
  0x10   :  { %s2466_s25 = scalar_lea.vmem %s38_s24, 16  ;;  %p2471_p6 = scmp.lt.s32.totalorder %s38_s24, %s38_s24 }
  0x11   :  { %p2467_p5 = scmp.ne.s32.totalorder %s38_s24, %s2466_s25  ;;  %p2472_p7 = scmp.lt.s32.totalorder %s2466_s25, %s2466_s25 }
  0x13   :  { %p2473_p8 = por %p2472_p7, %p2471_p6 }
  0x15   :  { %p2474_p9 = pnand %p2473_p8, %p2467_p5 }
  0x17   :  { %2477 = shalt.err (!%p2474_p9)
}
  0x18   :  { %s2496_s26 = smov [#allocation7]  }
  0x19   :  { %40 = dma.vmem_to_smem %s38_s24, 16, %s2496_s26, [#allocation5]  }
  0x1a   :  { %2482 = dma.done.wait [#allocation3], 16384  }
  0x1b   :  { %2483 = vsyncadd [#allocation3], 4294950912 }
  0x1c   :  { %2484 = dma.done.wait [#allocation4], 48  }
  0x1d   :  { %2485 = vsyncadd [#allocation4], 4294967248 }
  0x1e   :  { %2486 = dma.done.wait [#allocation5], 16  }
  0x1f   :  { %2487 = vsyncadd [#allocation5], 4294967280 }
  0x20   :  { %50 = sfence }
  0x21   :  { %s2526_s0 = smov 0  }
  0x22 LB: > { %s61_s1 = sld [smem:[#allocation6]]  ;;  %s2032_s27 = sshll.u32 %s2490_s0, 4  ;;  %s2490_s0 = sphi %s2526_s0, %s56_s0  }
  0x23   : > { %s2033_s2 = sld [smem:[#allocation6 + $0x24]]  ;;  %s2538_s6 = scalar_lea.vmem [#allocation2], %s2032_s27 }
  0x24   : > { %s2034_s28 = sld [smem:[#allocation6 + $0x48]]  ;;  %v59_v0 = vld [vmem:[%s2538_s6] sm:$0xff]  ;;  %v60_v1 = vld [vmem:[%s2538_s6 + $0x8] sm:$0x3f]  ;;  %s56_s0 = sadd.s32 1, %s2490_s0  }
  0x25   : > { %s2035_s29 = sld [smem:[#allocation6 + $0x6c]]  ;;  %v109_v17 = vld [vmem:[%s2538_s6 + $0x1] sm:$0xff]  ;;  %v110_v18 = vld [vmem:[%s2538_s6 + $0x9] sm:$0x3f]  ;;  %p53_p10 = scmp.ge.s32.totalorder %s56_s0, 14  }
  0x26   : > { %s2036_s30 = sld [smem:[#allocation6 + $0x90]]  ;;  %v159_v59 = vld [vmem:[%s2538_s6 + $0x2] sm:$0xff]  ;;  %v160_v60 = vld [vmem:[%s2538_s6 + $0xa] sm:$0x3f] }
  0x27   : > { %s2532_s4 = sld [smem:[#allocation6 + $0xb4]] }
  0x28   : > { %s2534_s5 = sld [smem:[#allocation6 + $0xd8]]  ;;  %v62_v2 = vstv %s61_s1 }
  0x29   : > { %s2542_s7 = sld [smem:[#allocation6 + $0xfc]]  ;;  %v68_v3 = vstv %s2033_s2  ;;  %v63_v6 = vmul.f32 %v62_v2, %v59_v0  ;;  %v64_v7 = vmul.f32 %v62_v2, %v60_v1 }
  0x2a   : > { %v74_v4 = vstv %s2034_s28  ;;  %s2544_s8 = sld [smem:[#allocation6 + $0x1]]  ;;  %v69_v9 = vmul.f32 %v68_v3, %v59_v0  ;;  %v70_v10 = vmul.f32 %v68_v3, %v60_v1 }
  0x2b   : > { %v80_v5 = vstv %s2035_s29  ;;  %s2546_s9 = sld [smem:[#allocation6 + $0x25]]  ;;  %v75_v11 = vmul.f32 %v74_v4, %v59_v0  ;;  %v76_v13 = vmul.f32 %v74_v4, %v60_v1 }
  0x2c   : > { %v86_v8 = vstv %s2036_s30  ;;  %s2548_s10 = sld [smem:[#allocation6 + $0x49]]  ;;  %v81_v14 = vmul.f32 %v80_v5, %v59_v0  ;;  %v82_v15 = vmul.f32 %v80_v5, %v60_v1 }
  0x2d   : > { %v92_v12 = vstv %s2532_s4  ;;  %s2551_s11 = sld [smem:[#allocation6 + $0x6d]]  ;;  %v87_v19 = vmul.f32 %v86_v8, %v59_v0  ;;  %v88_v20 = vmul.f32 %v86_v8, %v60_v1 }
  0x2e   : > { %v98_v16 = vstv %s2534_s5  ;;  %s2556_s12 = sld [smem:[#allocation6 + $0x91]]  ;;  %v93_v21 = vmul.f32 %v92_v12, %v59_v0  ;;  %v94_v23 = vmul.f32 %v92_v12, %v60_v1 }
  0x2f   : > { %v104_v22 = vstv %s2542_s7  ;;  %s2559_s13 = sld [smem:[#allocation6 + $0xb5]]  ;;  %v99_v24 = vmul.f32 %v98_v16, %v59_v0  ;;  %v100_v25 = vmul.f32 %v98_v16, %v60_v1 }
  0x30   : > { %v112_v26 = vstv %s2544_s8  ;;  %s2562_s14 = sld [smem:[#allocation6 + $0xd9]]  ;;  %v105_v27 = vmul.f32 %v104_v22, %v59_v0  ;;  %v106_v31 = vmul.f32 %v104_v22, %v60_v1 }
  0x31   : > { %v113_v28 = vmul.f32 %v112_v26, %v109_v17  ;;  %v114_v29 = vmul.f32 %v112_v26, %v110_v18  ;;  %v118_v30 = vstv %s2546_s9  ;;  %s2565_s15 = sld [smem:[#allocation6 + $0xfd]] }
  0x32   : > { %v119_v32 = vmul.f32 %v118_v30, %v109_v17  ;;  %v120_v33 = vmul.f32 %v118_v30, %v110_v18  ;;  %v124_v34 = vstv %s2548_s10  ;;  %s2568_s16 = sld [smem:[#allocation6 + $0x2]] }
  0x33   : > { %v115_v35 = vadd.f32 %v113_v28, %v63_v6  ;;  %v116_v36 = vadd.f32 %v114_v29, %v64_v7  ;;  %v125_v37 = vmul.f32 %v124_v34, %v109_v17  ;;  %v126_v38 = vmul.f32 %v124_v34, %v110_v18  ;;  %s2570_s17 = sld [smem:[#allocation6 + $0x26]] }
  0x34   : > { %v121_v39 = vadd.f32 %v119_v32, %v69_v9  ;;  %v122_v40 = vadd.f32 %v120_v33, %v70_v10  ;;  %v130_v41 = vstv %s2551_s11  ;;  %v136_v42 = vstv %s2556_s12  ;;  %s2574_s18 = sld [smem:[#allocation6 + $0x4a]] }
  0x35   : > { %v127_v43 = vadd.f32 %v125_v37, %v75_v11  ;;  %v128_v44 = vadd.f32 %v126_v38, %v76_v13  ;;  %v131_v45 = vmul.f32 %v130_v41, %v109_v17  ;;  %v132_v46 = vmul.f32 %v130_v41, %v110_v18  ;;  %s2576_s19 = sld [smem:[#allocation6 + $0x6e]]  ;;  %v2057_v37 = vld [vmem:[%s2538_s6 + $0x10] sm:$0xff]  ;;  %v2058_v38 = vld [vmem:[%s2538_s6 + $0x18] sm:$0x3f] }
  0x36   : > { %v137_v47 = vmul.f32 %v136_v42, %v109_v17  ;;  %v138_v48 = vmul.f32 %v136_v42, %v110_v18  ;;  %v142_v49 = vstv %s2559_s13  ;;  %v148_v50 = vstv %s2562_s14  ;;  %s2580_s20 = sld [smem:[#allocation6 + $0x92]] }
  0x37   : > { %v133_v51 = vadd.f32 %v131_v45, %v81_v14  ;;  %v134_v52 = vadd.f32 %v132_v46, %v82_v15  ;;  %v143_v53 = vmul.f32 %v142_v49, %v109_v17  ;;  %v144_v54 = vmul.f32 %v142_v49, %v110_v18  ;;  %s2582_s21 = sld [smem:[#allocation6 + $0xb6]] }
  0x38   : > { %v139_v55 = vadd.f32 %v137_v47, %v87_v19  ;;  %v140_v56 = vadd.f32 %v138_v48, %v88_v20  ;;  %v149_v57 = vmul.f32 %v148_v50, %v109_v17  ;;  %v150_v58 = vmul.f32 %v148_v50, %v110_v18  ;;  %s2586_s22 = sld [smem:[#allocation6 + $0xda]] }
  0x39   : > { %v145_v61 = vadd.f32 %v143_v53, %v93_v21  ;;  %v146_v62 = vadd.f32 %v144_v54, %v94_v23  ;;  %v154_v63 = vstv %s2565_s15  ;;  %v162_v0 = vstv %s2568_s16  ;;  %s2590_s23 = sld [smem:[#allocation6 + $0xfe]] }
  0x3a   : > { %v151_v1 = vadd.f32 %v149_v57, %v99_v24  ;;  %v152_v2 = vadd.f32 %v150_v58, %v100_v25  ;;  %v155_v3 = vmul.f32 %v154_v63, %v109_v17  ;;  %v156_v4 = vmul.f32 %v154_v63, %v110_v18  ;;  %s2594_s24 = sld [smem:[#allocation6 + $0x3]] }
  0x3b   : > { %v163_v5 = vmul.f32 %v162_v0, %v159_v59  ;;  %v164_v6 = vmul.f32 %v162_v0, %v160_v60  ;;  %v168_v7 = vstv %s2570_s17  ;;  %v174_v8 = vstv %s2574_s18  ;;  %s2596_s25 = sld [smem:[#allocation6 + $0x27]] }
  0x3c   : > { %v157_v9 = vadd.f32 %v155_v3, %v105_v27  ;;  %v158_v10 = vadd.f32 %v156_v4, %v106_v31  ;;  %v169_v11 = vmul.f32 %v168_v7, %v159_v59  ;;  %v170_v12 = vmul.f32 %v168_v7, %v160_v60  ;;  %s2598_s26 = sld [smem:[#allocation6 + $0x4b]] }
  0x3d   : > { %v165_v13 = vadd.f32 %v163_v5, %v115_v35  ;;  %v166_v14 = vadd.f32 %v164_v6, %v116_v36  ;;  %v175_v15 = vmul.f32 %v174_v8, %v159_v59  ;;  %v176_v16 = vmul.f32 %v174_v8, %v160_v60  ;;  %s2602_s1 = sld [smem:[#allocation6 + $0x6f]] }
  0x3e   : > { %v171_v17 = vadd.f32 %v169_v11, %v121_v39  ;;  %v172_v18 = vadd.f32 %v170_v12, %v122_v40  ;;  %v180_v19 = vstv %s2576_s19  ;;  %v186_v20 = vstv %s2580_s20  ;;  %s2606_s2 = sld [smem:[#allocation6 + $0x93]] }
  0x3f   : > { %v177_v21 = vadd.f32 %v175_v15, %v127_v43  ;;  %v178_v22 = vadd.f32 %v176_v16, %v128_v44  ;;  %v181_v23 = vmul.f32 %v180_v19, %v159_v59  ;;  %v182_v24 = vmul.f32 %v180_v19, %v160_v60  ;;  %s2608_s28 = sld [smem:[#allocation6 + $0xb7]]  ;;  %v2067_v15 = vld [vmem:[%s2538_s6 + $0x11] sm:$0xff]  ;;  %v2068_v16 = vld [vmem:[%s2538_s6 + $0x19] sm:$0x3f] }
  0x40   : > { %v187_v25 = vmul.f32 %v186_v20, %v159_v59  ;;  %v188_v26 = vmul.f32 %v186_v20, %v160_v60  ;;  %v192_v27 = vstv %s2582_s21  ;;  %v198_v28 = vstv %s2586_s22  ;;  %s2612_s29 = sld [smem:[#allocation6 + $0xdb]] }
  0x41   : > { %v183_v29 = vadd.f32 %v181_v23, %v133_v51  ;;  %v184_v30 = vadd.f32 %v182_v24, %v134_v52  ;;  %v193_v31 = vmul.f32 %v192_v27, %v159_v59  ;;  %v194_v32 = vmul.f32 %v192_v27, %v160_v60  ;;  %s2616_s30 = sld [smem:[#allocation6 + $0xff]] }
  0x42   : > { %v189_v33 = vadd.f32 %v187_v25, %v139_v55  ;;  %v190_v34 = vadd.f32 %v188_v26, %v140_v56  ;;  %v199_v35 = vmul.f32 %v198_v28, %v159_v59  ;;  %v200_v36 = vmul.f32 %v198_v28, %v160_v60  ;;  %s2620_s4 = sld [smem:[#allocation6 + $0x4]] }
  0x43   : > { %v195_v39 = vadd.f32 %v193_v31, %v145_v61  ;;  %v196_v40 = vadd.f32 %v194_v32, %v146_v62  ;;  %v204_v41 = vstv %s2590_s23  ;;  %v215_v42 = vstv %s2594_s24  ;;  %s2622_s5 = sld [smem:[#allocation6 + $0x28]] }
  0x44   : > { %v201_v43 = vadd.f32 %v199_v35, %v151_v1  ;;  %v202_v44 = vadd.f32 %v200_v36, %v152_v2  ;;  %v205_v45 = vmul.f32 %v204_v41, %v159_v59  ;;  %v206_v46 = vmul.f32 %v204_v41, %v160_v60  ;;  %s2624_s7 = sld [smem:[#allocation6 + $0x4c]] }
  0x45   : > { %v216_v47 = vmul.f32 %v2057_v37, %v215_v42  ;;  %v217_v48 = vmul.f32 %v2058_v38, %v215_v42  ;;  %v221_v49 = vstv %s2596_s25  ;;  %v227_v50 = vstv %s2598_s26  ;;  %s2628_s8 = sld [smem:[#allocation6 + $0x70]] }
  0x46   : > { %v207_v51 = vadd.f32 %v205_v45, %v157_v9  ;;  %v208_v52 = vadd.f32 %v206_v46, %v158_v10  ;;  %v222_v53 = vmul.f32 %v2057_v37, %v221_v49  ;;  %v223_v54 = vmul.f32 %v2058_v38, %v221_v49  ;;  %s2632_s9 = sld [smem:[#allocation6 + $0x94]] }
  0x47   : > { %v218_v55 = vadd.f32 %v216_v47, %v165_v13  ;;  %v219_v56 = vadd.f32 %v217_v48, %v166_v14  ;;  %v228_v57 = vmul.f32 %v2057_v37, %v227_v50  ;;  %v229_v58 = vmul.f32 %v2058_v38, %v227_v50  ;;  %s2634_s10 = sld [smem:[#allocation6 + $0xb8]] }
  0x48   : > { %v224_v59 = vadd.f32 %v222_v53, %v171_v17  ;;  %v225_v60 = vadd.f32 %v223_v54, %v172_v18  ;;  %v233_v61 = vstv %s2602_s1  ;;  %v239_v62 = vstv %s2606_s2  ;;  %s2638_s11 = sld [smem:[#allocation6 + $0xdc]] }
  0x49   : > { %v230_v63 = vadd.f32 %v228_v57, %v177_v21  ;;  %v231_v0 = vadd.f32 %v229_v58, %v178_v22  ;;  %v234_v1 = vmul.f32 %v2057_v37, %v233_v61  ;;  %v235_v2 = vmul.f32 %v2058_v38, %v233_v61  ;;  %s2642_s12 = sld [smem:[#allocation6 + $0x100]]  ;;  %v2077_v57 = vld [vmem:[%s2538_s6 + $0x12] sm:$0xff]  ;;  %v2078_v58 = vld [vmem:[%s2538_s6 + $0x1a] sm:$0x3f] }
  0x4a   : > { %v240_v3 = vmul.f32 %v2057_v37, %v239_v62  ;;  %v241_v4 = vmul.f32 %v2058_v38, %v239_v62  ;;  %v245_v5 = vstv %s2608_s28  ;;  %v251_v6 = vstv %s2612_s29  ;;  %s2646_s13 = sld [smem:[#allocation6 + $0x5]] }
  0x4b   : > { %v236_v7 = vadd.f32 %v234_v1, %v183_v29  ;;  %v237_v8 = vadd.f32 %v235_v2, %v184_v30  ;;  %v246_v9 = vmul.f32 %v2057_v37, %v245_v5  ;;  %v247_v10 = vmul.f32 %v2058_v38, %v245_v5  ;;  %s2648_s14 = sld [smem:[#allocation6 + $0x29]] }
  0x4c   : > { %v242_v11 = vadd.f32 %v240_v3, %v189_v33  ;;  %v243_v12 = vadd.f32 %v241_v4, %v190_v34  ;;  %v252_v13 = vmul.f32 %v2057_v37, %v251_v6  ;;  %v253_v14 = vmul.f32 %v2058_v38, %v251_v6  ;;  %s2650_s15 = sld [smem:[#allocation6 + $0x4d]] }
  0x4d   : > { %v248_v17 = vadd.f32 %v246_v9, %v195_v39  ;;  %v249_v18 = vadd.f32 %v247_v10, %v196_v40  ;;  %v257_v19 = vstv %s2616_s30  ;;  %v265_v20 = vstv %s2620_s4  ;;  %s2654_s16 = sld [smem:[#allocation6 + $0x71]] }
  0x4e   : > { %v254_v21 = vadd.f32 %v252_v13, %v201_v43  ;;  %v255_v22 = vadd.f32 %v253_v14, %v202_v44  ;;  %v258_v23 = vmul.f32 %v2057_v37, %v257_v19  ;;  %v259_v24 = vmul.f32 %v2058_v38, %v257_v19  ;;  %s2658_s17 = sld [smem:[#allocation6 + $0x95]] }
  0x4f   : > { %v266_v25 = vmul.f32 %v2067_v15, %v265_v20  ;;  %v267_v26 = vmul.f32 %v2068_v16, %v265_v20  ;;  %v271_v27 = vstv %s2622_s5  ;;  %v277_v28 = vstv %s2624_s7  ;;  %s2660_s18 = sld [smem:[#allocation6 + $0xb9]] }
  0x50   : > { %v260_v29 = vadd.f32 %v258_v23, %v207_v51  ;;  %v261_v30 = vadd.f32 %v259_v24, %v208_v52  ;;  %v272_v31 = vmul.f32 %v2067_v15, %v271_v27  ;;  %v273_v32 = vmul.f32 %v2068_v16, %v271_v27  ;;  %s2664_s19 = sld [smem:[#allocation6 + $0xdd]] }
  0x51   : > { %v268_v33 = vadd.f32 %v266_v25, %v218_v55  ;;  %v269_v34 = vadd.f32 %v267_v26, %v219_v56  ;;  %v278_v35 = vmul.f32 %v2067_v15, %v277_v28  ;;  %v279_v36 = vmul.f32 %v2068_v16, %v277_v28  ;;  %s2668_s20 = sld [smem:[#allocation6 + $0x101]] }
  0x52   : > { %v274_v37 = vadd.f32 %v272_v31, %v224_v59  ;;  %v275_v38 = vadd.f32 %v273_v32, %v225_v60  ;;  %v283_v39 = vstv %s2628_s8  ;;  %v289_v40 = vstv %s2632_s9  ;;  %s2672_s21 = sld [smem:[#allocation6 + $0x6]] }
  0x53   : > { %v280_v41 = vadd.f32 %v278_v35, %v230_v63  ;;  %v281_v42 = vadd.f32 %v279_v36, %v231_v0  ;;  %v284_v43 = vmul.f32 %v2067_v15, %v283_v39  ;;  %v285_v44 = vmul.f32 %v2068_v16, %v283_v39  ;;  %s2674_s22 = sld [smem:[#allocation6 + $0x2a]]  ;;  %v2088_v35 = vld [vmem:[%s2538_s6 + $0x20] sm:$0xff]  ;;  %v2089_v36 = vld [vmem:[%s2538_s6 + $0x28] sm:$0x3f] }
  0x54   : > { %v290_v45 = vmul.f32 %v2067_v15, %v289_v40  ;;  %v291_v46 = vmul.f32 %v2068_v16, %v289_v40  ;;  %v295_v47 = vstv %s2634_s10  ;;  %v301_v48 = vstv %s2638_s11  ;;  %s2676_s23 = sld [smem:[#allocation6 + $0x4e]] }
  0x55   : > { %v286_v49 = vadd.f32 %v284_v43, %v236_v7  ;;  %v287_v50 = vadd.f32 %v285_v44, %v237_v8  ;;  %v296_v51 = vmul.f32 %v2067_v15, %v295_v47  ;;  %v297_v52 = vmul.f32 %v2068_v16, %v295_v47  ;;  %s2680_s24 = sld [smem:[#allocation6 + $0x72]] }
  0x56   : > { %v292_v53 = vadd.f32 %v290_v45, %v242_v11  ;;  %v293_v54 = vadd.f32 %v291_v46, %v243_v12  ;;  %v302_v55 = vmul.f32 %v2067_v15, %v301_v48  ;;  %v303_v56 = vmul.f32 %v2068_v16, %v301_v48  ;;  %s2684_s25 = sld [smem:[#allocation6 + $0x96]] }
  0x57   : > { %v298_v59 = vadd.f32 %v296_v51, %v248_v17  ;;  %v299_v60 = vadd.f32 %v297_v52, %v249_v18  ;;  %v307_v61 = vstv %s2642_s12  ;;  %v315_v62 = vstv %s2646_s13  ;;  %s2686_s26 = sld [smem:[#allocation6 + $0xba]] }
  0x58   : > { %v304_v63 = vadd.f32 %v302_v55, %v254_v21  ;;  %v305_v0 = vadd.f32 %v303_v56, %v255_v22  ;;  %v308_v1 = vmul.f32 %v2067_v15, %v307_v61  ;;  %v309_v2 = vmul.f32 %v2068_v16, %v307_v61  ;;  %s2690_s1 = sld [smem:[#allocation6 + $0xde]] }
  0x59   : > { %v316_v3 = vmul.f32 %v2077_v57, %v315_v62  ;;  %v317_v4 = vmul.f32 %v2078_v58, %v315_v62  ;;  %v321_v5 = vstv %s2648_s14  ;;  %v327_v6 = vstv %s2650_s15  ;;  %s2694_s2 = sld [smem:[#allocation6 + $0x102]] }
  0x5a   : > { %v310_v7 = vadd.f32 %v308_v1, %v260_v29  ;;  %v311_v8 = vadd.f32 %v309_v2, %v261_v30  ;;  %v322_v9 = vmul.f32 %v2077_v57, %v321_v5  ;;  %v323_v10 = vmul.f32 %v2078_v58, %v321_v5  ;;  %s2698_s28 = sld [smem:[#allocation6 + $0x7]] }
  0x5b   : > { %v318_v11 = vadd.f32 %v316_v3, %v268_v33  ;;  %v319_v12 = vadd.f32 %v317_v4, %v269_v34  ;;  %v328_v13 = vmul.f32 %v2077_v57, %v327_v6  ;;  %v329_v14 = vmul.f32 %v2078_v58, %v327_v6  ;;  %s2700_s29 = sld [smem:[#allocation6 + $0x2b]] }
  0x5c   : > { %v324_v15 = vadd.f32 %v322_v9, %v274_v37  ;;  %v325_v16 = vadd.f32 %v323_v10, %v275_v38  ;;  %v333_v17 = vstv %s2654_s16  ;;  %v339_v18 = vstv %s2658_s17  ;;  %s2702_s30 = sld [smem:[#allocation6 + $0x4f]] }
  0x5d   : > { %v330_v19 = vadd.f32 %v328_v13, %v280_v41  ;;  %v331_v20 = vadd.f32 %v329_v14, %v281_v42  ;;  %v334_v21 = vmul.f32 %v2077_v57, %v333_v17  ;;  %v335_v22 = vmul.f32 %v2078_v58, %v333_v17  ;;  %s2706_s4 = sld [smem:[#allocation6 + $0x73]]  ;;  %v2098_v13 = vld [vmem:[%s2538_s6 + $0x21] sm:$0xff]  ;;  %v2099_v14 = vld [vmem:[%s2538_s6 + $0x29] sm:$0x3f] }
  0x5e   : > { %v340_v23 = vmul.f32 %v2077_v57, %v339_v18  ;;  %v341_v24 = vmul.f32 %v2078_v58, %v339_v18  ;;  %v345_v25 = vstv %s2660_s18  ;;  %v351_v26 = vstv %s2664_s19  ;;  %s2710_s5 = sld [smem:[#allocation6 + $0x97]] }
  0x5f   : > { %v336_v27 = vadd.f32 %v334_v21, %v286_v49  ;;  %v337_v28 = vadd.f32 %v335_v22, %v287_v50  ;;  %v346_v29 = vmul.f32 %v2077_v57, %v345_v25  ;;  %v347_v30 = vmul.f32 %v2078_v58, %v345_v25  ;;  %s2712_s7 = sld [smem:[#allocation6 + $0xbb]] }
  0x60   : > { %v342_v31 = vadd.f32 %v340_v23, %v292_v53  ;;  %v343_v32 = vadd.f32 %v341_v24, %v293_v54  ;;  %v352_v33 = vmul.f32 %v2077_v57, %v351_v26  ;;  %v353_v34 = vmul.f32 %v2078_v58, %v351_v26  ;;  %s2716_s8 = sld [smem:[#allocation6 + $0xdf]] }
  0x61   : > { %v348_v37 = vadd.f32 %v346_v29, %v298_v59  ;;  %v349_v38 = vadd.f32 %v347_v30, %v299_v60  ;;  %v357_v39 = vstv %s2668_s20  ;;  %v368_v40 = vstv %s2672_s21  ;;  %s2720_s9 = sld [smem:[#allocation6 + $0x103]] }
  0x62   : > { %v354_v41 = vadd.f32 %v352_v33, %v304_v63  ;;  %v355_v42 = vadd.f32 %v353_v34, %v305_v0  ;;  %v358_v43 = vmul.f32 %v2077_v57, %v357_v39  ;;  %v359_v44 = vmul.f32 %v2078_v58, %v357_v39  ;;  %s2724_s10 = sld [smem:[#allocation6 + $0x8]] }
  0x63   : > { %v369_v45 = vmul.f32 %v2088_v35, %v368_v40  ;;  %v370_v46 = vmul.f32 %v2089_v36, %v368_v40  ;;  %v374_v47 = vstv %s2674_s22  ;;  %v380_v48 = vstv %s2676_s23  ;;  %s2726_s11 = sld [smem:[#allocation6 + $0x2c]] }
  0x64   : > { %v360_v49 = vadd.f32 %v358_v43, %v310_v7  ;;  %v361_v50 = vadd.f32 %v359_v44, %v311_v8  ;;  %v375_v51 = vmul.f32 %v2088_v35, %v374_v47  ;;  %v376_v52 = vmul.f32 %v2089_v36, %v374_v47  ;;  %s2728_s12 = sld [smem:[#allocation6 + $0x50]] }
  0x65   : > { %v371_v53 = vadd.f32 %v369_v45, %v318_v11  ;;  %v372_v54 = vadd.f32 %v370_v46, %v319_v12  ;;  %v381_v55 = vmul.f32 %v2088_v35, %v380_v48  ;;  %v382_v56 = vmul.f32 %v2089_v36, %v380_v48  ;;  %s2732_s13 = sld [smem:[#allocation6 + $0x74]] }
  0x66   : > { %v377_v57 = vadd.f32 %v375_v51, %v324_v15  ;;  %v378_v58 = vadd.f32 %v376_v52, %v325_v16  ;;  %v386_v59 = vstv %s2680_s24  ;;  %v392_v60 = vstv %s2684_s25  ;;  %s2736_s14 = sld [smem:[#allocation6 + $0x98]] }
  0x67   : > { %v383_v61 = vadd.f32 %v381_v55, %v330_v19  ;;  %v384_v62 = vadd.f32 %v382_v56, %v331_v20  ;;  %v387_v63 = vmul.f32 %v2088_v35, %v386_v59  ;;  %v388_v0 = vmul.f32 %v2089_v36, %v386_v59  ;;  %s2738_s15 = sld [smem:[#allocation6 + $0xbc]]  ;;  %v2108_v55 = vld [vmem:[%s2538_s6 + $0x22] sm:$0xff]  ;;  %v2109_v56 = vld [vmem:[%s2538_s6 + $0x2a] sm:$0x3f] }
  0x68   : > { %v393_v1 = vmul.f32 %v2088_v35, %v392_v60  ;;  %v394_v2 = vmul.f32 %v2089_v36, %v392_v60  ;;  %v398_v3 = vstv %s2686_s26  ;;  %v404_v4 = vstv %s2690_s1  ;;  %s2742_s16 = sld [smem:[#allocation6 + $0xe0]] }
  0x69   : > { %v389_v5 = vadd.f32 %v387_v63, %v336_v27  ;;  %v390_v6 = vadd.f32 %v388_v0, %v337_v28  ;;  %v399_v7 = vmul.f32 %v2088_v35, %v398_v3  ;;  %v400_v8 = vmul.f32 %v2089_v36, %v398_v3  ;;  %s2746_s17 = sld [smem:[#allocation6 + $0x104]] }
  0x6a   : > { %v395_v9 = vadd.f32 %v393_v1, %v342_v31  ;;  %v396_v10 = vadd.f32 %v394_v2, %v343_v32  ;;  %v405_v11 = vmul.f32 %v2088_v35, %v404_v4  ;;  %v406_v12 = vmul.f32 %v2089_v36, %v404_v4  ;;  %s2750_s18 = sld [smem:[#allocation6 + $0x9]] }
  0x6b   : > { %v401_v15 = vadd.f32 %v399_v7, %v348_v37  ;;  %v402_v16 = vadd.f32 %v400_v8, %v349_v38  ;;  %v410_v17 = vstv %s2694_s2  ;;  %v418_v18 = vstv %s2698_s28  ;;  %s2752_s19 = sld [smem:[#allocation6 + $0x2d]] }
  0x6c   : > { %v407_v19 = vadd.f32 %v405_v11, %v354_v41  ;;  %v408_v20 = vadd.f32 %v406_v12, %v355_v42  ;;  %v411_v21 = vmul.f32 %v2088_v35, %v410_v17  ;;  %v412_v22 = vmul.f32 %v2089_v36, %v410_v17  ;;  %s2754_s20 = sld [smem:[#allocation6 + $0x51]] }
  0x6d   : > { %v419_v23 = vmul.f32 %v2098_v13, %v418_v18  ;;  %v420_v24 = vmul.f32 %v2099_v14, %v418_v18  ;;  %v424_v25 = vstv %s2700_s29  ;;  %v430_v26 = vstv %s2702_s30  ;;  %s2758_s21 = sld [smem:[#allocation6 + $0x75]] }
  0x6e   : > { %v413_v27 = vadd.f32 %v411_v21, %v360_v49  ;;  %v414_v28 = vadd.f32 %v412_v22, %v361_v50  ;;  %v425_v29 = vmul.f32 %v2098_v13, %v424_v25  ;;  %v426_v30 = vmul.f32 %v2099_v14, %v424_v25  ;;  %s2762_s22 = sld [smem:[#allocation6 + $0x99]] }
  0x6f   : > { %v421_v31 = vadd.f32 %v419_v23, %v371_v53  ;;  %v422_v32 = vadd.f32 %v420_v24, %v372_v54  ;;  %v431_v33 = vmul.f32 %v2098_v13, %v430_v26  ;;  %v432_v34 = vmul.f32 %v2099_v14, %v430_v26  ;;  %s2764_s23 = sld [smem:[#allocation6 + $0xbd]] }
  0x70   : > { %v427_v35 = vadd.f32 %v425_v29, %v377_v57  ;;  %v428_v36 = vadd.f32 %v426_v30, %v378_v58  ;;  %v436_v37 = vstv %s2706_s4  ;;  %v442_v38 = vstv %s2710_s5  ;;  %s2768_s24 = sld [smem:[#allocation6 + $0xe1]] }
  0x71   : > { %v433_v39 = vadd.f32 %v431_v33, %v383_v61  ;;  %v434_v40 = vadd.f32 %v432_v34, %v384_v62  ;;  %v437_v41 = vmul.f32 %v2098_v13, %v436_v37  ;;  %v438_v42 = vmul.f32 %v2099_v14, %v436_v37  ;;  %v2119_v33 = vld [vmem:[%s2538_s6 + $0x100] sm:$0xff]  ;;  %v2120_v34 = vld [vmem:[%s2538_s6 + $0x108] sm:$0x3f]  ;;  %s2772_s25 = sld [smem:[#allocation6 + $0x105]] }
  0x72   : > { %v443_v43 = vmul.f32 %v2098_v13, %v442_v38  ;;  %v444_v44 = vmul.f32 %v2099_v14, %v442_v38  ;;  %v448_v45 = vstv %s2712_s7  ;;  %v454_v46 = vstv %s2716_s8  ;;  %s2776_s26 = sld [smem:[#allocation6 + $0xa]] }
  0x73   : > { %v439_v47 = vadd.f32 %v437_v41, %v389_v5  ;;  %v440_v48 = vadd.f32 %v438_v42, %v390_v6  ;;  %v449_v49 = vmul.f32 %v2098_v13, %v448_v45  ;;  %v450_v50 = vmul.f32 %v2099_v14, %v448_v45  ;;  %s2778_s1 = sld [smem:[#allocation6 + $0x2e]] }
  0x74   : > { %v445_v51 = vadd.f32 %v443_v43, %v395_v9  ;;  %v446_v52 = vadd.f32 %v444_v44, %v396_v10  ;;  %v455_v53 = vmul.f32 %v2098_v13, %v454_v46  ;;  %v456_v54 = vmul.f32 %v2099_v14, %v454_v46  ;;  %s2780_s2 = sld [smem:[#allocation6 + $0x52]] }
  0x75   : > { %v451_v57 = vadd.f32 %v449_v49, %v401_v15  ;;  %v452_v58 = vadd.f32 %v450_v50, %v402_v16  ;;  %v460_v59 = vstv %s2720_s9  ;;  %v468_v60 = vstv %s2724_s10  ;;  %s2784_s28 = sld [smem:[#allocation6 + $0x76]] }
  0x76   : > { %v457_v61 = vadd.f32 %v455_v53, %v407_v19  ;;  %v458_v62 = vadd.f32 %v456_v54, %v408_v20  ;;  %v461_v63 = vmul.f32 %v2098_v13, %v460_v59  ;;  %v462_v0 = vmul.f32 %v2099_v14, %v460_v59  ;;  %s2788_s29 = sld [smem:[#allocation6 + $0x9a]] }
  0x77   : > { %v469_v1 = vmul.f32 %v2108_v55, %v468_v60  ;;  %v470_v2 = vmul.f32 %v2109_v56, %v468_v60  ;;  %v474_v3 = vstv %s2726_s11  ;;  %v480_v4 = vstv %s2728_s12  ;;  %s2790_s30 = sld [smem:[#allocation6 + $0xbe]] }
  0x78   : > { %v463_v5 = vadd.f32 %v461_v63, %v413_v27  ;;  %v464_v6 = vadd.f32 %v462_v0, %v414_v28  ;;  %v475_v7 = vmul.f32 %v2108_v55, %v474_v3  ;;  %v476_v8 = vmul.f32 %v2109_v56, %v474_v3  ;;  %s2794_s4 = sld [smem:[#allocation6 + $0xe2]] }
  0x79   : > { %v471_v9 = vadd.f32 %v469_v1, %v421_v31  ;;  %v472_v10 = vadd.f32 %v470_v2, %v422_v32  ;;  %v481_v11 = vmul.f32 %v2108_v55, %v480_v4  ;;  %v482_v12 = vmul.f32 %v2109_v56, %v480_v4  ;;  %s2798_s5 = sld [smem:[#allocation6 + $0x106]] }
  0x7a   : > { %v477_v13 = vadd.f32 %v475_v7, %v427_v35  ;;  %v478_v14 = vadd.f32 %v476_v8, %v428_v36  ;;  %v486_v15 = vstv %s2732_s13  ;;  %v492_v16 = vstv %s2736_s14  ;;  %s2802_s7 = sld [smem:[#allocation6 + $0xb]] }
  0x7b   : > { %v483_v17 = vadd.f32 %v481_v11, %v433_v39  ;;  %v484_v18 = vadd.f32 %v482_v12, %v434_v40  ;;  %v487_v19 = vmul.f32 %v2108_v55, %v486_v15  ;;  %v488_v20 = vmul.f32 %v2109_v56, %v486_v15  ;;  %v2129_v11 = vld [vmem:[%s2538_s6 + $0x101] sm:$0xff]  ;;  %v2130_v12 = vld [vmem:[%s2538_s6 + $0x109] sm:$0x3f]  ;;  %s2804_s8 = sld [smem:[#allocation6 + $0x2f]] }
  0x7c   : > { %v493_v21 = vmul.f32 %v2108_v55, %v492_v16  ;;  %v494_v22 = vmul.f32 %v2109_v56, %v492_v16  ;;  %v498_v23 = vstv %s2738_s15  ;;  %v504_v24 = vstv %s2742_s16  ;;  %s2806_s9 = sld [smem:[#allocation6 + $0x53]] }
  0x7d   : > { %v489_v25 = vadd.f32 %v487_v19, %v439_v47  ;;  %v490_v26 = vadd.f32 %v488_v20, %v440_v48  ;;  %v499_v27 = vmul.f32 %v2108_v55, %v498_v23  ;;  %v500_v28 = vmul.f32 %v2109_v56, %v498_v23  ;;  %s2810_s10 = sld [smem:[#allocation6 + $0x77]] }
  0x7e   : > { %v495_v29 = vadd.f32 %v493_v21, %v445_v51  ;;  %v496_v30 = vadd.f32 %v494_v22, %v446_v52  ;;  %v505_v31 = vmul.f32 %v2108_v55, %v504_v24  ;;  %v506_v32 = vmul.f32 %v2109_v56, %v504_v24  ;;  %s2814_s11 = sld [smem:[#allocation6 + $0x9b]] }
  0x7f   : > { %v501_v35 = vadd.f32 %v499_v27, %v451_v57  ;;  %v502_v36 = vadd.f32 %v500_v28, %v452_v58  ;;  %v510_v37 = vstv %s2746_s17  ;;  %v520_v38 = vstv %s2750_s18  ;;  %s2816_s12 = sld [smem:[#allocation6 + $0xbf]] }
  0x80   : > { %v507_v39 = vadd.f32 %v505_v31, %v457_v61  ;;  %v508_v40 = vadd.f32 %v506_v32, %v458_v62  ;;  %v511_v41 = vmul.f32 %v2108_v55, %v510_v37  ;;  %v512_v42 = vmul.f32 %v2109_v56, %v510_v37  ;;  %s2820_s13 = sld [smem:[#allocation6 + $0xe3]] }
  0x81   : > { %v521_v43 = vmul.f32 %v2119_v33, %v520_v38  ;;  %v522_v44 = vmul.f32 %v2120_v34, %v520_v38  ;;  %v526_v45 = vstv %s2752_s19  ;;  %v532_v46 = vstv %s2754_s20  ;;  %s2824_s14 = sld [smem:[#allocation6 + $0x107]] }
  0x82   : > { %v513_v47 = vadd.f32 %v511_v41, %v463_v5  ;;  %v514_v48 = vadd.f32 %v512_v42, %v464_v6  ;;  %v527_v49 = vmul.f32 %v2119_v33, %v526_v45  ;;  %v528_v50 = vmul.f32 %v2120_v34, %v526_v45  ;;  %s2828_s15 = sld [smem:[#allocation6 + $0xc]] }
  0x83   : > { %v523_v51 = vadd.f32 %v521_v43, %v471_v9  ;;  %v524_v52 = vadd.f32 %v522_v44, %v472_v10  ;;  %v533_v53 = vmul.f32 %v2119_v33, %v532_v46  ;;  %v534_v54 = vmul.f32 %v2120_v34, %v532_v46  ;;  %s2830_s16 = sld [smem:[#allocation6 + $0x30]] }
  0x84   : > { %v529_v55 = vadd.f32 %v527_v49, %v477_v13  ;;  %v530_v56 = vadd.f32 %v528_v50, %v478_v14  ;;  %v538_v57 = vstv %s2758_s21  ;;  %v544_v58 = vstv %s2762_s22  ;;  %s2832_s17 = sld [smem:[#allocation6 + $0x54]] }
  0x85   : > { %v535_v59 = vadd.f32 %v533_v53, %v483_v17  ;;  %v536_v60 = vadd.f32 %v534_v54, %v484_v18  ;;  %v539_v61 = vmul.f32 %v2119_v33, %v538_v57  ;;  %v540_v62 = vmul.f32 %v2120_v34, %v538_v57  ;;  %v2139_v53 = vld [vmem:[%s2538_s6 + $0x102] sm:$0xff]  ;;  %v2140_v54 = vld [vmem:[%s2538_s6 + $0x10a] sm:$0x3f]  ;;  %s2836_s18 = sld [smem:[#allocation6 + $0x78]] }
  0x86   : > { %v545_v63 = vmul.f32 %v2119_v33, %v544_v58  ;;  %v546_v0 = vmul.f32 %v2120_v34, %v544_v58  ;;  %v550_v1 = vstv %s2764_s23  ;;  %v556_v2 = vstv %s2768_s24  ;;  %s2840_s19 = sld [smem:[#allocation6 + $0x9c]] }
  0x87   : > { %v541_v3 = vadd.f32 %v539_v61, %v489_v25  ;;  %v542_v4 = vadd.f32 %v540_v62, %v490_v26  ;;  %v551_v5 = vmul.f32 %v2119_v33, %v550_v1  ;;  %v552_v6 = vmul.f32 %v2120_v34, %v550_v1  ;;  %s2842_s20 = sld [smem:[#allocation6 + $0xc0]] }
  0x88   : > { %v547_v7 = vadd.f32 %v545_v63, %v495_v29  ;;  %v548_v8 = vadd.f32 %v546_v0, %v496_v30  ;;  %v557_v9 = vmul.f32 %v2119_v33, %v556_v2  ;;  %v558_v10 = vmul.f32 %v2120_v34, %v556_v2  ;;  %s2846_s21 = sld [smem:[#allocation6 + $0xe4]] }
  0x89   : > { %v553_v13 = vadd.f32 %v551_v5, %v501_v35  ;;  %v554_v14 = vadd.f32 %v552_v6, %v502_v36  ;;  %v562_v15 = vstv %s2772_s25  ;;  %v570_v16 = vstv %s2776_s26  ;;  %s2850_s22 = sld [smem:[#allocation6 + $0x108]] }
  0x8a   : > { %v559_v17 = vadd.f32 %v557_v9, %v507_v39  ;;  %v560_v18 = vadd.f32 %v558_v10, %v508_v40  ;;  %v563_v19 = vmul.f32 %v2119_v33, %v562_v15  ;;  %v564_v20 = vmul.f32 %v2120_v34, %v562_v15  ;;  %s2854_s23 = sld [smem:[#allocation6 + $0xd]] }
  0x8b   : > { %v571_v21 = vmul.f32 %v2129_v11, %v570_v16  ;;  %v572_v22 = vmul.f32 %v2130_v12, %v570_v16  ;;  %v576_v23 = vstv %s2778_s1  ;;  %v582_v24 = vstv %s2780_s2  ;;  %s2856_s24 = sld [smem:[#allocation6 + $0x31]] }
  0x8c   : > { %v565_v25 = vadd.f32 %v563_v19, %v513_v47  ;;  %v566_v26 = vadd.f32 %v564_v20, %v514_v48  ;;  %v577_v27 = vmul.f32 %v2129_v11, %v576_v23  ;;  %v578_v28 = vmul.f32 %v2130_v12, %v576_v23  ;;  %s2858_s25 = sld [smem:[#allocation6 + $0x55]] }
  0x8d   : > { %v573_v29 = vadd.f32 %v571_v21, %v523_v51  ;;  %v574_v30 = vadd.f32 %v572_v22, %v524_v52  ;;  %v583_v31 = vmul.f32 %v2129_v11, %v582_v24  ;;  %v584_v32 = vmul.f32 %v2130_v12, %v582_v24  ;;  %s2862_s26 = sld [smem:[#allocation6 + $0x79]] }
  0x8e   : > { %v579_v33 = vadd.f32 %v577_v27, %v529_v55  ;;  %v580_v34 = vadd.f32 %v578_v28, %v530_v56  ;;  %v588_v35 = vstv %s2784_s28  ;;  %v594_v36 = vstv %s2788_s29  ;;  %s2866_s1 = sld [smem:[#allocation6 + $0x9d]] }
  0x8f   : > { %v585_v37 = vadd.f32 %v583_v31, %v535_v59  ;;  %v586_v38 = vadd.f32 %v584_v32, %v536_v60  ;;  %v589_v39 = vmul.f32 %v2129_v11, %v588_v35  ;;  %v590_v40 = vmul.f32 %v2130_v12, %v588_v35  ;;  %v2150_v31 = vld [vmem:[%s2538_s6 + $0x110] sm:$0xff]  ;;  %v2151_v32 = vld [vmem:[%s2538_s6 + $0x118] sm:$0x3f]  ;;  %s2868_s2 = sld [smem:[#allocation6 + $0xc1]] }
  0x90   : > { %v595_v41 = vmul.f32 %v2129_v11, %v594_v36  ;;  %v596_v42 = vmul.f32 %v2130_v12, %v594_v36  ;;  %v600_v43 = vstv %s2790_s30  ;;  %v606_v44 = vstv %s2794_s4  ;;  %s2872_s28 = sld [smem:[#allocation6 + $0xe5]] }
  0x91   : > { %v591_v45 = vadd.f32 %v589_v39, %v541_v3  ;;  %v592_v46 = vadd.f32 %v590_v40, %v542_v4  ;;  %v601_v47 = vmul.f32 %v2129_v11, %v600_v43  ;;  %v602_v48 = vmul.f32 %v2130_v12, %v600_v43  ;;  %s2876_s29 = sld [smem:[#allocation6 + $0x109]] }
  0x92   : > { %v597_v49 = vadd.f32 %v595_v41, %v547_v7  ;;  %v598_v50 = vadd.f32 %v596_v42, %v548_v8  ;;  %v607_v51 = vmul.f32 %v2129_v11, %v606_v44  ;;  %v608_v52 = vmul.f32 %v2130_v12, %v606_v44  ;;  %s2880_s30 = sld [smem:[#allocation6 + $0xe]] }
  0x93   : > { %v603_v55 = vadd.f32 %v601_v47, %v553_v13  ;;  %v604_v56 = vadd.f32 %v602_v48, %v554_v14  ;;  %v612_v57 = vstv %s2798_s5  ;;  %v620_v58 = vstv %s2802_s7  ;;  %s2882_s4 = sld [smem:[#allocation6 + $0x32]] }
  0x94   : > { %v609_v59 = vadd.f32 %v607_v51, %v559_v17  ;;  %v610_v60 = vadd.f32 %v608_v52, %v560_v18  ;;  %v613_v61 = vmul.f32 %v2129_v11, %v612_v57  ;;  %v614_v62 = vmul.f32 %v2130_v12, %v612_v57  ;;  %s2884_s5 = sld [smem:[#allocation6 + $0x56]] }
  0x95   : > { %v621_v63 = vmul.f32 %v2139_v53, %v620_v58  ;;  %v622_v0 = vmul.f32 %v2140_v54, %v620_v58  ;;  %v626_v1 = vstv %s2804_s8  ;;  %v632_v2 = vstv %s2806_s9  ;;  %s2888_s7 = sld [smem:[#allocation6 + $0x7a]] }
  0x96   : > { %v615_v3 = vadd.f32 %v613_v61, %v565_v25  ;;  %v616_v4 = vadd.f32 %v614_v62, %v566_v26  ;;  %v627_v5 = vmul.f32 %v2139_v53, %v626_v1  ;;  %v628_v6 = vmul.f32 %v2140_v54, %v626_v1  ;;  %s2892_s8 = sld [smem:[#allocation6 + $0x9e]] }
  0x97   : > { %v623_v7 = vadd.f32 %v621_v63, %v573_v29  ;;  %v624_v8 = vadd.f32 %v622_v0, %v574_v30  ;;  %v633_v9 = vmul.f32 %v2139_v53, %v632_v2  ;;  %v634_v10 = vmul.f32 %v2140_v54, %v632_v2  ;;  %s2894_s9 = sld [smem:[#allocation6 + $0xc2]] }
  0x98   : > { %v629_v11 = vadd.f32 %v627_v5, %v579_v33  ;;  %v630_v12 = vadd.f32 %v628_v6, %v580_v34  ;;  %v638_v13 = vstv %s2810_s10  ;;  %v644_v14 = vstv %s2814_s11  ;;  %s2898_s10 = sld [smem:[#allocation6 + $0xe6]] }
  0x99   : > { %v635_v15 = vadd.f32 %v633_v9, %v585_v37  ;;  %v636_v16 = vadd.f32 %v634_v10, %v586_v38  ;;  %v639_v17 = vmul.f32 %v2139_v53, %v638_v13  ;;  %v640_v18 = vmul.f32 %v2140_v54, %v638_v13  ;;  %v2160_v9 = vld [vmem:[%s2538_s6 + $0x111] sm:$0xff]  ;;  %v2161_v10 = vld [vmem:[%s2538_s6 + $0x119] sm:$0x3f]  ;;  %s2902_s11 = sld [smem:[#allocation6 + $0x10a]] }
  0x9a   : > { %v645_v19 = vmul.f32 %v2139_v53, %v644_v14  ;;  %v646_v20 = vmul.f32 %v2140_v54, %v644_v14  ;;  %v650_v21 = vstv %s2816_s12  ;;  %v656_v22 = vstv %s2820_s13  ;;  %s2906_s12 = sld [smem:[#allocation6 + $0xf]] }
  0x9b   : > { %v641_v23 = vadd.f32 %v639_v17, %v591_v45  ;;  %v642_v24 = vadd.f32 %v640_v18, %v592_v46  ;;  %v651_v25 = vmul.f32 %v2139_v53, %v650_v21  ;;  %v652_v26 = vmul.f32 %v2140_v54, %v650_v21  ;;  %s2908_s13 = sld [smem:[#allocation6 + $0x33]] }
  0x9c   : > { %v647_v27 = vadd.f32 %v645_v19, %v597_v49  ;;  %v648_v28 = vadd.f32 %v646_v20, %v598_v50  ;;  %v657_v29 = vmul.f32 %v2139_v53, %v656_v22  ;;  %v658_v30 = vmul.f32 %v2140_v54, %v656_v22 }
  0x9d   : > { %v653_v33 = vadd.f32 %v651_v25, %v603_v55  ;;  %v654_v34 = vadd.f32 %v652_v26, %v604_v56  ;;  %v662_v35 = vstv %s2824_s14  ;;  %v672_v36 = vstv %s2828_s15  ;;  %s2910_s14 = sld [smem:[#allocation6 + $0x57]] }
  0x9e   : > { %v659_v37 = vadd.f32 %v657_v29, %v609_v59  ;;  %v660_v38 = vadd.f32 %v658_v30, %v610_v60  ;;  %v663_v39 = vmul.f32 %v2139_v53, %v662_v35  ;;  %v664_v40 = vmul.f32 %v2140_v54, %v662_v35  ;;  %s2914_s15 = sld [smem:[#allocation6 + $0x7b]] }
  0x9f   : > { %v673_v41 = vmul.f32 %v2150_v31, %v672_v36  ;;  %v674_v42 = vmul.f32 %v2151_v32, %v672_v36  ;;  %v678_v43 = vstv %s2830_s16  ;;  %v684_v44 = vstv %s2832_s17  ;;  %s2918_s16 = sld [smem:[#allocation6 + $0x9f]] }
  0xa0   : > { %v665_v45 = vadd.f32 %v663_v39, %v615_v3  ;;  %v666_v46 = vadd.f32 %v664_v40, %v616_v4  ;;  %v679_v47 = vmul.f32 %v2150_v31, %v678_v43  ;;  %v680_v48 = vmul.f32 %v2151_v32, %v678_v43  ;;  %s2920_s17 = sld [smem:[#allocation6 + $0xc3]] }
  0xa1   : > { %v675_v49 = vadd.f32 %v673_v41, %v623_v7  ;;  %v676_v50 = vadd.f32 %v674_v42, %v624_v8  ;;  %v685_v51 = vmul.f32 %v2150_v31, %v684_v44  ;;  %v686_v52 = vmul.f32 %v2151_v32, %v684_v44 }
  0xa2   : > { %v681_v53 = vadd.f32 %v679_v47, %v629_v11  ;;  %v682_v54 = vadd.f32 %v680_v48, %v630_v12  ;;  %v690_v55 = vstv %s2836_s18  ;;  %v696_v56 = vstv %s2840_s19  ;;  %s2924_s18 = sld [smem:[#allocation6 + $0xe7]] }
  0xa3   : > { %v687_v57 = vadd.f32 %v685_v51, %v635_v15  ;;  %v688_v58 = vadd.f32 %v686_v52, %v636_v16  ;;  %v691_v59 = vmul.f32 %v2150_v31, %v690_v55  ;;  %v692_v60 = vmul.f32 %v2151_v32, %v690_v55  ;;  %v2170_v51 = vld [vmem:[%s2538_s6 + $0x112] sm:$0xff]  ;;  %v2171_v52 = vld [vmem:[%s2538_s6 + $0x11a] sm:$0x3f]  ;;  %s2928_s19 = sld [smem:[#allocation6 + $0x10b]] }
  0xa4   : > { %v697_v61 = vmul.f32 %v2150_v31, %v696_v56  ;;  %v698_v62 = vmul.f32 %v2151_v32, %v696_v56  ;;  %v702_v63 = vstv %s2842_s20  ;;  %v708_v0 = vstv %s2846_s21  ;;  %s2932_s20 = sld [smem:[#allocation6 + $0x10]] }
  0xa5   : > { %v693_v1 = vadd.f32 %v691_v59, %v641_v23  ;;  %v694_v2 = vadd.f32 %v692_v60, %v642_v24  ;;  %v703_v3 = vmul.f32 %v2150_v31, %v702_v63  ;;  %v704_v4 = vmul.f32 %v2151_v32, %v702_v63  ;;  %s2934_s21 = sld [smem:[#allocation6 + $0x34]] }
  0xa6   : > { %v699_v5 = vadd.f32 %v697_v61, %v647_v27  ;;  %v700_v6 = vadd.f32 %v698_v62, %v648_v28  ;;  %v709_v7 = vmul.f32 %v2150_v31, %v708_v0  ;;  %v710_v8 = vmul.f32 %v2151_v32, %v708_v0 }
  0xa7   : > { %v705_v11 = vadd.f32 %v703_v3, %v653_v33  ;;  %v706_v12 = vadd.f32 %v704_v4, %v654_v34  ;;  %v714_v13 = vstv %s2850_s22  ;;  %v722_v14 = vstv %s2854_s23  ;;  %s2936_s22 = sld [smem:[#allocation6 + $0x58]] }
  0xa8   : > { %v711_v15 = vadd.f32 %v709_v7, %v659_v37  ;;  %v712_v16 = vadd.f32 %v710_v8, %v660_v38  ;;  %v715_v17 = vmul.f32 %v2150_v31, %v714_v13  ;;  %v716_v18 = vmul.f32 %v2151_v32, %v714_v13  ;;  %s2940_s23 = sld [smem:[#allocation6 + $0x7c]] }
  0xa9   : > { %v723_v19 = vmul.f32 %v2160_v9, %v722_v14  ;;  %v724_v20 = vmul.f32 %v2161_v10, %v722_v14  ;;  %v728_v21 = vstv %s2856_s24  ;;  %v734_v22 = vstv %s2858_s25  ;;  %s2944_s24 = sld [smem:[#allocation6 + $0xa0]] }
  0xaa   : > { %v717_v23 = vadd.f32 %v715_v17, %v665_v45  ;;  %v718_v24 = vadd.f32 %v716_v18, %v666_v46  ;;  %v729_v25 = vmul.f32 %v2160_v9, %v728_v21  ;;  %v730_v26 = vmul.f32 %v2161_v10, %v728_v21  ;;  %s2946_s25 = sld [smem:[#allocation6 + $0xc4]] }
  0xab   : > { %v725_v27 = vadd.f32 %v723_v19, %v675_v49  ;;  %v726_v28 = vadd.f32 %v724_v20, %v676_v50  ;;  %v735_v29 = vmul.f32 %v2160_v9, %v734_v22  ;;  %v736_v30 = vmul.f32 %v2161_v10, %v734_v22 }
  0xac   : > { %v731_v31 = vadd.f32 %v729_v25, %v681_v53  ;;  %v732_v32 = vadd.f32 %v730_v26, %v682_v54  ;;  %v740_v33 = vstv %s2862_s26  ;;  %v746_v34 = vstv %s2866_s1  ;;  %s2950_s26 = sld [smem:[#allocation6 + $0xe8]] }
  0xad   : > { %v737_v35 = vadd.f32 %v735_v29, %v687_v57  ;;  %v738_v36 = vadd.f32 %v736_v30, %v688_v58  ;;  %v741_v37 = vmul.f32 %v2160_v9, %v740_v33  ;;  %v742_v38 = vmul.f32 %v2161_v10, %v740_v33  ;;  %v2181_v29 = vld [vmem:[%s2538_s6 + $0x120] sm:$0xff]  ;;  %v2182_v30 = vld [vmem:[%s2538_s6 + $0x128] sm:$0x3f]  ;;  %s2954_s1 = sld [smem:[#allocation6 + $0x10c]] }
  0xae   : > { %v747_v39 = vmul.f32 %v2160_v9, %v746_v34  ;;  %v748_v40 = vmul.f32 %v2161_v10, %v746_v34  ;;  %v752_v41 = vstv %s2868_s2  ;;  %v758_v42 = vstv %s2872_s28  ;;  %s2958_s2 = sld [smem:[#allocation6 + $0x11]] }
  0xaf   : > { %v743_v43 = vadd.f32 %v741_v37, %v693_v1  ;;  %v744_v44 = vadd.f32 %v742_v38, %v694_v2  ;;  %v753_v45 = vmul.f32 %v2160_v9, %v752_v41  ;;  %v754_v46 = vmul.f32 %v2161_v10, %v752_v41  ;;  %s2960_s28 = sld [smem:[#allocation6 + $0x35]] }
  0xb0   : > { %v749_v47 = vadd.f32 %v747_v39, %v699_v5  ;;  %v750_v48 = vadd.f32 %v748_v40, %v700_v6  ;;  %v759_v49 = vmul.f32 %v2160_v9, %v758_v42  ;;  %v760_v50 = vmul.f32 %v2161_v10, %v758_v42 }
  0xb1   : > { %v755_v53 = vadd.f32 %v753_v45, %v705_v11  ;;  %v756_v54 = vadd.f32 %v754_v46, %v706_v12  ;;  %v764_v55 = vstv %s2876_s29  ;;  %v772_v56 = vstv %s2880_s30  ;;  %s2962_s29 = sld [smem:[#allocation6 + $0x59]] }
  0xb2   : > { %v761_v57 = vadd.f32 %v759_v49, %v711_v15  ;;  %v762_v58 = vadd.f32 %v760_v50, %v712_v16  ;;  %v765_v59 = vmul.f32 %v2160_v9, %v764_v55  ;;  %v766_v60 = vmul.f32 %v2161_v10, %v764_v55  ;;  %s2966_s30 = sld [smem:[#allocation6 + $0x7d]] }
  0xb3   : > { %v773_v61 = vmul.f32 %v2170_v51, %v772_v56  ;;  %v774_v62 = vmul.f32 %v2171_v52, %v772_v56  ;;  %v778_v63 = vstv %s2882_s4  ;;  %v784_v0 = vstv %s2884_s5  ;;  %s2970_s4 = sld [smem:[#allocation6 + $0xa1]] }
  0xb4   : > { %v767_v1 = vadd.f32 %v765_v59, %v717_v23  ;;  %v768_v2 = vadd.f32 %v766_v60, %v718_v24  ;;  %v779_v3 = vmul.f32 %v2170_v51, %v778_v63  ;;  %v780_v4 = vmul.f32 %v2171_v52, %v778_v63  ;;  %s2972_s5 = sld [smem:[#allocation6 + $0xc5]] }
  0xb5   : > { %v775_v5 = vadd.f32 %v773_v61, %v725_v27  ;;  %v776_v6 = vadd.f32 %v774_v62, %v726_v28  ;;  %v785_v7 = vmul.f32 %v2170_v51, %v784_v0  ;;  %v786_v8 = vmul.f32 %v2171_v52, %v784_v0 }
  0xb6   : > { %v781_v9 = vadd.f32 %v779_v3, %v731_v31  ;;  %v782_v10 = vadd.f32 %v780_v4, %v732_v32  ;;  %v790_v11 = vstv %s2888_s7  ;;  %v796_v12 = vstv %s2892_s8  ;;  %s2976_s7 = sld [smem:[#allocation6 + $0xe9]] }
  0xb7   : > { %v787_v13 = vadd.f32 %v785_v7, %v737_v35  ;;  %v788_v14 = vadd.f32 %v786_v8, %v738_v36  ;;  %v791_v15 = vmul.f32 %v2170_v51, %v790_v11  ;;  %v792_v16 = vmul.f32 %v2171_v52, %v790_v11  ;;  %v2191_v7 = vld [vmem:[%s2538_s6 + $0x121] sm:$0xff]  ;;  %v2192_v8 = vld [vmem:[%s2538_s6 + $0x129] sm:$0x3f]  ;;  %s2980_s8 = sld [smem:[#allocation6 + $0x10d]] }
  0xb8   : > { %v797_v17 = vmul.f32 %v2170_v51, %v796_v12  ;;  %v798_v18 = vmul.f32 %v2171_v52, %v796_v12  ;;  %v802_v19 = vstv %s2894_s9  ;;  %v808_v20 = vstv %s2898_s10  ;;  %s2984_s9 = sld [smem:[#allocation6 + $0x12]] }
  0xb9   : > { %v793_v21 = vadd.f32 %v791_v15, %v743_v43  ;;  %v794_v22 = vadd.f32 %v792_v16, %v744_v44  ;;  %v803_v23 = vmul.f32 %v2170_v51, %v802_v19  ;;  %v804_v24 = vmul.f32 %v2171_v52, %v802_v19  ;;  %s2986_s10 = sld [smem:[#allocation6 + $0x36]] }
  0xba   : > { %v799_v25 = vadd.f32 %v797_v17, %v749_v47  ;;  %v800_v26 = vadd.f32 %v798_v18, %v750_v48  ;;  %v809_v27 = vmul.f32 %v2170_v51, %v808_v20  ;;  %v810_v28 = vmul.f32 %v2171_v52, %v808_v20 }
  0xbb   : > { %v805_v31 = vadd.f32 %v803_v23, %v755_v53  ;;  %v806_v32 = vadd.f32 %v804_v24, %v756_v54  ;;  %v814_v33 = vstv %s2902_s11  ;;  %v824_v34 = vstv %s2906_s12  ;;  %s2988_s11 = sld [smem:[#allocation6 + $0x5a]] }
  0xbc   : > { %v811_v35 = vadd.f32 %v809_v27, %v761_v57  ;;  %v812_v36 = vadd.f32 %v810_v28, %v762_v58  ;;  %v815_v37 = vmul.f32 %v2170_v51, %v814_v33  ;;  %v816_v38 = vmul.f32 %v2171_v52, %v814_v33  ;;  %s2992_s12 = sld [smem:[#allocation6 + $0x7e]] }
  0xbd   : > { %v825_v39 = vmul.f32 %v2181_v29, %v824_v34  ;;  %v826_v40 = vmul.f32 %v2182_v30, %v824_v34  ;;  %v830_v41 = vstv %s2908_s13  ;;  %v836_v42 = vstv %s2910_s14  ;;  %s2996_s13 = sld [smem:[#allocation6 + $0xa2]] }
  0xbe   : > { %v817_v43 = vadd.f32 %v815_v37, %v767_v1  ;;  %v818_v44 = vadd.f32 %v816_v38, %v768_v2  ;;  %v831_v45 = vmul.f32 %v2181_v29, %v830_v41  ;;  %v832_v46 = vmul.f32 %v2182_v30, %v830_v41  ;;  %s2998_s14 = sld [smem:[#allocation6 + $0xc6]] }
  0xbf   : > { %v827_v47 = vadd.f32 %v825_v39, %v775_v5  ;;  %v828_v48 = vadd.f32 %v826_v40, %v776_v6  ;;  %v837_v49 = vmul.f32 %v2181_v29, %v836_v42  ;;  %v838_v50 = vmul.f32 %v2182_v30, %v836_v42 }
  0xc0   : > { %v833_v51 = vadd.f32 %v831_v45, %v781_v9  ;;  %v834_v52 = vadd.f32 %v832_v46, %v782_v10  ;;  %v842_v53 = vstv %s2914_s15  ;;  %v848_v54 = vstv %s2918_s16  ;;  %s3002_s15 = sld [smem:[#allocation6 + $0xea]] }
  0xc1   : > { %v839_v55 = vadd.f32 %v837_v49, %v787_v13  ;;  %v840_v56 = vadd.f32 %v838_v50, %v788_v14  ;;  %v843_v57 = vmul.f32 %v2181_v29, %v842_v53  ;;  %v844_v58 = vmul.f32 %v2182_v30, %v842_v53  ;;  %v2201_v49 = vld [vmem:[%s2538_s6 + $0x122] sm:$0xff]  ;;  %v2202_v50 = vld [vmem:[%s2538_s6 + $0x12a] sm:$0x3f]  ;;  %s3006_s16 = sld [smem:[#allocation6 + $0x10e]] }
  0xc2   : > { %v849_v59 = vmul.f32 %v2181_v29, %v848_v54  ;;  %v850_v60 = vmul.f32 %v2182_v30, %v848_v54  ;;  %v854_v61 = vstv %s2920_s17  ;;  %v860_v62 = vstv %s2924_s18  ;;  %s3010_s17 = sld [smem:[#allocation6 + $0x13]] }
  0xc3   : > { %v845_v63 = vadd.f32 %v843_v57, %v793_v21  ;;  %v846_v0 = vadd.f32 %v844_v58, %v794_v22  ;;  %v855_v1 = vmul.f32 %v2181_v29, %v854_v61  ;;  %v856_v2 = vmul.f32 %v2182_v30, %v854_v61  ;;  %s3012_s18 = sld [smem:[#allocation6 + $0x37]] }
  0xc4   : > { %v851_v3 = vadd.f32 %v849_v59, %v799_v25  ;;  %v852_v4 = vadd.f32 %v850_v60, %v800_v26  ;;  %v861_v5 = vmul.f32 %v2181_v29, %v860_v62  ;;  %v862_v6 = vmul.f32 %v2182_v30, %v860_v62 }
  0xc5   : > { %v857_v9 = vadd.f32 %v855_v1, %v805_v31  ;;  %v858_v10 = vadd.f32 %v856_v2, %v806_v32  ;;  %v866_v11 = vstv %s2928_s19  ;;  %v874_v12 = vstv %s2932_s20  ;;  %s3014_s19 = sld [smem:[#allocation6 + $0x5b]] }
  0xc6   : > { %v863_v13 = vadd.f32 %v861_v5, %v811_v35  ;;  %v864_v14 = vadd.f32 %v862_v6, %v812_v36  ;;  %v867_v15 = vmul.f32 %v2181_v29, %v866_v11  ;;  %v868_v16 = vmul.f32 %v2182_v30, %v866_v11  ;;  %s3018_s20 = sld [smem:[#allocation6 + $0x7f]] }
  0xc7   : > { %v875_v17 = vmul.f32 %v2191_v7, %v874_v12  ;;  %v876_v18 = vmul.f32 %v2192_v8, %v874_v12  ;;  %v880_v19 = vstv %s2934_s21  ;;  %v886_v20 = vstv %s2936_s22  ;;  %s3022_s21 = sld [smem:[#allocation6 + $0xa3]] }
  0xc8   : > { %v869_v21 = vadd.f32 %v867_v15, %v817_v43  ;;  %v870_v22 = vadd.f32 %v868_v16, %v818_v44  ;;  %v881_v23 = vmul.f32 %v2191_v7, %v880_v19  ;;  %v882_v24 = vmul.f32 %v2192_v8, %v880_v19  ;;  %s3024_s22 = sld [smem:[#allocation6 + $0xc7]] }
  0xc9   : > { %v877_v25 = vadd.f32 %v875_v17, %v827_v47  ;;  %v878_v26 = vadd.f32 %v876_v18, %v828_v48  ;;  %v887_v27 = vmul.f32 %v2191_v7, %v886_v20  ;;  %v888_v28 = vmul.f32 %v2192_v8, %v886_v20 }
  0xca   : > { %v883_v29 = vadd.f32 %v881_v23, %v833_v51  ;;  %v884_v30 = vadd.f32 %v882_v24, %v834_v52  ;;  %v892_v31 = vstv %s2940_s23  ;;  %v898_v32 = vstv %s2944_s24  ;;  %s3028_s23 = sld [smem:[#allocation6 + $0xeb]] }
  0xcb   : > { %v889_v33 = vadd.f32 %v887_v27, %v839_v55  ;;  %v890_v34 = vadd.f32 %v888_v28, %v840_v56  ;;  %v893_v35 = vmul.f32 %v2191_v7, %v892_v31  ;;  %v894_v36 = vmul.f32 %v2192_v8, %v892_v31  ;;  %v2212_v27 = vld [vmem:[%s2538_s6 + $0x200] sm:$0xff]  ;;  %v2213_v28 = vld [vmem:[%s2538_s6 + $0x208] sm:$0x3f]  ;;  %s3032_s24 = sld [smem:[#allocation6 + $0x10f]] }
  0xcc   : > { %v899_v37 = vmul.f32 %v2191_v7, %v898_v32  ;;  %v900_v38 = vmul.f32 %v2192_v8, %v898_v32  ;;  %v904_v39 = vstv %s2946_s25  ;;  %v910_v40 = vstv %s2950_s26  ;;  %s3036_s25 = sld [smem:[#allocation6 + $0x14]] }
  0xcd   : > { %v895_v41 = vadd.f32 %v893_v35, %v845_v63  ;;  %v896_v42 = vadd.f32 %v894_v36, %v846_v0  ;;  %v905_v43 = vmul.f32 %v2191_v7, %v904_v39  ;;  %v906_v44 = vmul.f32 %v2192_v8, %v904_v39  ;;  %s3038_s26 = sld [smem:[#allocation6 + $0x38]] }
  0xce   : > { %v901_v45 = vadd.f32 %v899_v37, %v851_v3  ;;  %v902_v46 = vadd.f32 %v900_v38, %v852_v4  ;;  %v911_v47 = vmul.f32 %v2191_v7, %v910_v40  ;;  %v912_v48 = vmul.f32 %v2192_v8, %v910_v40 }
  0xcf   : > { %v907_v51 = vadd.f32 %v905_v43, %v857_v9  ;;  %v908_v52 = vadd.f32 %v906_v44, %v858_v10  ;;  %v916_v53 = vstv %s2954_s1  ;;  %v924_v54 = vstv %s2958_s2  ;;  %s3040_s1 = sld [smem:[#allocation6 + $0x5c]] }
  0xd0   : > { %v913_v55 = vadd.f32 %v911_v47, %v863_v13  ;;  %v914_v56 = vadd.f32 %v912_v48, %v864_v14  ;;  %v917_v57 = vmul.f32 %v2191_v7, %v916_v53  ;;  %v918_v58 = vmul.f32 %v2192_v8, %v916_v53  ;;  %s3044_s2 = sld [smem:[#allocation6 + $0x80]] }
  0xd1   : > { %v925_v59 = vmul.f32 %v2201_v49, %v924_v54  ;;  %v926_v60 = vmul.f32 %v2202_v50, %v924_v54  ;;  %v930_v61 = vstv %s2960_s28  ;;  %v936_v62 = vstv %s2962_s29  ;;  %s3048_s28 = sld [smem:[#allocation6 + $0xa4]] }
  0xd2   : > { %v919_v63 = vadd.f32 %v917_v57, %v869_v21  ;;  %v920_v0 = vadd.f32 %v918_v58, %v870_v22  ;;  %v931_v1 = vmul.f32 %v2201_v49, %v930_v61  ;;  %v932_v2 = vmul.f32 %v2202_v50, %v930_v61  ;;  %s3050_s29 = sld [smem:[#allocation6 + $0xc8]] }
  0xd3   : > { %v927_v3 = vadd.f32 %v925_v59, %v877_v25  ;;  %v928_v4 = vadd.f32 %v926_v60, %v878_v26  ;;  %v937_v5 = vmul.f32 %v2201_v49, %v936_v62  ;;  %v938_v6 = vmul.f32 %v2202_v50, %v936_v62 }
  0xd4   : > { %v933_v7 = vadd.f32 %v931_v1, %v883_v29  ;;  %v934_v8 = vadd.f32 %v932_v2, %v884_v30  ;;  %v942_v9 = vstv %s2966_s30  ;;  %v948_v10 = vstv %s2970_s4  ;;  %s3054_s30 = sld [smem:[#allocation6 + $0xec]] }
  0xd5   : > { %v939_v11 = vadd.f32 %v937_v5, %v889_v33  ;;  %v940_v12 = vadd.f32 %v938_v6, %v890_v34  ;;  %v943_v13 = vmul.f32 %v2201_v49, %v942_v9  ;;  %v944_v14 = vmul.f32 %v2202_v50, %v942_v9  ;;  %v2222_v5 = vld [vmem:[%s2538_s6 + $0x201] sm:$0xff]  ;;  %v2223_v6 = vld [vmem:[%s2538_s6 + $0x209] sm:$0x3f]  ;;  %s3058_s4 = sld [smem:[#allocation6 + $0x110]] }
  0xd6   : > { %v949_v15 = vmul.f32 %v2201_v49, %v948_v10  ;;  %v950_v16 = vmul.f32 %v2202_v50, %v948_v10  ;;  %v954_v17 = vstv %s2972_s5  ;;  %v960_v18 = vstv %s2976_s7  ;;  %s3062_s5 = sld [smem:[#allocation6 + $0x15]] }
  0xd7   : > { %v945_v19 = vadd.f32 %v943_v13, %v895_v41  ;;  %v946_v20 = vadd.f32 %v944_v14, %v896_v42  ;;  %v955_v21 = vmul.f32 %v2201_v49, %v954_v17  ;;  %v956_v22 = vmul.f32 %v2202_v50, %v954_v17  ;;  %s3064_s7 = sld [smem:[#allocation6 + $0x39]] }
  0xd8   : > { %v951_v23 = vadd.f32 %v949_v15, %v901_v45  ;;  %v952_v24 = vadd.f32 %v950_v16, %v902_v46  ;;  %v961_v25 = vmul.f32 %v2201_v49, %v960_v18  ;;  %v962_v26 = vmul.f32 %v2202_v50, %v960_v18 }
  0xd9   : > { %v957_v29 = vadd.f32 %v955_v21, %v907_v51  ;;  %v958_v30 = vadd.f32 %v956_v22, %v908_v52  ;;  %v966_v31 = vstv %s2980_s8  ;;  %v976_v32 = vstv %s2984_s9  ;;  %s3066_s8 = sld [smem:[#allocation6 + $0x5d]] }
  0xda   : > { %v963_v33 = vadd.f32 %v961_v25, %v913_v55  ;;  %v964_v34 = vadd.f32 %v962_v26, %v914_v56  ;;  %v967_v35 = vmul.f32 %v2201_v49, %v966_v31  ;;  %v968_v36 = vmul.f32 %v2202_v50, %v966_v31  ;;  %s3070_s9 = sld [smem:[#allocation6 + $0x81]] }
  0xdb   : > { %v977_v37 = vmul.f32 %v2212_v27, %v976_v32  ;;  %v978_v38 = vmul.f32 %v2213_v28, %v976_v32  ;;  %v982_v39 = vstv %s2986_s10  ;;  %v988_v40 = vstv %s2988_s11  ;;  %s3074_s10 = sld [smem:[#allocation6 + $0xa5]] }
  0xdc   : > { %v969_v41 = vadd.f32 %v967_v35, %v919_v63  ;;  %v970_v42 = vadd.f32 %v968_v36, %v920_v0  ;;  %v983_v43 = vmul.f32 %v2212_v27, %v982_v39  ;;  %v984_v44 = vmul.f32 %v2213_v28, %v982_v39  ;;  %s3076_s11 = sld [smem:[#allocation6 + $0xc9]] }
  0xdd   : > { %v979_v45 = vadd.f32 %v977_v37, %v927_v3  ;;  %v980_v46 = vadd.f32 %v978_v38, %v928_v4  ;;  %v989_v47 = vmul.f32 %v2212_v27, %v988_v40  ;;  %v990_v48 = vmul.f32 %v2213_v28, %v988_v40 }
  0xde   : > { %v985_v49 = vadd.f32 %v983_v43, %v933_v7  ;;  %v986_v50 = vadd.f32 %v984_v44, %v934_v8  ;;  %v994_v51 = vstv %s2992_s12  ;;  %v1000_v52 = vstv %s2996_s13  ;;  %s3080_s12 = sld [smem:[#allocation6 + $0xed]] }
  0xdf   : > { %v991_v53 = vadd.f32 %v989_v47, %v939_v11  ;;  %v992_v54 = vadd.f32 %v990_v48, %v940_v12  ;;  %v995_v55 = vmul.f32 %v2212_v27, %v994_v51  ;;  %v996_v56 = vmul.f32 %v2213_v28, %v994_v51  ;;  %v2232_v47 = vld [vmem:[%s2538_s6 + $0x202] sm:$0xff]  ;;  %v2233_v48 = vld [vmem:[%s2538_s6 + $0x20a] sm:$0x3f]  ;;  %s3084_s13 = sld [smem:[#allocation6 + $0x111]] }
  0xe0   : > { %v1001_v57 = vmul.f32 %v2212_v27, %v1000_v52  ;;  %v1002_v58 = vmul.f32 %v2213_v28, %v1000_v52  ;;  %v1006_v59 = vstv %s2998_s14  ;;  %v1012_v60 = vstv %s3002_s15  ;;  %s3088_s14 = sld [smem:[#allocation6 + $0x16]] }
  0xe1   : > { %v997_v61 = vadd.f32 %v995_v55, %v945_v19  ;;  %v998_v62 = vadd.f32 %v996_v56, %v946_v20  ;;  %v1007_v63 = vmul.f32 %v2212_v27, %v1006_v59  ;;  %v1008_v0 = vmul.f32 %v2213_v28, %v1006_v59  ;;  %s3090_s15 = sld [smem:[#allocation6 + $0x3a]] }
  0xe2   : > { %v1003_v1 = vadd.f32 %v1001_v57, %v951_v23  ;;  %v1004_v2 = vadd.f32 %v1002_v58, %v952_v24  ;;  %v1013_v3 = vmul.f32 %v2212_v27, %v1012_v60  ;;  %v1014_v4 = vmul.f32 %v2213_v28, %v1012_v60 }
  0xe3   : > { %v1009_v7 = vadd.f32 %v1007_v63, %v957_v29  ;;  %v1010_v8 = vadd.f32 %v1008_v0, %v958_v30  ;;  %v1018_v9 = vstv %s3006_s16  ;;  %v1026_v10 = vstv %s3010_s17  ;;  %s3092_s16 = sld [smem:[#allocation6 + $0x5e]] }
  0xe4   : > { %v1015_v11 = vadd.f32 %v1013_v3, %v963_v33  ;;  %v1016_v12 = vadd.f32 %v1014_v4, %v964_v34  ;;  %v1019_v13 = vmul.f32 %v2212_v27, %v1018_v9  ;;  %v1020_v14 = vmul.f32 %v2213_v28, %v1018_v9  ;;  %s3096_s17 = sld [smem:[#allocation6 + $0x82]] }
  0xe5   : > { %v1027_v15 = vmul.f32 %v2222_v5, %v1026_v10  ;;  %v1028_v16 = vmul.f32 %v2223_v6, %v1026_v10  ;;  %v1032_v17 = vstv %s3012_s18  ;;  %v1038_v18 = vstv %s3014_s19  ;;  %s3100_s18 = sld [smem:[#allocation6 + $0xa6]] }
  0xe6   : > { %v1021_v19 = vadd.f32 %v1019_v13, %v969_v41  ;;  %v1022_v20 = vadd.f32 %v1020_v14, %v970_v42  ;;  %v1033_v21 = vmul.f32 %v2222_v5, %v1032_v17  ;;  %v1034_v22 = vmul.f32 %v2223_v6, %v1032_v17  ;;  %s3102_s19 = sld [smem:[#allocation6 + $0xca]] }
  0xe7   : > { %v1029_v23 = vadd.f32 %v1027_v15, %v979_v45  ;;  %v1030_v24 = vadd.f32 %v1028_v16, %v980_v46  ;;  %v1039_v25 = vmul.f32 %v2222_v5, %v1038_v18  ;;  %v1040_v26 = vmul.f32 %v2223_v6, %v1038_v18 }
  0xe8   : > { %v1035_v27 = vadd.f32 %v1033_v21, %v985_v49  ;;  %v1036_v28 = vadd.f32 %v1034_v22, %v986_v50  ;;  %v1044_v29 = vstv %s3018_s20  ;;  %v1050_v30 = vstv %s3022_s21  ;;  %s3106_s20 = sld [smem:[#allocation6 + $0xee]] }
  0xe9   : > { %v1041_v31 = vadd.f32 %v1039_v25, %v991_v53  ;;  %v1042_v32 = vadd.f32 %v1040_v26, %v992_v54  ;;  %v1045_v33 = vmul.f32 %v2222_v5, %v1044_v29  ;;  %v1046_v34 = vmul.f32 %v2223_v6, %v1044_v29  ;;  %v2243_v25 = vld [vmem:[%s2538_s6 + $0x210] sm:$0xff]  ;;  %v2244_v26 = vld [vmem:[%s2538_s6 + $0x218] sm:$0x3f]  ;;  %s3110_s21 = sld [smem:[#allocation6 + $0x112]] }
  0xea   : > { %v1051_v35 = vmul.f32 %v2222_v5, %v1050_v30  ;;  %v1052_v36 = vmul.f32 %v2223_v6, %v1050_v30  ;;  %v1056_v37 = vstv %s3024_s22  ;;  %v1062_v38 = vstv %s3028_s23  ;;  %s3114_s22 = sld [smem:[#allocation6 + $0x17]] }
  0xeb   : > { %v1047_v39 = vadd.f32 %v1045_v33, %v997_v61  ;;  %v1048_v40 = vadd.f32 %v1046_v34, %v998_v62  ;;  %v1057_v41 = vmul.f32 %v2222_v5, %v1056_v37  ;;  %v1058_v42 = vmul.f32 %v2223_v6, %v1056_v37  ;;  %s3116_s23 = sld [smem:[#allocation6 + $0x3b]] }
  0xec   : > { %v1053_v43 = vadd.f32 %v1051_v35, %v1003_v1  ;;  %v1054_v44 = vadd.f32 %v1052_v36, %v1004_v2  ;;  %v1063_v45 = vmul.f32 %v2222_v5, %v1062_v38  ;;  %v1064_v46 = vmul.f32 %v2223_v6, %v1062_v38 }
  0xed   : > { %v1059_v49 = vadd.f32 %v1057_v41, %v1009_v7  ;;  %v1060_v50 = vadd.f32 %v1058_v42, %v1010_v8  ;;  %v1068_v51 = vstv %s3032_s24  ;;  %v1076_v52 = vstv %s3036_s25  ;;  %s3118_s24 = sld [smem:[#allocation6 + $0x5f]] }
  0xee   : > { %v1065_v53 = vadd.f32 %v1063_v45, %v1015_v11  ;;  %v1066_v54 = vadd.f32 %v1064_v46, %v1016_v12  ;;  %v1069_v55 = vmul.f32 %v2222_v5, %v1068_v51  ;;  %v1070_v56 = vmul.f32 %v2223_v6, %v1068_v51  ;;  %s3122_s25 = sld [smem:[#allocation6 + $0x83]] }
  0xef   : > { %v1077_v57 = vmul.f32 %v2232_v47, %v1076_v52  ;;  %v1078_v58 = vmul.f32 %v2233_v48, %v1076_v52  ;;  %v1082_v59 = vstv %s3038_s26  ;;  %v1088_v60 = vstv %s3040_s1  ;;  %s3126_s26 = sld [smem:[#allocation6 + $0xa7]] }
  0xf0   : > { %v1071_v61 = vadd.f32 %v1069_v55, %v1021_v19  ;;  %v1072_v62 = vadd.f32 %v1070_v56, %v1022_v20  ;;  %v1083_v63 = vmul.f32 %v2232_v47, %v1082_v59  ;;  %v1084_v0 = vmul.f32 %v2233_v48, %v1082_v59  ;;  %s3128_s1 = sld [smem:[#allocation6 + $0xcb]] }
  0xf1   : > { %v1079_v1 = vadd.f32 %v1077_v57, %v1029_v23  ;;  %v1080_v2 = vadd.f32 %v1078_v58, %v1030_v24  ;;  %v1089_v3 = vmul.f32 %v2232_v47, %v1088_v60  ;;  %v1090_v4 = vmul.f32 %v2233_v48, %v1088_v60 }
  0xf2   : > { %v1085_v5 = vadd.f32 %v1083_v63, %v1035_v27  ;;  %v1086_v6 = vadd.f32 %v1084_v0, %v1036_v28  ;;  %v1094_v7 = vstv %s3044_s2  ;;  %v1100_v8 = vstv %s3048_s28  ;;  %s3132_s2 = sld [smem:[#allocation6 + $0xef]] }
  0xf3   : > { %v1091_v9 = vadd.f32 %v1089_v3, %v1041_v31  ;;  %v1092_v10 = vadd.f32 %v1090_v4, %v1042_v32  ;;  %v1095_v11 = vmul.f32 %v2232_v47, %v1094_v7  ;;  %v1096_v12 = vmul.f32 %v2233_v48, %v1094_v7  ;;  %v2253_v3 = vld [vmem:[%s2538_s6 + $0x211] sm:$0xff]  ;;  %v2254_v4 = vld [vmem:[%s2538_s6 + $0x219] sm:$0x3f]  ;;  %s3136_s28 = sld [smem:[#allocation6 + $0x113]] }
  0xf4   : > { %v1101_v13 = vmul.f32 %v2232_v47, %v1100_v8  ;;  %v1102_v14 = vmul.f32 %v2233_v48, %v1100_v8  ;;  %v1106_v15 = vstv %s3050_s29  ;;  %v1112_v16 = vstv %s3054_s30  ;;  %s3140_s29 = sld [smem:[#allocation6 + $0x18]] }
  0xf5   : > { %v1097_v17 = vadd.f32 %v1095_v11, %v1047_v39  ;;  %v1098_v18 = vadd.f32 %v1096_v12, %v1048_v40  ;;  %v1107_v19 = vmul.f32 %v2232_v47, %v1106_v15  ;;  %v1108_v20 = vmul.f32 %v2233_v48, %v1106_v15  ;;  %s3142_s30 = sld [smem:[#allocation6 + $0x3c]] }
  0xf6   : > { %v1103_v21 = vadd.f32 %v1101_v13, %v1053_v43  ;;  %v1104_v22 = vadd.f32 %v1102_v14, %v1054_v44  ;;  %v1113_v23 = vmul.f32 %v2232_v47, %v1112_v16  ;;  %v1114_v24 = vmul.f32 %v2233_v48, %v1112_v16 }
  0xf7   : > { %v1109_v27 = vadd.f32 %v1107_v19, %v1059_v49  ;;  %v1110_v28 = vadd.f32 %v1108_v20, %v1060_v50  ;;  %v1118_v29 = vstv %s3058_s4  ;;  %v1128_v30 = vstv %s3062_s5  ;;  %s3144_s4 = sld [smem:[#allocation6 + $0x60]] }
  0xf8   : > { %v1115_v31 = vadd.f32 %v1113_v23, %v1065_v53  ;;  %v1116_v32 = vadd.f32 %v1114_v24, %v1066_v54  ;;  %v1119_v33 = vmul.f32 %v2232_v47, %v1118_v29  ;;  %v1120_v34 = vmul.f32 %v2233_v48, %v1118_v29  ;;  %s3148_s5 = sld [smem:[#allocation6 + $0x84]] }
  0xf9   : > { %v1129_v35 = vmul.f32 %v2243_v25, %v1128_v30  ;;  %v1130_v36 = vmul.f32 %v2244_v26, %v1128_v30  ;;  %v1134_v37 = vstv %s3064_s7  ;;  %v1140_v38 = vstv %s3066_s8  ;;  %s3152_s7 = sld [smem:[#allocation6 + $0xa8]] }
  0xfa   : > { %v1121_v39 = vadd.f32 %v1119_v33, %v1071_v61  ;;  %v1122_v40 = vadd.f32 %v1120_v34, %v1072_v62  ;;  %v1135_v41 = vmul.f32 %v2243_v25, %v1134_v37  ;;  %v1136_v42 = vmul.f32 %v2244_v26, %v1134_v37  ;;  %s3154_s8 = sld [smem:[#allocation6 + $0xcc]] }
  0xfb   : > { %v1131_v43 = vadd.f32 %v1129_v35, %v1079_v1  ;;  %v1132_v44 = vadd.f32 %v1130_v36, %v1080_v2  ;;  %v1141_v45 = vmul.f32 %v2243_v25, %v1140_v38  ;;  %v1142_v46 = vmul.f32 %v2244_v26, %v1140_v38 }
  0xfc   : > { %v1137_v47 = vadd.f32 %v1135_v41, %v1085_v5  ;;  %v1138_v48 = vadd.f32 %v1136_v42, %v1086_v6  ;;  %v1146_v49 = vstv %s3070_s9  ;;  %v1152_v50 = vstv %s3074_s10  ;;  %s3158_s9 = sld [smem:[#allocation6 + $0xf0]] }
  0xfd   : > { %v1143_v51 = vadd.f32 %v1141_v45, %v1091_v9  ;;  %v1144_v52 = vadd.f32 %v1142_v46, %v1092_v10  ;;  %v1147_v53 = vmul.f32 %v2243_v25, %v1146_v49  ;;  %v1148_v54 = vmul.f32 %v2244_v26, %v1146_v49  ;;  %v2263_v45 = vld [vmem:[%s2538_s6 + $0x212] sm:$0xff]  ;;  %v2264_v46 = vld [vmem:[%s2538_s6 + $0x21a] sm:$0x3f]  ;;  %s3162_s10 = sld [smem:[#allocation6 + $0x114]] }
  0xfe   : > { %v1153_v55 = vmul.f32 %v2243_v25, %v1152_v50  ;;  %v1154_v56 = vmul.f32 %v2244_v26, %v1152_v50  ;;  %v1158_v57 = vstv %s3076_s11  ;;  %v1164_v58 = vstv %s3080_s12  ;;  %s3166_s11 = sld [smem:[#allocation6 + $0x19]] }
  0xff   : > { %v1149_v59 = vadd.f32 %v1147_v53, %v1097_v17  ;;  %v1150_v60 = vadd.f32 %v1148_v54, %v1098_v18  ;;  %v1159_v61 = vmul.f32 %v2243_v25, %v1158_v57  ;;  %v1160_v62 = vmul.f32 %v2244_v26, %v1158_v57  ;;  %s3168_s12 = sld [smem:[#allocation6 + $0x3d]] }
 0x100   : > { %v1155_v63 = vadd.f32 %v1153_v55, %v1103_v21  ;;  %v1156_v0 = vadd.f32 %v1154_v56, %v1104_v22  ;;  %v1165_v1 = vmul.f32 %v2243_v25, %v1164_v58  ;;  %v1166_v2 = vmul.f32 %v2244_v26, %v1164_v58 }
 0x101   : > { %v1161_v5 = vadd.f32 %v1159_v61, %v1109_v27  ;;  %v1162_v6 = vadd.f32 %v1160_v62, %v1110_v28  ;;  %v1170_v7 = vstv %s3084_s13  ;;  %v1178_v8 = vstv %s3088_s14  ;;  %s3170_s13 = sld [smem:[#allocation6 + $0x61]] }
 0x102   : > { %v1167_v9 = vadd.f32 %v1165_v1, %v1115_v31  ;;  %v1168_v10 = vadd.f32 %v1166_v2, %v1116_v32  ;;  %v1171_v11 = vmul.f32 %v2243_v25, %v1170_v7  ;;  %v1172_v12 = vmul.f32 %v2244_v26, %v1170_v7  ;;  %s3174_s14 = sld [smem:[#allocation6 + $0x85]] }
 0x103   : > { %v1179_v13 = vmul.f32 %v2253_v3, %v1178_v8  ;;  %v1180_v14 = vmul.f32 %v2254_v4, %v1178_v8  ;;  %v1184_v15 = vstv %s3090_s15  ;;  %v1190_v16 = vstv %s3092_s16  ;;  %s3178_s15 = sld [smem:[#allocation6 + $0xa9]] }
 0x104   : > { %v1173_v17 = vadd.f32 %v1171_v11, %v1121_v39  ;;  %v1174_v18 = vadd.f32 %v1172_v12, %v1122_v40  ;;  %v1185_v19 = vmul.f32 %v2253_v3, %v1184_v15  ;;  %v1186_v20 = vmul.f32 %v2254_v4, %v1184_v15  ;;  %s3180_s16 = sld [smem:[#allocation6 + $0xcd]] }
 0x105   : > { %v1181_v21 = vadd.f32 %v1179_v13, %v1131_v43  ;;  %v1182_v22 = vadd.f32 %v1180_v14, %v1132_v44  ;;  %v1191_v23 = vmul.f32 %v2253_v3, %v1190_v16  ;;  %v1192_v24 = vmul.f32 %v2254_v4, %v1190_v16 }
 0x106   : > { %v1187_v25 = vadd.f32 %v1185_v19, %v1137_v47  ;;  %v1188_v26 = vadd.f32 %v1186_v20, %v1138_v48  ;;  %v1196_v27 = vstv %s3096_s17  ;;  %v1202_v28 = vstv %s3100_s18  ;;  %s3184_s17 = sld [smem:[#allocation6 + $0xf1]] }
 0x107   : > { %v1193_v29 = vadd.f32 %v1191_v23, %v1143_v51  ;;  %v1194_v30 = vadd.f32 %v1192_v24, %v1144_v52  ;;  %v1197_v31 = vmul.f32 %v2253_v3, %v1196_v27  ;;  %v1198_v32 = vmul.f32 %v2254_v4, %v1196_v27  ;;  %v2274_v23 = vld [vmem:[%s2538_s6 + $0x220] sm:$0xff]  ;;  %v2275_v24 = vld [vmem:[%s2538_s6 + $0x228] sm:$0x3f]  ;;  %s3188_s18 = sld [smem:[#allocation6 + $0x115]] }
 0x108   : > { %v1203_v33 = vmul.f32 %v2253_v3, %v1202_v28  ;;  %v1204_v34 = vmul.f32 %v2254_v4, %v1202_v28  ;;  %v1208_v35 = vstv %s3102_s19  ;;  %v1214_v36 = vstv %s3106_s20  ;;  %s3192_s19 = sld [smem:[#allocation6 + $0x1a]] }
 0x109   : > { %v1199_v37 = vadd.f32 %v1197_v31, %v1149_v59  ;;  %v1200_v38 = vadd.f32 %v1198_v32, %v1150_v60  ;;  %v1209_v39 = vmul.f32 %v2253_v3, %v1208_v35  ;;  %v1210_v40 = vmul.f32 %v2254_v4, %v1208_v35  ;;  %s3194_s20 = sld [smem:[#allocation6 + $0x3e]] }
 0x10a   : > { %v1205_v41 = vadd.f32 %v1203_v33, %v1155_v63  ;;  %v1206_v42 = vadd.f32 %v1204_v34, %v1156_v0  ;;  %v1215_v43 = vmul.f32 %v2253_v3, %v1214_v36  ;;  %v1216_v44 = vmul.f32 %v2254_v4, %v1214_v36 }
 0x10b   : > { %v1211_v47 = vadd.f32 %v1209_v39, %v1161_v5  ;;  %v1212_v48 = vadd.f32 %v1210_v40, %v1162_v6  ;;  %v1220_v49 = vstv %s3110_s21  ;;  %v1228_v50 = vstv %s3114_s22  ;;  %s3196_s21 = sld [smem:[#allocation6 + $0x62]] }
 0x10c   : > { %v1217_v51 = vadd.f32 %v1215_v43, %v1167_v9  ;;  %v1218_v52 = vadd.f32 %v1216_v44, %v1168_v10  ;;  %v1221_v53 = vmul.f32 %v2253_v3, %v1220_v49  ;;  %v1222_v54 = vmul.f32 %v2254_v4, %v1220_v49  ;;  %s3200_s22 = sld [smem:[#allocation6 + $0x86]] }
 0x10d   : > { %v1229_v55 = vmul.f32 %v2263_v45, %v1228_v50  ;;  %v1230_v56 = vmul.f32 %v2264_v46, %v1228_v50  ;;  %v1234_v57 = vstv %s3116_s23  ;;  %v1240_v58 = vstv %s3118_s24  ;;  %s3204_s23 = sld [smem:[#allocation6 + $0xaa]] }
 0x10e   : > { %v1223_v59 = vadd.f32 %v1221_v53, %v1173_v17  ;;  %v1224_v60 = vadd.f32 %v1222_v54, %v1174_v18  ;;  %v1235_v61 = vmul.f32 %v2263_v45, %v1234_v57  ;;  %v1236_v62 = vmul.f32 %v2264_v46, %v1234_v57  ;;  %s3206_s24 = sld [smem:[#allocation6 + $0xce]] }
 0x10f   : > { %v1231_v63 = vadd.f32 %v1229_v55, %v1181_v21  ;;  %v1232_v0 = vadd.f32 %v1230_v56, %v1182_v22  ;;  %v1241_v1 = vmul.f32 %v2263_v45, %v1240_v58  ;;  %v1242_v2 = vmul.f32 %v2264_v46, %v1240_v58 }
 0x110   : > { %v1237_v3 = vadd.f32 %v1235_v61, %v1187_v25  ;;  %v1238_v4 = vadd.f32 %v1236_v62, %v1188_v26  ;;  %v1246_v5 = vstv %s3122_s25  ;;  %v1252_v6 = vstv %s3126_s26  ;;  %s3210_s25 = sld [smem:[#allocation6 + $0xf2]] }
 0x111   : > { %v1243_v7 = vadd.f32 %v1241_v1, %v1193_v29  ;;  %v1244_v8 = vadd.f32 %v1242_v2, %v1194_v30  ;;  %v1247_v9 = vmul.f32 %v2263_v45, %v1246_v5  ;;  %v1248_v10 = vmul.f32 %v2264_v46, %v1246_v5  ;;  %v2284_v1 = vld [vmem:[%s2538_s6 + $0x221] sm:$0xff]  ;;  %v2285_v2 = vld [vmem:[%s2538_s6 + $0x229] sm:$0x3f]  ;;  %s3214_s26 = sld [smem:[#allocation6 + $0x116]] }
 0x112   : > { %v1253_v11 = vmul.f32 %v2263_v45, %v1252_v6  ;;  %v1254_v12 = vmul.f32 %v2264_v46, %v1252_v6  ;;  %v1258_v13 = vstv %s3128_s1  ;;  %v1264_v14 = vstv %s3132_s2  ;;  %s3218_s1 = sld [smem:[#allocation6 + $0x1b]] }
 0x113   : > { %v1249_v15 = vadd.f32 %v1247_v9, %v1199_v37  ;;  %v1250_v16 = vadd.f32 %v1248_v10, %v1200_v38  ;;  %v1259_v17 = vmul.f32 %v2263_v45, %v1258_v13  ;;  %v1260_v18 = vmul.f32 %v2264_v46, %v1258_v13  ;;  %s3220_s2 = sld [smem:[#allocation6 + $0x3f]] }
 0x114   : > { %v1255_v19 = vadd.f32 %v1253_v11, %v1205_v41  ;;  %v1256_v20 = vadd.f32 %v1254_v12, %v1206_v42  ;;  %v1265_v21 = vmul.f32 %v2263_v45, %v1264_v14  ;;  %v1266_v22 = vmul.f32 %v2264_v46, %v1264_v14 }
 0x115   : > { %v1261_v25 = vadd.f32 %v1259_v17, %v1211_v47  ;;  %v1262_v26 = vadd.f32 %v1260_v18, %v1212_v48  ;;  %v1270_v27 = vstv %s3136_s28  ;;  %v1280_v28 = vstv %s3140_s29  ;;  %s3222_s28 = sld [smem:[#allocation6 + $0x63]] }
 0x116   : > { %v1267_v29 = vadd.f32 %v1265_v21, %v1217_v51  ;;  %v1268_v30 = vadd.f32 %v1266_v22, %v1218_v52  ;;  %v1271_v31 = vmul.f32 %v2263_v45, %v1270_v27  ;;  %v1272_v32 = vmul.f32 %v2264_v46, %v1270_v27  ;;  %s3226_s29 = sld [smem:[#allocation6 + $0x87]] }
 0x117   : > { %v1281_v33 = vmul.f32 %v2274_v23, %v1280_v28  ;;  %v1282_v34 = vmul.f32 %v2275_v24, %v1280_v28  ;;  %v1286_v35 = vstv %s3142_s30  ;;  %v1292_v36 = vstv %s3144_s4  ;;  %s3230_s30 = sld [smem:[#allocation6 + $0xab]] }
 0x118   : > { %v1273_v37 = vadd.f32 %v1271_v31, %v1223_v59  ;;  %v1274_v38 = vadd.f32 %v1272_v32, %v1224_v60  ;;  %v1287_v39 = vmul.f32 %v2274_v23, %v1286_v35  ;;  %v1288_v40 = vmul.f32 %v2275_v24, %v1286_v35  ;;  %s3232_s4 = sld [smem:[#allocation6 + $0xcf]] }
 0x119   : > { %v1283_v41 = vadd.f32 %v1281_v33, %v1231_v63  ;;  %v1284_v42 = vadd.f32 %v1282_v34, %v1232_v0  ;;  %v1293_v43 = vmul.f32 %v2274_v23, %v1292_v36  ;;  %v1294_v44 = vmul.f32 %v2275_v24, %v1292_v36 }
 0x11a   : > { %v1289_v45 = vadd.f32 %v1287_v39, %v1237_v3  ;;  %v1290_v46 = vadd.f32 %v1288_v40, %v1238_v4  ;;  %v1298_v47 = vstv %s3148_s5  ;;  %v1304_v48 = vstv %s3152_s7  ;;  %s3236_s5 = sld [smem:[#allocation6 + $0xf3]] }
 0x11b   : > { %v1295_v49 = vadd.f32 %v1293_v43, %v1243_v7  ;;  %v1296_v50 = vadd.f32 %v1294_v44, %v1244_v8  ;;  %v1299_v51 = vmul.f32 %v2274_v23, %v1298_v47  ;;  %v1300_v52 = vmul.f32 %v2275_v24, %v1298_v47  ;;  %v2294_v43 = vld [vmem:[%s2538_s6 + $0x222] sm:$0xff]  ;;  %v2295_v44 = vld [vmem:[%s2538_s6 + $0x22a] sm:$0x3f]  ;;  %s3240_s7 = sld [smem:[#allocation6 + $0x117]] }
 0x11c   : > { %v1305_v53 = vmul.f32 %v2274_v23, %v1304_v48  ;;  %v1306_v54 = vmul.f32 %v2275_v24, %v1304_v48  ;;  %v1310_v55 = vstv %s3154_s8  ;;  %v1316_v56 = vstv %s3158_s9  ;;  %s3244_s8 = sld [smem:[#allocation6 + $0x1c]] }
 0x11d   : > { %v1301_v57 = vadd.f32 %v1299_v51, %v1249_v15  ;;  %v1302_v58 = vadd.f32 %v1300_v52, %v1250_v16  ;;  %v1311_v59 = vmul.f32 %v2274_v23, %v1310_v55  ;;  %v1312_v60 = vmul.f32 %v2275_v24, %v1310_v55  ;;  %s3246_s9 = sld [smem:[#allocation6 + $0x40]] }
 0x11e   : > { %v1307_v61 = vadd.f32 %v1305_v53, %v1255_v19  ;;  %v1308_v62 = vadd.f32 %v1306_v54, %v1256_v20  ;;  %v1317_v63 = vmul.f32 %v2274_v23, %v1316_v56  ;;  %v1318_v0 = vmul.f32 %v2275_v24, %v1316_v56 }
 0x11f   : > { %v1313_v3 = vadd.f32 %v1311_v59, %v1261_v25  ;;  %v1314_v4 = vadd.f32 %v1312_v60, %v1262_v26  ;;  %v1322_v5 = vstv %s3162_s10  ;;  %v1330_v6 = vstv %s3166_s11  ;;  %s3248_s10 = sld [smem:[#allocation6 + $0x64]] }
 0x120   : > { %v1319_v7 = vadd.f32 %v1317_v63, %v1267_v29  ;;  %v1320_v8 = vadd.f32 %v1318_v0, %v1268_v30  ;;  %v1323_v9 = vmul.f32 %v2274_v23, %v1322_v5  ;;  %v1324_v10 = vmul.f32 %v2275_v24, %v1322_v5  ;;  %s3252_s11 = sld [smem:[#allocation6 + $0x88]] }
 0x121   : > { %v1331_v11 = vmul.f32 %v2284_v1, %v1330_v6  ;;  %v1332_v12 = vmul.f32 %v2285_v2, %v1330_v6  ;;  %v1336_v13 = vstv %s3168_s12  ;;  %v1342_v14 = vstv %s3170_s13  ;;  %s3256_s12 = sld [smem:[#allocation6 + $0xac]] }
 0x122   : > { %v1325_v15 = vadd.f32 %v1323_v9, %v1273_v37  ;;  %v1326_v16 = vadd.f32 %v1324_v10, %v1274_v38  ;;  %v1337_v17 = vmul.f32 %v2284_v1, %v1336_v13  ;;  %v1338_v18 = vmul.f32 %v2285_v2, %v1336_v13  ;;  %s3258_s13 = sld [smem:[#allocation6 + $0xd0]] }
 0x123   : > { %v1333_v19 = vadd.f32 %v1331_v11, %v1283_v41  ;;  %v1334_v20 = vadd.f32 %v1332_v12, %v1284_v42  ;;  %v1343_v21 = vmul.f32 %v2284_v1, %v1342_v14  ;;  %v1344_v22 = vmul.f32 %v2285_v2, %v1342_v14 }
 0x124   : > { %v1339_v23 = vadd.f32 %v1337_v17, %v1289_v45  ;;  %v1340_v24 = vadd.f32 %v1338_v18, %v1290_v46  ;;  %v1348_v25 = vstv %s3174_s14  ;;  %v1354_v26 = vstv %s3178_s15  ;;  %s3262_s14 = sld [smem:[#allocation6 + $0xf4]] }
 0x125   : > { %v1345_v27 = vadd.f32 %v1343_v21, %v1295_v49  ;;  %v1346_v28 = vadd.f32 %v1344_v22, %v1296_v50  ;;  %v1349_v29 = vmul.f32 %v2284_v1, %v1348_v25  ;;  %v1350_v30 = vmul.f32 %v2285_v2, %v1348_v25  ;;  %v2305_v21 = vld [vmem:[%s2538_s6 + $0x300] sm:$0xff]  ;;  %v2306_v22 = vld [vmem:[%s2538_s6 + $0x308] sm:$0x3f]  ;;  %s3266_s15 = sld [smem:[#allocation6 + $0x118]] }
 0x126   : > { %v1355_v31 = vmul.f32 %v2284_v1, %v1354_v26  ;;  %v1356_v32 = vmul.f32 %v2285_v2, %v1354_v26  ;;  %v1360_v33 = vstv %s3180_s16  ;;  %v1366_v34 = vstv %s3184_s17  ;;  %s3270_s16 = sld [smem:[#allocation6 + $0x1d]] }
 0x127   : > { %v1351_v35 = vadd.f32 %v1349_v29, %v1301_v57  ;;  %v1352_v36 = vadd.f32 %v1350_v30, %v1302_v58  ;;  %v1361_v37 = vmul.f32 %v2284_v1, %v1360_v33  ;;  %v1362_v38 = vmul.f32 %v2285_v2, %v1360_v33  ;;  %s3272_s17 = sld [smem:[#allocation6 + $0x41]] }
 0x128   : > { %v1357_v39 = vadd.f32 %v1355_v31, %v1307_v61  ;;  %v1358_v40 = vadd.f32 %v1356_v32, %v1308_v62  ;;  %v1367_v41 = vmul.f32 %v2284_v1, %v1366_v34  ;;  %v1368_v42 = vmul.f32 %v2285_v2, %v1366_v34 }
 0x129   : > { %v1363_v45 = vadd.f32 %v1361_v37, %v1313_v3  ;;  %v1364_v46 = vadd.f32 %v1362_v38, %v1314_v4  ;;  %v1372_v47 = vstv %s3188_s18  ;;  %v1380_v48 = vstv %s3192_s19  ;;  %s3274_s18 = sld [smem:[#allocation6 + $0x65]] }
 0x12a   : > { %v1369_v49 = vadd.f32 %v1367_v41, %v1319_v7  ;;  %v1370_v50 = vadd.f32 %v1368_v42, %v1320_v8  ;;  %v1373_v51 = vmul.f32 %v2284_v1, %v1372_v47  ;;  %v1374_v52 = vmul.f32 %v2285_v2, %v1372_v47  ;;  %s3278_s19 = sld [smem:[#allocation6 + $0x89]] }
 0x12b   : > { %v1381_v53 = vmul.f32 %v2294_v43, %v1380_v48  ;;  %v1382_v54 = vmul.f32 %v2295_v44, %v1380_v48  ;;  %v1386_v55 = vstv %s3194_s20  ;;  %v1392_v56 = vstv %s3196_s21  ;;  %s3282_s20 = sld [smem:[#allocation6 + $0xad]] }
 0x12c   : > { %v1375_v57 = vadd.f32 %v1373_v51, %v1325_v15  ;;  %v1376_v58 = vadd.f32 %v1374_v52, %v1326_v16  ;;  %v1387_v59 = vmul.f32 %v2294_v43, %v1386_v55  ;;  %v1388_v60 = vmul.f32 %v2295_v44, %v1386_v55  ;;  %s3284_s21 = sld [smem:[#allocation6 + $0xd1]] }
 0x12d   : > { %v1383_v61 = vadd.f32 %v1381_v53, %v1333_v19  ;;  %v1384_v62 = vadd.f32 %v1382_v54, %v1334_v20  ;;  %v1393_v63 = vmul.f32 %v2294_v43, %v1392_v56  ;;  %v1394_v0 = vmul.f32 %v2295_v44, %v1392_v56 }
 0x12e   : > { %v1389_v1 = vadd.f32 %v1387_v59, %v1339_v23  ;;  %v1390_v2 = vadd.f32 %v1388_v60, %v1340_v24  ;;  %v1398_v3 = vstv %s3200_s22  ;;  %v1404_v4 = vstv %s3204_s23  ;;  %s3288_s22 = sld [smem:[#allocation6 + $0xf5]] }
 0x12f   : > { %v1395_v5 = vadd.f32 %v1393_v63, %v1345_v27  ;;  %v1396_v6 = vadd.f32 %v1394_v0, %v1346_v28  ;;  %v1399_v7 = vmul.f32 %v2294_v43, %v1398_v3  ;;  %v1400_v8 = vmul.f32 %v2295_v44, %v1398_v3  ;;  %v2315_v63 = vld [vmem:[%s2538_s6 + $0x301] sm:$0xff]  ;;  %v2316_v0 = vld [vmem:[%s2538_s6 + $0x309] sm:$0x3f]  ;;  %s3292_s23 = sld [smem:[#allocation6 + $0x119]] }
 0x130   : > { %v1405_v9 = vmul.f32 %v2294_v43, %v1404_v4  ;;  %v1406_v10 = vmul.f32 %v2295_v44, %v1404_v4  ;;  %v1410_v11 = vstv %s3206_s24  ;;  %v1416_v12 = vstv %s3210_s25  ;;  %s3296_s24 = sld [smem:[#allocation6 + $0x1e]] }
 0x131   : > { %v1401_v13 = vadd.f32 %v1399_v7, %v1351_v35  ;;  %v1402_v14 = vadd.f32 %v1400_v8, %v1352_v36  ;;  %v1411_v15 = vmul.f32 %v2294_v43, %v1410_v11  ;;  %v1412_v16 = vmul.f32 %v2295_v44, %v1410_v11  ;;  %s3298_s25 = sld [smem:[#allocation6 + $0x42]] }
 0x132   : > { %v1407_v17 = vadd.f32 %v1405_v9, %v1357_v39  ;;  %v1408_v18 = vadd.f32 %v1406_v10, %v1358_v40  ;;  %v1417_v19 = vmul.f32 %v2294_v43, %v1416_v12  ;;  %v1418_v20 = vmul.f32 %v2295_v44, %v1416_v12 }
 0x133   : > { %v1413_v23 = vadd.f32 %v1411_v15, %v1363_v45  ;;  %v1414_v24 = vadd.f32 %v1412_v16, %v1364_v46  ;;  %v1422_v25 = vstv %s3214_s26  ;;  %v1432_v26 = vstv %s3218_s1  ;;  %s3300_s26 = sld [smem:[#allocation6 + $0x66]] }
 0x134   : > { %v1419_v27 = vadd.f32 %v1417_v19, %v1369_v49  ;;  %v1420_v28 = vadd.f32 %v1418_v20, %v1370_v50  ;;  %v1423_v29 = vmul.f32 %v2294_v43, %v1422_v25  ;;  %v1424_v30 = vmul.f32 %v2295_v44, %v1422_v25  ;;  %s3304_s1 = sld [smem:[#allocation6 + $0x8a]] }
 0x135   : > { %v1433_v31 = vmul.f32 %v2305_v21, %v1432_v26  ;;  %v1434_v32 = vmul.f32 %v2306_v22, %v1432_v26  ;;  %v1438_v33 = vstv %s3220_s2  ;;  %v1444_v34 = vstv %s3222_s28  ;;  %s3308_s2 = sld [smem:[#allocation6 + $0xae]] }
 0x136   : > { %v1425_v35 = vadd.f32 %v1423_v29, %v1375_v57  ;;  %v1426_v36 = vadd.f32 %v1424_v30, %v1376_v58  ;;  %v1439_v37 = vmul.f32 %v2305_v21, %v1438_v33  ;;  %v1440_v38 = vmul.f32 %v2306_v22, %v1438_v33  ;;  %s3310_s28 = sld [smem:[#allocation6 + $0xd2]] }
 0x137   : > { %v1435_v39 = vadd.f32 %v1433_v31, %v1383_v61  ;;  %v1436_v40 = vadd.f32 %v1434_v32, %v1384_v62  ;;  %v1445_v41 = vmul.f32 %v2305_v21, %v1444_v34  ;;  %v1446_v42 = vmul.f32 %v2306_v22, %v1444_v34 }
 0x138   : > { %v1441_v43 = vadd.f32 %v1439_v37, %v1389_v1  ;;  %v1442_v44 = vadd.f32 %v1440_v38, %v1390_v2  ;;  %v1450_v45 = vstv %s3226_s29  ;;  %v1456_v46 = vstv %s3230_s30  ;;  %s3314_s29 = sld [smem:[#allocation6 + $0xf6]] }
 0x139   : > { %v1447_v47 = vadd.f32 %v1445_v41, %v1395_v5  ;;  %v1448_v48 = vadd.f32 %v1446_v42, %v1396_v6  ;;  %v1451_v49 = vmul.f32 %v2305_v21, %v1450_v45  ;;  %v1452_v50 = vmul.f32 %v2306_v22, %v1450_v45  ;;  %v2325_v41 = vld [vmem:[%s2538_s6 + $0x302] sm:$0xff]  ;;  %v2326_v42 = vld [vmem:[%s2538_s6 + $0x30a] sm:$0x3f]  ;;  %s3318_s30 = sld [smem:[#allocation6 + $0x11a]] }
 0x13a   : > { %v1457_v51 = vmul.f32 %v2305_v21, %v1456_v46  ;;  %v1458_v52 = vmul.f32 %v2306_v22, %v1456_v46  ;;  %v1462_v53 = vstv %s3232_s4  ;;  %v1468_v54 = vstv %s3236_s5  ;;  %s3322_s4 = sld [smem:[#allocation6 + $0x1f]] }
 0x13b   : > { %v1453_v55 = vadd.f32 %v1451_v49, %v1401_v13  ;;  %v1454_v56 = vadd.f32 %v1452_v50, %v1402_v14  ;;  %v1463_v57 = vmul.f32 %v2305_v21, %v1462_v53  ;;  %v1464_v58 = vmul.f32 %v2306_v22, %v1462_v53  ;;  %s3324_s5 = sld [smem:[#allocation6 + $0x43]] }
 0x13c   : > { %v1459_v59 = vadd.f32 %v1457_v51, %v1407_v17  ;;  %v1460_v60 = vadd.f32 %v1458_v52, %v1408_v18  ;;  %v1469_v61 = vmul.f32 %v2305_v21, %v1468_v54  ;;  %v1470_v62 = vmul.f32 %v2306_v22, %v1468_v54 }
 0x13d   : > { %v1465_v1 = vadd.f32 %v1463_v57, %v1413_v23  ;;  %v1466_v2 = vadd.f32 %v1464_v58, %v1414_v24  ;;  %v1474_v3 = vstv %s3240_s7  ;;  %v1482_v4 = vstv %s3244_s8  ;;  %s3326_s7 = sld [smem:[#allocation6 + $0x67]] }
 0x13e   : > { %v1471_v5 = vadd.f32 %v1469_v61, %v1419_v27  ;;  %v1472_v6 = vadd.f32 %v1470_v62, %v1420_v28  ;;  %v1475_v7 = vmul.f32 %v2305_v21, %v1474_v3  ;;  %v1476_v8 = vmul.f32 %v2306_v22, %v1474_v3  ;;  %s3330_s8 = sld [smem:[#allocation6 + $0x8b]] }
 0x13f   : > { %v1483_v9 = vmul.f32 %v2315_v63, %v1482_v4  ;;  %v1484_v10 = vmul.f32 %v2316_v0, %v1482_v4  ;;  %v1488_v11 = vstv %s3246_s9  ;;  %v1494_v12 = vstv %s3248_s10  ;;  %s3334_s9 = sld [smem:[#allocation6 + $0xaf]] }
 0x140   : > { %v1477_v13 = vadd.f32 %v1475_v7, %v1425_v35  ;;  %v1478_v14 = vadd.f32 %v1476_v8, %v1426_v36  ;;  %v1489_v15 = vmul.f32 %v2315_v63, %v1488_v11  ;;  %v1490_v16 = vmul.f32 %v2316_v0, %v1488_v11  ;;  %s3336_s10 = sld [smem:[#allocation6 + $0xd3]] }
 0x141   : > { %v1485_v17 = vadd.f32 %v1483_v9, %v1435_v39  ;;  %v1486_v18 = vadd.f32 %v1484_v10, %v1436_v40  ;;  %v1495_v19 = vmul.f32 %v2315_v63, %v1494_v12  ;;  %v1496_v20 = vmul.f32 %v2316_v0, %v1494_v12 }
 0x142   : > { %v1491_v21 = vadd.f32 %v1489_v15, %v1441_v43  ;;  %v1492_v22 = vadd.f32 %v1490_v16, %v1442_v44  ;;  %v1500_v23 = vstv %s3252_s11  ;;  %v1506_v24 = vstv %s3256_s12  ;;  %s3340_s11 = sld [smem:[#allocation6 + $0xf7]] }
 0x143   : > { %v1497_v25 = vadd.f32 %v1495_v19, %v1447_v47  ;;  %v1498_v26 = vadd.f32 %v1496_v20, %v1448_v48  ;;  %v1501_v27 = vmul.f32 %v2315_v63, %v1500_v23  ;;  %v1502_v28 = vmul.f32 %v2316_v0, %v1500_v23  ;;  %v2336_v19 = vld [vmem:[%s2538_s6 + $0x310] sm:$0xff]  ;;  %v2337_v20 = vld [vmem:[%s2538_s6 + $0x318] sm:$0x3f]  ;;  %s3344_s12 = sld [smem:[#allocation6 + $0x11b]] }
 0x144   : > { %v1507_v29 = vmul.f32 %v2315_v63, %v1506_v24  ;;  %v1508_v30 = vmul.f32 %v2316_v0, %v1506_v24  ;;  %v1512_v31 = vstv %s3258_s13  ;;  %v1518_v32 = vstv %s3262_s14  ;;  %s3348_s13 = sld [smem:[#allocation6 + $0x20]] }
 0x145   : > { %v1503_v33 = vadd.f32 %v1501_v27, %v1453_v55  ;;  %v1504_v34 = vadd.f32 %v1502_v28, %v1454_v56  ;;  %v1513_v35 = vmul.f32 %v2315_v63, %v1512_v31  ;;  %v1514_v36 = vmul.f32 %v2316_v0, %v1512_v31  ;;  %s3350_s14 = sld [smem:[#allocation6 + $0x44]] }
 0x146   : > { %v1509_v37 = vadd.f32 %v1507_v29, %v1459_v59  ;;  %v1510_v38 = vadd.f32 %v1508_v30, %v1460_v60  ;;  %v1519_v39 = vmul.f32 %v2315_v63, %v1518_v32  ;;  %v1520_v40 = vmul.f32 %v2316_v0, %v1518_v32 }
 0x147   : > { %v1515_v43 = vadd.f32 %v1513_v35, %v1465_v1  ;;  %v1516_v44 = vadd.f32 %v1514_v36, %v1466_v2  ;;  %v1524_v45 = vstv %s3266_s15  ;;  %v1532_v46 = vstv %s3270_s16  ;;  %s3352_s15 = sld [smem:[#allocation6 + $0x68]] }
 0x148   : > { %v1521_v47 = vadd.f32 %v1519_v39, %v1471_v5  ;;  %v1522_v48 = vadd.f32 %v1520_v40, %v1472_v6  ;;  %v1525_v49 = vmul.f32 %v2315_v63, %v1524_v45  ;;  %v1526_v50 = vmul.f32 %v2316_v0, %v1524_v45  ;;  %s3356_s16 = sld [smem:[#allocation6 + $0x8c]] }
 0x149   : > { %v1533_v51 = vmul.f32 %v2325_v41, %v1532_v46  ;;  %v1534_v52 = vmul.f32 %v2326_v42, %v1532_v46  ;;  %v1538_v53 = vstv %s3272_s17  ;;  %v1544_v54 = vstv %s3274_s18  ;;  %s3360_s17 = sld [smem:[#allocation6 + $0xb0]] }
 0x14a   : > { %v1527_v55 = vadd.f32 %v1525_v49, %v1477_v13  ;;  %v1528_v56 = vadd.f32 %v1526_v50, %v1478_v14  ;;  %v1539_v57 = vmul.f32 %v2325_v41, %v1538_v53  ;;  %v1540_v58 = vmul.f32 %v2326_v42, %v1538_v53  ;;  %s3362_s18 = sld [smem:[#allocation6 + $0xd4]] }
 0x14b   : > { %v1535_v59 = vadd.f32 %v1533_v51, %v1485_v17  ;;  %v1536_v60 = vadd.f32 %v1534_v52, %v1486_v18  ;;  %v1545_v61 = vmul.f32 %v2325_v41, %v1544_v54  ;;  %v1546_v62 = vmul.f32 %v2326_v42, %v1544_v54 }
 0x14c   : > { %v1541_v63 = vadd.f32 %v1539_v57, %v1491_v21  ;;  %v1542_v0 = vadd.f32 %v1540_v58, %v1492_v22  ;;  %v1550_v1 = vstv %s3278_s19  ;;  %v1556_v2 = vstv %s3282_s20  ;;  %s3366_s19 = sld [smem:[#allocation6 + $0xf8]] }
 0x14d   : > { %v1547_v3 = vadd.f32 %v1545_v61, %v1497_v25  ;;  %v1548_v4 = vadd.f32 %v1546_v62, %v1498_v26  ;;  %v1551_v5 = vmul.f32 %v2325_v41, %v1550_v1  ;;  %v1552_v6 = vmul.f32 %v2326_v42, %v1550_v1  ;;  %v2346_v61 = vld [vmem:[%s2538_s6 + $0x311] sm:$0xff]  ;;  %v2347_v62 = vld [vmem:[%s2538_s6 + $0x319] sm:$0x3f]  ;;  %s3370_s20 = sld [smem:[#allocation6 + $0x11c]] }
 0x14e   : > { %v1557_v7 = vmul.f32 %v2325_v41, %v1556_v2  ;;  %v1558_v8 = vmul.f32 %v2326_v42, %v1556_v2  ;;  %v1562_v9 = vstv %s3284_s21  ;;  %v1568_v10 = vstv %s3288_s22  ;;  %s3374_s21 = sld [smem:[#allocation6 + $0x21]] }
 0x14f   : > { %v1553_v11 = vadd.f32 %v1551_v5, %v1503_v33  ;;  %v1554_v12 = vadd.f32 %v1552_v6, %v1504_v34  ;;  %v1563_v13 = vmul.f32 %v2325_v41, %v1562_v9  ;;  %v1564_v14 = vmul.f32 %v2326_v42, %v1562_v9  ;;  %s3376_s22 = sld [smem:[#allocation6 + $0x45]] }
 0x150   : > { %v1559_v15 = vadd.f32 %v1557_v7, %v1509_v37  ;;  %v1560_v16 = vadd.f32 %v1558_v8, %v1510_v38  ;;  %v1569_v17 = vmul.f32 %v2325_v41, %v1568_v10  ;;  %v1570_v18 = vmul.f32 %v2326_v42, %v1568_v10 }
 0x151   : > { %v1565_v21 = vadd.f32 %v1563_v13, %v1515_v43  ;;  %v1566_v22 = vadd.f32 %v1564_v14, %v1516_v44  ;;  %v1574_v23 = vstv %s3292_s23  ;;  %v1584_v24 = vstv %s3296_s24  ;;  %s3378_s23 = sld [smem:[#allocation6 + $0x69]] }
 0x152   : > { %v1571_v25 = vadd.f32 %v1569_v17, %v1521_v47  ;;  %v1572_v26 = vadd.f32 %v1570_v18, %v1522_v48  ;;  %v1575_v27 = vmul.f32 %v2325_v41, %v1574_v23  ;;  %v1576_v28 = vmul.f32 %v2326_v42, %v1574_v23  ;;  %s3382_s24 = sld [smem:[#allocation6 + $0x8d]] }
 0x153   : > { %v1585_v29 = vmul.f32 %v2336_v19, %v1584_v24  ;;  %v1586_v30 = vmul.f32 %v2337_v20, %v1584_v24  ;;  %v1590_v31 = vstv %s3298_s25  ;;  %v1596_v32 = vstv %s3300_s26  ;;  %s3386_s25 = sld [smem:[#allocation6 + $0xb1]] }
 0x154   : > { %v1577_v33 = vadd.f32 %v1575_v27, %v1527_v55  ;;  %v1578_v34 = vadd.f32 %v1576_v28, %v1528_v56  ;;  %v1591_v35 = vmul.f32 %v2336_v19, %v1590_v31  ;;  %v1592_v36 = vmul.f32 %v2337_v20, %v1590_v31  ;;  %s3388_s26 = sld [smem:[#allocation6 + $0xd5]] }
 0x155   : > { %v1587_v37 = vadd.f32 %v1585_v29, %v1535_v59  ;;  %v1588_v38 = vadd.f32 %v1586_v30, %v1536_v60  ;;  %v1597_v39 = vmul.f32 %v2336_v19, %v1596_v32  ;;  %v1598_v40 = vmul.f32 %v2337_v20, %v1596_v32 }
 0x156   : > { %v1593_v41 = vadd.f32 %v1591_v35, %v1541_v63  ;;  %v1594_v42 = vadd.f32 %v1592_v36, %v1542_v0  ;;  %v1602_v43 = vstv %s3304_s1  ;;  %v1608_v44 = vstv %s3308_s2  ;;  %s3392_s1 = sld [smem:[#allocation6 + $0xf9]] }
 0x157   : > { %v1599_v45 = vadd.f32 %v1597_v39, %v1547_v3  ;;  %v1600_v46 = vadd.f32 %v1598_v40, %v1548_v4  ;;  %v1603_v47 = vmul.f32 %v2336_v19, %v1602_v43  ;;  %v1604_v48 = vmul.f32 %v2337_v20, %v1602_v43  ;;  %v2356_v39 = vld [vmem:[%s2538_s6 + $0x312] sm:$0xff]  ;;  %v2357_v40 = vld [vmem:[%s2538_s6 + $0x31a] sm:$0x3f]  ;;  %s3396_s2 = sld [smem:[#allocation6 + $0x11d]] }
 0x158   : > { %v1609_v49 = vmul.f32 %v2336_v19, %v1608_v44  ;;  %v1610_v50 = vmul.f32 %v2337_v20, %v1608_v44  ;;  %v1614_v51 = vstv %s3310_s28  ;;  %v1620_v52 = vstv %s3314_s29  ;;  %s3400_s28 = sld [smem:[#allocation6 + $0x22]] }
 0x159   : > { %v1605_v53 = vadd.f32 %v1603_v47, %v1553_v11  ;;  %v1606_v54 = vadd.f32 %v1604_v48, %v1554_v12  ;;  %v1615_v55 = vmul.f32 %v2336_v19, %v1614_v51  ;;  %v1616_v56 = vmul.f32 %v2337_v20, %v1614_v51  ;;  %s3402_s29 = sld [smem:[#allocation6 + $0x46]] }
 0x15a   : > { %v1611_v57 = vadd.f32 %v1609_v49, %v1559_v15  ;;  %v1612_v58 = vadd.f32 %v1610_v50, %v1560_v16  ;;  %v1621_v59 = vmul.f32 %v2336_v19, %v1620_v52  ;;  %v1622_v60 = vmul.f32 %v2337_v20, %v1620_v52 }
 0x15b   : > { %v1617_v63 = vadd.f32 %v1615_v55, %v1565_v21  ;;  %v1618_v0 = vadd.f32 %v1616_v56, %v1566_v22  ;;  %v1626_v1 = vstv %s3318_s30  ;;  %v1634_v2 = vstv %s3322_s4  ;;  %s3404_s30 = sld [smem:[#allocation6 + $0x6a]] }
 0x15c   : > { %v1623_v3 = vadd.f32 %v1621_v59, %v1571_v25  ;;  %v1624_v4 = vadd.f32 %v1622_v60, %v1572_v26  ;;  %v1627_v5 = vmul.f32 %v2336_v19, %v1626_v1  ;;  %v1628_v6 = vmul.f32 %v2337_v20, %v1626_v1  ;;  %s3408_s4 = sld [smem:[#allocation6 + $0x8e]] }
 0x15d   : > { %v1635_v7 = vmul.f32 %v2346_v61, %v1634_v2  ;;  %v1636_v8 = vmul.f32 %v2347_v62, %v1634_v2  ;;  %v1640_v9 = vstv %s3324_s5  ;;  %v1646_v10 = vstv %s3326_s7  ;;  %s3412_s5 = sld [smem:[#allocation6 + $0xb2]] }
 0x15e   : > { %v1629_v11 = vadd.f32 %v1627_v5, %v1577_v33  ;;  %v1630_v12 = vadd.f32 %v1628_v6, %v1578_v34  ;;  %v1641_v13 = vmul.f32 %v2346_v61, %v1640_v9  ;;  %v1642_v14 = vmul.f32 %v2347_v62, %v1640_v9  ;;  %s3414_s7 = sld [smem:[#allocation6 + $0xd6]] }
 0x15f   : > { %v1637_v15 = vadd.f32 %v1635_v7, %v1587_v37  ;;  %v1638_v16 = vadd.f32 %v1636_v8, %v1588_v38  ;;  %v1647_v17 = vmul.f32 %v2346_v61, %v1646_v10  ;;  %v1648_v18 = vmul.f32 %v2347_v62, %v1646_v10 }
 0x160   : > { %v1643_v19 = vadd.f32 %v1641_v13, %v1593_v41  ;;  %v1644_v20 = vadd.f32 %v1642_v14, %v1594_v42  ;;  %v1652_v21 = vstv %s3330_s8  ;;  %v1658_v22 = vstv %s3334_s9  ;;  %s3418_s8 = sld [smem:[#allocation6 + $0xfa]] }
 0x161   : > { %v1649_v23 = vadd.f32 %v1647_v17, %v1599_v45  ;;  %v1650_v24 = vadd.f32 %v1648_v18, %v1600_v46  ;;  %v1653_v25 = vmul.f32 %v2346_v61, %v1652_v21  ;;  %v1654_v26 = vmul.f32 %v2347_v62, %v1652_v21  ;;  %v2367_v17 = vld [vmem:[%s2538_s6 + $0x320] sm:$0xff]  ;;  %v2368_v18 = vld [vmem:[%s2538_s6 + $0x328] sm:$0x3f]  ;;  %s3422_s9 = sld [smem:[#allocation6 + $0x11e]] }
 0x162   : > { %v1659_v27 = vmul.f32 %v2346_v61, %v1658_v22  ;;  %v1660_v28 = vmul.f32 %v2347_v62, %v1658_v22  ;;  %v1664_v29 = vstv %s3336_s10  ;;  %v1670_v30 = vstv %s3340_s11  ;;  %s3426_s10 = sld [smem:[#allocation6 + $0x23]] }
 0x163   : > { %v1655_v31 = vadd.f32 %v1653_v25, %v1605_v53  ;;  %v1656_v32 = vadd.f32 %v1654_v26, %v1606_v54  ;;  %v1665_v33 = vmul.f32 %v2346_v61, %v1664_v29  ;;  %v1666_v34 = vmul.f32 %v2347_v62, %v1664_v29  ;;  %s3428_s11 = sld [smem:[#allocation6 + $0x47]] }
 0x164   : > { %v1661_v35 = vadd.f32 %v1659_v27, %v1611_v57  ;;  %v1662_v36 = vadd.f32 %v1660_v28, %v1612_v58  ;;  %v1671_v37 = vmul.f32 %v2346_v61, %v1670_v30  ;;  %v1672_v38 = vmul.f32 %v2347_v62, %v1670_v30 }
 0x165   : > { %v1667_v41 = vadd.f32 %v1665_v33, %v1617_v63  ;;  %v1668_v42 = vadd.f32 %v1666_v34, %v1618_v0  ;;  %v1676_v43 = vstv %s3344_s12  ;;  %v1684_v44 = vstv %s3348_s13  ;;  %s3430_s12 = sld [smem:[#allocation6 + $0x6b]] }
 0x166   : > { %v1673_v45 = vadd.f32 %v1671_v37, %v1623_v3  ;;  %v1674_v46 = vadd.f32 %v1672_v38, %v1624_v4  ;;  %v1677_v47 = vmul.f32 %v2346_v61, %v1676_v43  ;;  %v1678_v48 = vmul.f32 %v2347_v62, %v1676_v43  ;;  %s3434_s13 = sld [smem:[#allocation6 + $0x8f]] }
 0x167   : > { %v1685_v49 = vmul.f32 %v2356_v39, %v1684_v44  ;;  %v1686_v50 = vmul.f32 %v2357_v40, %v1684_v44  ;;  %v1690_v51 = vstv %s3350_s14  ;;  %v1696_v52 = vstv %s3352_s15  ;;  %s3438_s14 = sld [smem:[#allocation6 + $0xb3]] }
 0x168   : > { %v1679_v53 = vadd.f32 %v1677_v47, %v1629_v11  ;;  %v1680_v54 = vadd.f32 %v1678_v48, %v1630_v12  ;;  %v1691_v55 = vmul.f32 %v2356_v39, %v1690_v51  ;;  %v1692_v56 = vmul.f32 %v2357_v40, %v1690_v51  ;;  %s3440_s15 = sld [smem:[#allocation6 + $0xd7]] }
 0x169   : > { %v1687_v57 = vadd.f32 %v1685_v49, %v1637_v15  ;;  %v1688_v58 = vadd.f32 %v1686_v50, %v1638_v16  ;;  %v1697_v59 = vmul.f32 %v2356_v39, %v1696_v52  ;;  %v1698_v60 = vmul.f32 %v2357_v40, %v1696_v52 }
 0x16a   : > { %v1693_v61 = vadd.f32 %v1691_v55, %v1643_v19  ;;  %v1694_v62 = vadd.f32 %v1692_v56, %v1644_v20  ;;  %v1702_v63 = vstv %s3356_s16  ;;  %v1708_v0 = vstv %s3360_s17  ;;  %s3444_s16 = sld [smem:[#allocation6 + $0xfb]] }
 0x16b   : > { %v1699_v1 = vadd.f32 %v1697_v59, %v1649_v23  ;;  %v1700_v2 = vadd.f32 %v1698_v60, %v1650_v24  ;;  %v1703_v3 = vmul.f32 %v2356_v39, %v1702_v63  ;;  %v1704_v4 = vmul.f32 %v2357_v40, %v1702_v63  ;;  %v2377_v59 = vld [vmem:[%s2538_s6 + $0x321] sm:$0xff]  ;;  %v2378_v60 = vld [vmem:[%s2538_s6 + $0x329] sm:$0x3f]  ;;  %s3448_s17 = sld [smem:[#allocation6 + $0x11f]] }
 0x16c   : > { %v1709_v5 = vmul.f32 %v2356_v39, %v1708_v0  ;;  %v1710_v6 = vmul.f32 %v2357_v40, %v1708_v0  ;;  %v1714_v7 = vstv %s3362_s18  ;;  %v1720_v8 = vstv %s3366_s19  ;;  %s3452_s18 = sld [smem:[#allocation7]] }
 0x16d   : > { %v1705_v9 = vadd.f32 %v1703_v3, %v1655_v31  ;;  %v1706_v10 = vadd.f32 %v1704_v4, %v1656_v32  ;;  %v1715_v11 = vmul.f32 %v2356_v39, %v1714_v7  ;;  %v1716_v12 = vmul.f32 %v2357_v40, %v1714_v7  ;;  %s3456_s19 = sld [smem:[#allocation7 + $0x2]] }
 0x16e   : > { %v1711_v13 = vadd.f32 %v1709_v5, %v1661_v35  ;;  %v1712_v14 = vadd.f32 %v1710_v6, %v1662_v36  ;;  %v1721_v15 = vmul.f32 %v2356_v39, %v1720_v8  ;;  %v1722_v16 = vmul.f32 %v2357_v40, %v1720_v8 }
 0x16f   : > { %v1717_v19 = vadd.f32 %v1715_v11, %v1667_v41  ;;  %v1718_v20 = vadd.f32 %v1716_v12, %v1668_v42  ;;  %v1726_v21 = vstv %s3370_s20  ;;  %v1736_v22 = vstv %s3374_s21  ;;  %s3460_s20 = sld [smem:[#allocation7 + $0x3]] }
 0x170   : > { %v1723_v23 = vadd.f32 %v1721_v15, %v1673_v45  ;;  %v1724_v24 = vadd.f32 %v1722_v16, %v1674_v46  ;;  %v1727_v25 = vmul.f32 %v2356_v39, %v1726_v21  ;;  %v1728_v26 = vmul.f32 %v2357_v40, %v1726_v21  ;;  %s3464_s21 = sld [smem:[#allocation7 + $0x4]] }
 0x171   : > { %v1737_v27 = vmul.f32 %v2367_v17, %v1736_v22  ;;  %v1738_v28 = vmul.f32 %v2368_v18, %v1736_v22  ;;  %v1742_v29 = vstv %s3376_s22  ;;  %v1748_v30 = vstv %s3378_s23  ;;  %s3466_s22 = sld [smem:[#allocation7 + $0x5]] }
 0x172   : > { %v1729_v31 = vadd.f32 %v1727_v25, %v1679_v53  ;;  %v1730_v32 = vadd.f32 %v1728_v26, %v1680_v54  ;;  %v1743_v33 = vmul.f32 %v2367_v17, %v1742_v29  ;;  %v1744_v34 = vmul.f32 %v2368_v18, %v1742_v29  ;;  %s3468_s23 = sld [smem:[#allocation7 + $0x6]] }
 0x173   : > { %v1739_v35 = vadd.f32 %v1737_v27, %v1687_v57  ;;  %v1740_v36 = vadd.f32 %v1738_v28, %v1688_v58  ;;  %v1749_v37 = vmul.f32 %v2367_v17, %v1748_v30  ;;  %v1750_v38 = vmul.f32 %v2368_v18, %v1748_v30 }
 0x174   : > { %v1745_v39 = vadd.f32 %v1743_v33, %v1693_v61  ;;  %v1746_v40 = vadd.f32 %v1744_v34, %v1694_v62  ;;  %v1754_v41 = vstv %s3382_s24  ;;  %v1760_v42 = vstv %s3386_s25  ;;  %s3474_s24 = sld [smem:[#allocation7 + $0x7]] }
 0x175   : > { %v1751_v43 = vadd.f32 %v1749_v37, %v1699_v1  ;;  %v1752_v44 = vadd.f32 %v1750_v38, %v1700_v2  ;;  %v1755_v45 = vmul.f32 %v2367_v17, %v1754_v41  ;;  %v1756_v46 = vmul.f32 %v2368_v18, %v1754_v41  ;;  %v2387_v37 = vld [vmem:[%s2538_s6 + $0x322] sm:$0xff]  ;;  %v2388_v38 = vld [vmem:[%s2538_s6 + $0x32a] sm:$0x3f]  ;;  %s3454_s6 = sld [smem:[#allocation7 + $0x1]] }
 0x176   : > { %v1761_v47 = vmul.f32 %v2367_v17, %v1760_v42  ;;  %v1762_v48 = vmul.f32 %v2368_v18, %v1760_v42  ;;  %v1766_v49 = vstv %s3388_s26  ;;  %v1772_v50 = vstv %s3392_s1  ;;  %s3481_s1 = scalar_lea.vmem %s3510_s3, %s2032_s27 }
 0x177   : > { %v1757_v51 = vadd.f32 %v1755_v45, %v1705_v9  ;;  %v1758_v52 = vadd.f32 %v1756_v46, %v1706_v10  ;;  %v1767_v53 = vmul.f32 %v2367_v17, %v1766_v49  ;;  %v1768_v54 = vmul.f32 %v2368_v18, %v1766_v49 }
 0x178   : > { %v1763_v55 = vadd.f32 %v1761_v47, %v1711_v13  ;;  %v1764_v56 = vadd.f32 %v1762_v48, %v1712_v14  ;;  %v1773_v57 = vmul.f32 %v2367_v17, %v1772_v50  ;;  %v1774_v58 = vmul.f32 %v2368_v18, %v1772_v50 }
 0x179   : > { %v1769_v61 = vadd.f32 %v1767_v53, %v1717_v19  ;;  %v1770_v62 = vadd.f32 %v1768_v54, %v1718_v20  ;;  %v1778_v63 = vstv %s3396_s2  ;;  %v1786_v0 = vstv %s3400_s28 }
 0x17a   : > { %v1775_v1 = vadd.f32 %v1773_v57, %v1723_v23  ;;  %v1776_v2 = vadd.f32 %v1774_v58, %v1724_v24  ;;  %v1779_v3 = vmul.f32 %v2367_v17, %v1778_v63  ;;  %v1780_v4 = vmul.f32 %v2368_v18, %v1778_v63 }
 0x17b   : > { %v1787_v5 = vmul.f32 %v2377_v59, %v1786_v0  ;;  %v1788_v6 = vmul.f32 %v2378_v60, %v1786_v0  ;;  %v1792_v7 = vstv %s3402_s29  ;;  %v1798_v8 = vstv %s3404_s30 }
 0x17c   : > { %v1781_v9 = vadd.f32 %v1779_v3, %v1729_v31  ;;  %v1782_v10 = vadd.f32 %v1780_v4, %v1730_v32  ;;  %v1793_v11 = vmul.f32 %v2377_v59, %v1792_v7  ;;  %v1794_v12 = vmul.f32 %v2378_v60, %v1792_v7 }
 0x17d   : > { %v1789_v13 = vadd.f32 %v1787_v5, %v1739_v35  ;;  %v1790_v14 = vadd.f32 %v1788_v6, %v1740_v36  ;;  %v1799_v15 = vmul.f32 %v2377_v59, %v1798_v8  ;;  %v1800_v16 = vmul.f32 %v2378_v60, %v1798_v8 }
 0x17e   : > { %v1795_v17 = vadd.f32 %v1793_v11, %v1745_v39  ;;  %v1796_v18 = vadd.f32 %v1794_v12, %v1746_v40  ;;  %v1804_v19 = vstv %s3408_s4  ;;  %v1810_v20 = vstv %s3412_s5 }
 0x17f   : > { %v1801_v21 = vadd.f32 %v1799_v15, %v1751_v43  ;;  %v1802_v22 = vadd.f32 %v1800_v16, %v1752_v44  ;;  %v1805_v23 = vmul.f32 %v2377_v59, %v1804_v19  ;;  %v1806_v24 = vmul.f32 %v2378_v60, %v1804_v19 }
 0x180   : > { %v1811_v25 = vmul.f32 %v2377_v59, %v1810_v20  ;;  %v1812_v26 = vmul.f32 %v2378_v60, %v1810_v20  ;;  %v1816_v27 = vstv %s3414_s7  ;;  %v1822_v28 = vstv %s3418_s8 }
 0x181   : > { %v1807_v29 = vadd.f32 %v1805_v23, %v1757_v51  ;;  %v1808_v30 = vadd.f32 %v1806_v24, %v1758_v52  ;;  %v1817_v31 = vmul.f32 %v2377_v59, %v1816_v27  ;;  %v1818_v32 = vmul.f32 %v2378_v60, %v1816_v27 }
 0x182   : > { %v1813_v33 = vadd.f32 %v1811_v25, %v1763_v55  ;;  %v1814_v34 = vadd.f32 %v1812_v26, %v1764_v56  ;;  %v1823_v35 = vmul.f32 %v2377_v59, %v1822_v28  ;;  %v1824_v36 = vmul.f32 %v2378_v60, %v1822_v28 }
 0x183   : > { %v1819_v39 = vadd.f32 %v1817_v31, %v1769_v61  ;;  %v1820_v40 = vadd.f32 %v1818_v32, %v1770_v62  ;;  %v1828_v41 = vstv %s3422_s9  ;;  %v1836_v42 = vstv %s3426_s10 }
 0x184   : > { %v1825_v43 = vadd.f32 %v1823_v35, %v1775_v1  ;;  %v1826_v44 = vadd.f32 %v1824_v36, %v1776_v2  ;;  %v1829_v45 = vmul.f32 %v2377_v59, %v1828_v41  ;;  %v1830_v46 = vmul.f32 %v2378_v60, %v1828_v41 }
 0x185   : > { %v1837_v47 = vmul.f32 %v2387_v37, %v1836_v42  ;;  %v1838_v48 = vmul.f32 %v2388_v38, %v1836_v42  ;;  %v1842_v49 = vstv %s3428_s11  ;;  %v1848_v50 = vstv %s3430_s12 }
 0x186   : > { %v1831_v51 = vadd.f32 %v1829_v45, %v1781_v9  ;;  %v1832_v52 = vadd.f32 %v1830_v46, %v1782_v10  ;;  %v1843_v53 = vmul.f32 %v2387_v37, %v1842_v49  ;;  %v1844_v54 = vmul.f32 %v2388_v38, %v1842_v49 }
 0x187   : > { %v1839_v55 = vadd.f32 %v1837_v47, %v1789_v13  ;;  %v1840_v56 = vadd.f32 %v1838_v48, %v1790_v14  ;;  %v1849_v57 = vmul.f32 %v2387_v37, %v1848_v50  ;;  %v1850_v58 = vmul.f32 %v2388_v38, %v1848_v50 }
 0x188   : > { %v1845_v59 = vadd.f32 %v1843_v53, %v1795_v17  ;;  %v1846_v60 = vadd.f32 %v1844_v54, %v1796_v18  ;;  %v1854_v61 = vstv %s3434_s13  ;;  %v1860_v62 = vstv %s3438_s14 }
 0x189   : > { %v1851_v63 = vadd.f32 %v1849_v57, %v1801_v21  ;;  %v1852_v0 = vadd.f32 %v1850_v58, %v1802_v22  ;;  %v1855_v1 = vmul.f32 %v2387_v37, %v1854_v61  ;;  %v1856_v2 = vmul.f32 %v2388_v38, %v1854_v61 }
 0x18a   : > { %v1861_v3 = vmul.f32 %v2387_v37, %v1860_v62  ;;  %v1862_v4 = vmul.f32 %v2388_v38, %v1860_v62  ;;  %v1866_v5 = vstv %s3440_s15  ;;  %v1872_v6 = vstv %s3444_s16 }
 0x18b   : > { %v1857_v7 = vadd.f32 %v1855_v1, %v1807_v29  ;;  %v1858_v8 = vadd.f32 %v1856_v2, %v1808_v30  ;;  %v1867_v9 = vmul.f32 %v2387_v37, %v1866_v5  ;;  %v1868_v10 = vmul.f32 %v2388_v38, %v1866_v5 }
 0x18c   : > { %v1863_v11 = vadd.f32 %v1861_v3, %v1813_v33  ;;  %v1864_v12 = vadd.f32 %v1862_v4, %v1814_v34  ;;  %v1873_v13 = vmul.f32 %v2387_v37, %v1872_v6  ;;  %v1874_v14 = vmul.f32 %v2388_v38, %v1872_v6 }
 0x18d   : > { %v1869_v15 = vadd.f32 %v1867_v9, %v1819_v39  ;;  %v1870_v16 = vadd.f32 %v1868_v10, %v1820_v40  ;;  %v1878_v17 = vstv %s3448_s17  ;;  %v1884_v18 = vstv %s3452_s18 }
 0x18e   : > { %v1875_v19 = vadd.f32 %v1873_v13, %v1825_v43  ;;  %v1876_v20 = vadd.f32 %v1874_v14, %v1826_v44  ;;  %v1879_v21 = vmul.f32 %v2387_v37, %v1878_v17  ;;  %v1880_v22 = vmul.f32 %v2388_v38, %v1878_v17 }
 0x18f   : > { %v1885_v23 = vadd.f32 %v1884_v18, %v1839_v55  ;;  %v1886_v24 = vadd.f32 %v1884_v18, %v1840_v56  ;;  %v1893_v25 = vstv %s3454_s6  ;;  %v1903_v26 = vstv %s3456_s19 }
 0x190   : > { %v1881_v27 = vadd.f32 %v1879_v21, %v1831_v51  ;;  %v1882_v28 = vadd.f32 %v1880_v22, %v1832_v52  ;;  %v1894_v29 = vadd.f32 %v1893_v25, %v1845_v59  ;;  %v1895_v30 = vadd.f32 %v1893_v25, %v1846_v60 }
 0x191   : > { %v1887_v31 = vmax.f32 %v1885_v23, 0.0  ;;  %v1888_v32 = vmax.f32 %v1886_v24, 0.0  ;;  %v1904_v33 = vadd.f32 %v1903_v26, %v1851_v63  ;;  %v1905_v34 = vadd.f32 %v1903_v26, %v1852_v0 }
 0x192   : > { %v1896_v35 = vmax.f32 %v1894_v29, 0.0  ;;  %v1897_v36 = vmax.f32 %v1895_v30, 0.0  ;;  %v1913_v37 = vstv %s3460_s20  ;;  %v1923_v38 = vstv %s3464_s21 }
 0x193   : > { %1890 = vst [vmem:[%s3481_s1] sm:$0xff] %v1887_v31  ;;  %1891 = vst [vmem:[%s3481_s1 + $0x8] sm:$0x3f] %v1888_v32  ;;  %v1906_v39 = vmax.f32 %v1904_v33, 0.0  ;;  %v1907_v40 = vmax.f32 %v1905_v34, 0.0  ;;  %v1914_v41 = vadd.f32 %v1913_v37, %v1857_v7  ;;  %v1915_v42 = vadd.f32 %v1913_v37, %v1858_v8 }
 0x194   : > { %2399 = vst [vmem:[%s3481_s1 + $0xe0] sm:$0xff] %v1896_v35  ;;  %2400 = vst [vmem:[%s3481_s1 + $0xe8] sm:$0x3f] %v1897_v36  ;;  %v1924_v43 = vadd.f32 %v1923_v38, %v1863_v11  ;;  %v1925_v44 = vadd.f32 %v1923_v38, %v1864_v12  ;;  %v1933_v45 = vstv %s3466_s22  ;;  %v1943_v46 = vstv %s3468_s23 }
 0x195   : > { %2403 = vst [vmem:[%s3481_s1 + $0x1c0] sm:$0xff] %v1906_v39  ;;  %2404 = vst [vmem:[%s3481_s1 + $0x1c8] sm:$0x3f] %v1907_v40  ;;  %v1916_v47 = vmax.f32 %v1914_v41, 0.0  ;;  %v1917_v48 = vmax.f32 %v1915_v42, 0.0  ;;  %v1934_v49 = vadd.f32 %v1933_v45, %v1869_v15  ;;  %v1935_v50 = vadd.f32 %v1933_v45, %v1870_v16 }
 0x196   : > { %v1926_v51 = vmax.f32 %v1924_v43, 0.0  ;;  %v1927_v52 = vmax.f32 %v1925_v44, 0.0  ;;  %v1944_v53 = vadd.f32 %v1943_v46, %v1875_v19  ;;  %v1945_v54 = vadd.f32 %v1943_v46, %v1876_v20 }
 0x197   : > { %2407 = vst [vmem:[%s3481_s1 + $0x2a0] sm:$0xff] %v1916_v47  ;;  %2408 = vst [vmem:[%s3481_s1 + $0x2a8] sm:$0x3f] %v1917_v48  ;;  %v1936_v55 = vmax.f32 %v1934_v49, 0.0  ;;  %v1937_v56 = vmax.f32 %v1935_v50, 0.0  ;;  %v1953_v57 = vstv %s3474_s24 }
 0x198   : > { %2411 = vst [vmem:[%s3481_s1 + $0x380] sm:$0xff] %v1926_v51  ;;  %2412 = vst [vmem:[%s3481_s1 + $0x388] sm:$0x3f] %v1927_v52  ;;  %v1946_v58 = vmax.f32 %v1944_v53, 0.0  ;;  %v1947_v59 = vmax.f32 %v1945_v54, 0.0  ;;  %v1954_v60 = vadd.f32 %v1953_v57, %v1881_v27  ;;  %v1955_v61 = vadd.f32 %v1953_v57, %v1882_v28  ;;  %55 = sbr.rel (!%p53_p10) target bundleno = 34 (0x22), region = 71 }
 0x199   : > { %2415 = vst [vmem:[%s3481_s1 + $0x460] sm:$0xff] %v1936_v55  ;;  %2416 = vst [vmem:[%s3481_s1 + $0x468] sm:$0x3f] %v1937_v56 }
 0x19a   : > { %2419 = vst [vmem:[%s3481_s1 + $0x540] sm:$0xff] %v1946_v58  ;;  %2420 = vst [vmem:[%s3481_s1 + $0x548] sm:$0x3f] %v1947_v59  ;;  %v1956_v62 = vmax.f32 %v1954_v60, 0.0  ;;  %v1957_v63 = vmax.f32 %v1955_v61, 0.0 }
 0x19c   : > { %2423 = vst [vmem:[%s3481_s1 + $0x620] sm:$0xff] %v1956_v62  ;;  %2424 = vst [vmem:[%s3481_s1 + $0x628] sm:$0x3f] %v1957_v63 }
 0x19d   :  { %1966 = vsyncpa [#allocation3], 1 }
 0x19e   :  { %1967 = vsyncpa [#allocation4], 1 }
 0x19f   :  { %1968 = vsyncpa [#allocation5], 1 }

</bundles_post_ra>
